<compile_context>
chip_gen: v6e
topology: v6e:2x2x1
jax: 0.10.0
libtpu: 0.0.40
codegen_flags: <defaults>
</compile_context>

<pallas_src>
import math

import jax
import jax.numpy as jnp
from jax import lax
from jax.experimental import pallas as pl
from jax.experimental.pallas import tpu as pltpu


def _make_gru_kernel(num_layers, T, Bp, H, GP, Cp):
    """Full multi-layer GRU over time (all weights VMEM-resident) + final FC."""
    HP = GP           # hidden state carried lane-padded to GP
    GW = 3 * GP       # packed gate width: [r | z | n], each gate padded to GP lanes

    def kernel(*refs):
        x_ref = refs[0]                                  # (T*Bp, D)  time-major, 2D
        layer_refs = refs[1:1 + 4 * num_layers]          # wih, whh, bi, bh per layer
        wfc_ref = refs[1 + 4 * num_layers]               # (HP, Cp)
        bfc_ref = refs[2 + 4 * num_layers]               # (1, Cp)
        out_ref = refs[3 + 4 * num_layers]               # (Bp, Cp)
        scratch = refs[4 + 4 * num_layers:]
        gi_s = scratch[0]                                # (T*Bp, GW)
        hseq_s = scratch[1] if num_layers > 1 else None  # (T*Bp, HP)

        f32 = jnp.float32
        h_last = jnp.zeros((Bp, HP), f32)

        for l in range(num_layers):
            wih, whh, bi, bh = (r[...] for r in layer_refs[4 * l:4 * (l + 1)])
            # Hoist the recurrent-bias broadcast out of the unrolled time loop.
            bh_b = jnp.broadcast_to(bh, (Bp, GW))

            # Hoisted + fused input-to-hidden matmul: all T steps, all 3 gates at once.
            in2d = x_ref[...] if l == 0 else hseq_s[...]
            gi_s[...] = jnp.dot(in2d, wih, preferred_element_type=f32) + bi

            write_seq = (l < num_layers - 1)             # last layer only needs h_T

            def step(t, h, whh=whh, bh_b=bh_b, write_seq=write_seq):
                row = pl.multiple_of(t * Bp, Bp)
                gi_t = gi_s[pl.ds(row, Bp), :]           # (Bp, GW) full-vreg read
                # ONE fused MXU push for all 3 recurrent gate matmuls.
                gh = jnp.dot(h, whh, preferred_element_type=f32) + bh_b
                # r|z are adjacent lanes -> single sigmoid region; slices vreg-aligned.
                rz = jax.nn.sigmoid(gi_t[:, :2 * GP] + gh[:, :2 * GP])
                r = rz[:, :GP]
                z = rz[:, GP:]
                n = jnp.tanh(gi_t[:, 2 * GP:] + r * gh[:, 2 * GP:])
                h_new = n + z * (h - n)                  # == (1-z)*n + z*h
                if write_seq:
                    hseq_s[pl.ds(row, Bp), :] = h_new    # full-lane unmasked store
                return h_new

            h0 = jnp.zeros((Bp, HP), f32)
            h_last = lax.fori_loop(0, T, step, h0,
                                   unroll=True if T <= 16 else 8)

        # FC on last timestep of last layer; lane-dense (Bp, Cp>=128) store.
        out_ref[...] = (jnp.dot(h_last, wfc_ref[...],
                                preferred_element_type=jnp.float32)
                        + bfc_ref[...])

    return kernel


def _pack_gate_cols(w, H, GP):
    """(in_dim, 3H) cols ordered [r|z|n] -> (in_dim, 3*GP), gate g at lane g*GP."""
    out = jnp.zeros((w.shape[0], 3 * GP), w.dtype)
    for g in range(3):
        out = out.at[:, g * GP:g * GP + H].set(w[:, g * H:(g + 1) * H])
    return out


def _pack_gate_bias(b, H, GP):
    """(3H,) ordered [r|z|n] -> (1, 3*GP)."""
    out = jnp.zeros((1, 3 * GP), b.dtype)
    for g in range(3):
        out = out.at[0, g * GP:g * GP + H].set(b[g * H:(g + 1) * H])
    return out


def gru_classifier_forward(x, params):
    """x: (B, T, D) batch-first float32. Returns logits (B, num_classes)."""
    B, T, D = x.shape
    layers = params["layers"]
    num_layers = len(layers)
    H = layers[0]["weight_hh"].shape[1]
    C = params["fc_weight"].shape[0]

    Bp = max(8, ((B + 7) // 8) * 8)             # batch -> sublane multiple
    GP = max(128, ((H + 127) // 128) * 128)     # per-gate lane-pad width
    HP = GP                                     # hidden carried lane-padded
    Cp = max(128, ((C + 127) // 128) * 128)     # lane-dense FC output

    # Time-major, batch-padded, flattened to the 2D layout the kernel consumes.
    x_tm = jnp.transpose(x.astype(jnp.float32), (1, 0, 2))      # (T, B, D)
    if Bp != B:
        x_tm = jnp.pad(x_tm, ((0, 0), (0, Bp - B), (0, 0)))
    x2d = x_tm.reshape(T * Bp, D)

    inputs = [x2d]
    zero = jnp.zeros((H,), jnp.float32)
    for l, lyr in enumerate(layers):
        wih = lyr["weight_ih"].astype(jnp.float32)   # (3H, in)  rows [r; z; n]
        whh = lyr["weight_hh"].astype(jnp.float32)   # (3H, H)
        bih = lyr["bias_ih"].astype(jnp.float32)
        bhh = lyr["bias_hh"].astype(jnp.float32)

        wih_p = _pack_gate_cols(wih.T, H, GP)        # (in, 3*GP)
        if l > 0 and wih_p.shape[0] != HP:           # layer>0 input is lane-padded h
            wih_p = jnp.pad(wih_p, ((0, HP - wih_p.shape[0]), (0, 0)))
        whh_p = _pack_gate_cols(whh.T, H, GP)        # (H, 3*GP)
        whh_p = jnp.pad(whh_p, ((0, HP - H), (0, 0)))  # zero rows -> h padding inert

        # gi bias: r,z biases combined (b_i + b_h); n gets only b_in.
        bi_p = _pack_gate_bias(
            jnp.concatenate([bih[0:H] + bhh[0:H],
                             bih[H:2 * H] + bhh[H:2 * H],
                             bih[2 * H:3 * H]]), H, GP)
        # gh bias: only b_hn (must stay inside the r-multiplied term).
        bh_p = _pack_gate_bias(
            jnp.concatenate([zero, zero, bhh[2 * H:3 * H]]), H, GP)

        inputs += [wih_p, whh_p, bi_p, bh_p]

    wfc = params["fc_weight"].astype(jnp.float32).T              # (H, C)
    wfc = jnp.pad(wfc, ((0, HP - H), (0, Cp - C)))
    bfc = jnp.pad(params["fc_bias"].astype(jnp.float32).reshape(1, C),
                  ((0, 0), (0, Cp - C)))
    inputs += [wfc, bfc]

    kernel = _make_gru_kernel(num_layers, T, Bp, H, GP, Cp)
    vmem_spec = pl.BlockSpec(memory_space=pltpu.MemorySpace.VMEM)

    scratch_shapes = [pltpu.VMEM((T * Bp, 3 * GP), jnp.float32)]
    if num_layers > 1:
        scratch_shapes.append(pltpu.VMEM((T * Bp, HP), jnp.float32))

    # TpuInfo-aware scoped-VMEM limit: <= half of physical VMEM (64 MiB/TC on v7x).
    try:
        vmem_cap = int(getattr(pltpu.get_tpu_info(), "vmem_capacity_bytes", 64 << 20))
    except Exception:
        vmem_cap = 64 << 20
    total_bytes = (sum(int(a.size) * a.dtype.itemsize for a in inputs)
                   + Bp * Cp * 4
                   + T * Bp * 3 * GP * 4
                   + (T * Bp * HP * 4 if num_layers > 1 else 0))
    vmem_limit = int(min(max(2 * total_bytes, 16 << 20), vmem_cap // 2, 48 << 20))

    out = pl.pallas_call(
        kernel,
        out_shape=jax.ShapeDtypeStruct((Bp, Cp), jnp.float32),
        in_specs=[vmem_spec for _ in inputs],
        out_specs=vmem_spec,
        scratch_shapes=scratch_shapes,
        compiler_params=pltpu.CompilerParams(vmem_limit_bytes=vmem_limit),
    )(*inputs)
    return out[:B, :C]


def init_params(key, input_dim, hidden_dim, num_layers, num_classes):
    """Deterministic init matching PyTorch parameter shapes (uniform +-1/sqrt(H))."""
    k = 1.0 / math.sqrt(hidden_dim)
    layers = []
    for l in range(num_layers):
        in_dim = input_dim if l == 0 else hidden_dim
        key, k1, k2, k3, k4 = jax.random.split(key, 5)
        layers.append(dict(
            weight_ih=jax.random.uniform(k1, (3 * hidden_dim, in_dim), jnp.float32, -k, k),
            weight_hh=jax.random.uniform(k2, (3 * hidden_dim, hidden_dim), jnp.float32, -k, k),
            bias_ih=jax.random.uniform(k3, (3 * hidden_dim,), jnp.float32, -k, k),
            bias_hh=jax.random.uniform(k4, (3 * hidden_dim,), jnp.float32, -k, k),
        ))
    key, k5, k6 = jax.random.split(key, 3)
    fc_weight = jax.random.uniform(k5, (num_classes, hidden_dim), jnp.float32, -k, k)
    fc_bias = jax.random.uniform(k6, (num_classes,), jnp.float32, -k, k)
    return dict(layers=layers, fc_weight=fc_weight, fc_bias=fc_bias)


def gru_classifier_ref(x, params):
    """Pure-JAX reference mirroring torch.nn.GRU(batch_first=True) + Linear."""
    B, T, _ = x.shape
    layers = params["layers"]
    H = layers[0]["weight_hh"].shape[1]
    hs = [jnp.zeros((B, H), jnp.float32) for _ in layers]
    for t in range(T):
        inp = x[:, t, :]
        for l, lyr in enumerate(layers):
            gi = inp @ lyr["weight_ih"].T + lyr["bias_ih"]
            gh = hs[l] @ lyr["weight_hh"].T + lyr["bias_hh"]
            r = jax.nn.sigmoid(gi[:, 0 * H:1 * H] + gh[:, 0 * H:1 * H])
            z = jax.nn.sigmoid(gi[:, 1 * H:2 * H] + gh[:, 1 * H:2 * H])
            n = jnp.tanh(gi[:, 2 * H:3 * H] + r * gh[:, 2 * H:3 * H])
            hs[l] = (1.0 - z) * n + z * hs[l]
            inp = hs[l]
    return hs[-1] @ params["fc_weight"].T + params["fc_bias"]


if __name__ == "__main__":
    B, T, D, H, L, C = 2, 8, 16, 32, 2, 4   # batch, seq, input_dim, hidden, layers, classes

    key = jax.random.PRNGKey(0)
    kx, kp = jax.random.split(key)
    x = jax.random.normal(kx, (B, T, D), dtype=jnp.float32)
    params = init_params(kp, D, H, L, C)

    out = jax.block_until_ready(gru_classifier_forward(x, params))
    ref = gru_classifier_ref(x, params)

    assert out.shape == (B, C), out.shape
    assert jnp.allclose(out, ref, atol=1e-4, rtol=1e-4), (
        f"mismatch: max abs err {jnp.max(jnp.abs(out - ref))}")
    print("KERNEL_OK")
</pallas_src>

<mosaic_0001>
module attributes {stable_mosaic.version = 11 : i64} {
  func.func @kernel(%arg0: memref<64x16xf32, #tpu.memory_space<vmem>>, %arg1: memref<16x384xf32, #tpu.memory_space<vmem>>, %arg2: memref<128x384xf32, #tpu.memory_space<vmem>>, %arg3: memref<1x384xf32, #tpu.memory_space<vmem>>, %arg4: memref<1x384xf32, #tpu.memory_space<vmem>>, %arg5: memref<128x384xf32, #tpu.memory_space<vmem>>, %arg6: memref<128x384xf32, #tpu.memory_space<vmem>>, %arg7: memref<1x384xf32, #tpu.memory_space<vmem>>, %arg8: memref<1x384xf32, #tpu.memory_space<vmem>>, %arg9: memref<128x128xf32, #tpu.memory_space<vmem>>, %arg10: memref<1x128xf32, #tpu.memory_space<vmem>>, %arg11: memref<8x128xf32, #tpu.memory_space<vmem>>, %arg12: memref<64x384xf32, #tpu.memory_space<vmem>>, %arg13: memref<64x128xf32, #tpu.memory_space<vmem>>) attributes {dimension_semantics = [], scalar_prefetch = 0 : i64, scratch_operands = 2 : i64, tpu.core_type = #tpu.core_type<tc>} {
    %c0 = arith.constant 0 : index
    %c0_0 = arith.constant 0 : index
    %0 = vector.load %arg1[%c0, %c0_0] : memref<16x384xf32, #tpu.memory_space<vmem>>, vector<16x384xf32>
    %c0_1 = arith.constant 0 : index
    %c0_2 = arith.constant 0 : index
    %1 = vector.load %arg2[%c0_1, %c0_2] : memref<128x384xf32, #tpu.memory_space<vmem>>, vector<128x384xf32>
    %c0_3 = arith.constant 0 : index
    %c0_4 = arith.constant 0 : index
    %2 = vector.load %arg3[%c0_3, %c0_4] : memref<1x384xf32, #tpu.memory_space<vmem>>, vector<1x384xf32>
    %c0_5 = arith.constant 0 : index
    %c0_6 = arith.constant 0 : index
    %3 = vector.load %arg4[%c0_5, %c0_6] : memref<1x384xf32, #tpu.memory_space<vmem>>, vector<1x384xf32>
    %4 = vector.shape_cast %3 : vector<1x384xf32> to vector<1x384xf32>
    %5 = vector.broadcast %4 : vector<1x384xf32> to vector<8x384xf32>
    %c0_7 = arith.constant 0 : index
    %c0_8 = arith.constant 0 : index
    %6 = vector.load %arg0[%c0_7, %c0_8] : memref<64x16xf32, #tpu.memory_space<vmem>>, vector<64x16xf32>
    %cst = arith.constant dense<0.000000e+00> : vector<64x384xf32>
    %7 = tpu.matmul %6, %0, %cst {dimension_numbers = #tpu.dot_dimension_numbers<[1], [0], [0], [1], [0, 0, 1, 1], [], []>} : vector<64x16xf32>, vector<16x384xf32>, vector<64x384xf32> -> vector<64x384xf32>
    %8 = vector.broadcast %2 : vector<1x384xf32> to vector<64x384xf32>
    %9 = arith.addf %7, %8 : vector<64x384xf32>
    %c0_9 = arith.constant 0 : index
    %c0_10 = arith.constant 0 : index
    %10 = vector.load %arg12[%c0_9, %c0_10] : memref<64x384xf32, #tpu.memory_space<vmem>>, vector<64x384xf32>
    tpu.vector_store %arg12[%c0_9, %c0_10], %9 {strides = array<i32>} : memref<64x384xf32, #tpu.memory_space<vmem>>, vector<64x384xf32>,
    %cst_11 = arith.constant 0.000000e+00 : f32
    %11 = vector.broadcast %cst_11 : f32 to vector<8x128xf32>
    %c0_i32 = arith.constant 0 : i32
    %c8_i32 = arith.constant 8 : i32
    %12 = arith.muli %c0_i32, %c8_i32 : i32
    %13 = tpu.assume_multiple %12, 8 : i32
    %14 = arith.index_cast %13 : i32 to index
    %c0_12 = arith.constant 0 : index
    %15 = vector.load %arg12[%14, %c0_12] : memref<64x384xf32, #tpu.memory_space<vmem>>, vector<8x384xf32>
    %cst_13 = arith.constant dense<0.000000e+00> : vector<8x384xf32>
    %16 = tpu.matmul %11, %1, %cst_13 {dimension_numbers = #tpu.dot_dimension_numbers<[1], [0], [0], [1], [0, 0, 1, 1], [], []>} : vector<8x128xf32>, vector<128x384xf32>, vector<8x384xf32> -> vector<8x384xf32>
    %17 = arith.addf %16, %5 : vector<8x384xf32>
    %18 = vector.extract_strided_slice %15 {offsets = [0, 0], sizes = [8, 256], strides = [1, 1]} : vector<8x384xf32> to vector<8x256xf32>
    %19 = vector.extract_strided_slice %17 {offsets = [0, 0], sizes = [8, 256], strides = [1, 1]} : vector<8x384xf32> to vector<8x256xf32>
    %20 = arith.addf %18, %19 : vector<8x256xf32>
    %21 = arith.negf %20 : vector<8x256xf32>
    %22 = math.exp %21 : vector<8x256xf32>
    %cst_14 = arith.constant 1.000000e+00 : f32
    %23 = vector.broadcast %cst_14 : f32 to vector<8x256xf32>
    %24 = arith.addf %23, %22 : vector<8x256xf32>
    %25 = arith.divf %23, %24 : vector<8x256xf32>
    %26 = vector.extract_strided_slice %25 {offsets = [0, 0], sizes = [8, 128], strides = [1, 1]} : vector<8x256xf32> to vector<8x128xf32>
    %27 = vector.extract_strided_slice %25 {offsets = [0, 128], sizes = [8, 128], strides = [1, 1]} : vector<8x256xf32> to vector<8x128xf32>
    %28 = vector.extract_strided_slice %15 {offsets = [0, 256], sizes = [8, 128], strides = [1, 1]} : vector<8x384xf32> to vector<8x128xf32>
    %29 = vector.extract_strided_slice %17 {offsets = [0, 256], sizes = [8, 128], strides = [1, 1]} : vector<8x384xf32> to vector<8x128xf32>
    %30 = arith.mulf %26, %29 : vector<8x128xf32>
    %31 = arith.addf %28, %30 : vector<8x128xf32>
    %32 = math.tanh %31 : vector<8x128xf32>
    %33 = arith.subf %11, %32 : vector<8x128xf32>
    %34 = arith.mulf %27, %33 : vector<8x128xf32>
    %35 = arith.addf %32, %34 : vector<8x128xf32>
    %36 = arith.index_cast %13 : i32 to index
    %c0_15 = arith.constant 0 : index
    %37 = vector.load %arg13[%36, %c0_15] : memref<64x128xf32, #tpu.memory_space<vmem>>, vector<8x128xf32>
    tpu.vector_store %arg13[%36, %c0_15], %35 {strides = array<i32>} : memref<64x128xf32, #tpu.memory_space<vmem>>, vector<8x128xf32>,
    %c1_i32 = arith.constant 1 : i32
    %c8_i32_16 = arith.constant 8 : i32
    %38 = arith.muli %c1_i32, %c8_i32_16 : i32
    %39 = tpu.assume_multiple %38, 8 : i32
    %40 = arith.index_cast %39 : i32 to index
    %c0_17 = arith.constant 0 : index
    %41 = vector.load %arg12[%40, %c0_17] : memref<64x384xf32, #tpu.memory_space<vmem>>, vector<8x384xf32>
    %cst_18 = arith.constant dense<0.000000e+00> : vector<8x384xf32>
    %42 = tpu.matmul %35, %1, %cst_18 {dimension_numbers = #tpu.dot_dimension_numbers<[1], [0], [0], [1], [0, 0, 1, 1], [], []>} : vector<8x128xf32>, vector<128x384xf32>, vector<8x384xf32> -> vector<8x384xf32>
    %43 = arith.addf %42, %5 : vector<8x384xf32>
    %44 = vector.extract_strided_slice %41 {offsets = [0, 0], sizes = [8, 256], strides = [1, 1]} : vector<8x384xf32> to vector<8x256xf32>
    %45 = vector.extract_strided_slice %43 {offsets = [0, 0], sizes = [8, 256], strides = [1, 1]} : vector<8x384xf32> to vector<8x256xf32>
    %46 = arith.addf %44, %45 : vector<8x256xf32>
    %47 = arith.negf %46 : vector<8x256xf32>
    %48 = math.exp %47 : vector<8x256xf32>
    %cst_19 = arith.constant 1.000000e+00 : f32
    %49 = vector.broadcast %cst_19 : f32 to vector<8x256xf32>
    %50 = arith.addf %49, %48 : vector<8x256xf32>
    %51 = arith.divf %49, %50 : vector<8x256xf32>
    %52 = vector.extract_strided_slice %51 {offsets = [0, 0], sizes = [8, 128], strides = [1, 1]} : vector<8x256xf32> to vector<8x128xf32>
    %53 = vector.extract_strided_slice %51 {offsets = [0, 128], sizes = [8, 128], strides = [1, 1]} : vector<8x256xf32> to vector<8x128xf32>
    %54 = vector.extract_strided_slice %41 {offsets = [0, 256], sizes = [8, 128], strides = [1, 1]} : vector<8x384xf32> to vector<8x128xf32>
    %55 = vector.extract_strided_slice %43 {offsets = [0, 256], sizes = [8, 128], strides = [1, 1]} : vector<8x384xf32> to vector<8x128xf32>
    %56 = arith.mulf %52, %55 : vector<8x128xf32>
    %57 = arith.addf %54, %56 : vector<8x128xf32>
    %58 = math.tanh %57 : vector<8x128xf32>
    %59 = arith.subf %35, %58 : vector<8x128xf32>
    %60 = arith.mulf %53, %59 : vector<8x128xf32>
    %61 = arith.addf %58, %60 : vector<8x128xf32>
    %62 = arith.index_cast %39 : i32 to index
    %c0_20 = arith.constant 0 : index
    %63 = vector.load %arg13[%62, %c0_20] : memref<64x128xf32, #tpu.memory_space<vmem>>, vector<8x128xf32>
    tpu.vector_store %arg13[%62, %c0_20], %61 {strides = array<i32>} : memref<64x128xf32, #tpu.memory_space<vmem>>, vector<8x128xf32>,
    %c2_i32 = arith.constant 2 : i32
    %c8_i32_21 = arith.constant 8 : i32
    %64 = arith.muli %c2_i32, %c8_i32_21 : i32
    %65 = tpu.assume_multiple %64, 8 : i32
    %66 = arith.index_cast %65 : i32 to index
    %c0_22 = arith.constant 0 : index
    %67 = vector.load %arg12[%66, %c0_22] : memref<64x384xf32, #tpu.memory_space<vmem>>, vector<8x384xf32>
    %cst_23 = arith.constant dense<0.000000e+00> : vector<8x384xf32>
    %68 = tpu.matmul %61, %1, %cst_23 {dimension_numbers = #tpu.dot_dimension_numbers<[1], [0], [0], [1], [0, 0, 1, 1], [], []>} : vector<8x128xf32>, vector<128x384xf32>, vector<8x384xf32> -> vector<8x384xf32>
    %69 = arith.addf %68, %5 : vector<8x384xf32>
    %70 = vector.extract_strided_slice %67 {offsets = [0, 0], sizes = [8, 256], strides = [1, 1]} : vector<8x384xf32> to vector<8x256xf32>
    %71 = vector.extract_strided_slice %69 {offsets = [0, 0], sizes = [8, 256], strides = [1, 1]} : vector<8x384xf32> to vector<8x256xf32>
    %72 = arith.addf %70, %71 : vector<8x256xf32>
    %73 = arith.negf %72 : vector<8x256xf32>
    %74 = math.exp %73 : vector<8x256xf32>
    %cst_24 = arith.constant 1.000000e+00 : f32
    %75 = vector.broadcast %cst_24 : f32 to vector<8x256xf32>
    %76 = arith.addf %75, %74 : vector<8x256xf32>
    %77 = arith.divf %75, %76 : vector<8x256xf32>
    %78 = vector.extract_strided_slice %77 {offsets = [0, 0], sizes = [8, 128], strides = [1, 1]} : vector<8x256xf32> to vector<8x128xf32>
    %79 = vector.extract_strided_slice %77 {offsets = [0, 128], sizes = [8, 128], strides = [1, 1]} : vector<8x256xf32> to vector<8x128xf32>
    %80 = vector.extract_strided_slice %67 {offsets = [0, 256], sizes = [8, 128], strides = [1, 1]} : vector<8x384xf32> to vector<8x128xf32>
    %81 = vector.extract_strided_slice %69 {offsets = [0, 256], sizes = [8, 128], strides = [1, 1]} : vector<8x384xf32> to vector<8x128xf32>
    %82 = arith.mulf %78, %81 : vector<8x128xf32>
    %83 = arith.addf %80, %82 : vector<8x128xf32>
    %84 = math.tanh %83 : vector<8x128xf32>
    %85 = arith.subf %61, %84 : vector<8x128xf32>
    %86 = arith.mulf %79, %85 : vector<8x128xf32>
    %87 = arith.addf %84, %86 : vector<8x128xf32>
    %88 = arith.index_cast %65 : i32 to index
    %c0_25 = arith.constant 0 : index
    %89 = vector.load %arg13[%88, %c0_25] : memref<64x128xf32, #tpu.memory_space<vmem>>, vector<8x128xf32>
    tpu.vector_store %arg13[%88, %c0_25], %87 {strides = array<i32>} : memref<64x128xf32, #tpu.memory_space<vmem>>, vector<8x128xf32>,
    %c3_i32 = arith.constant 3 : i32
    %c8_i32_26 = arith.constant 8 : i32
    %90 = arith.muli %c3_i32, %c8_i32_26 : i32
    %91 = tpu.assume_multiple %90, 8 : i32
    %92 = arith.index_cast %91 : i32 to index
    %c0_27 = arith.constant 0 : index
    %93 = vector.load %arg12[%92, %c0_27] : memref<64x384xf32, #tpu.memory_space<vmem>>, vector<8x384xf32>
    %cst_28 = arith.constant dense<0.000000e+00> : vector<8x384xf32>
    %94 = tpu.matmul %87, %1, %cst_28 {dimension_numbers = #tpu.dot_dimension_numbers<[1], [0], [0], [1], [0, 0, 1, 1], [], []>} : vector<8x128xf32>, vector<128x384xf32>, vector<8x384xf32> -> vector<8x384xf32>
    %95 = arith.addf %94, %5 : vector<8x384xf32>
    %96 = vector.extract_strided_slice %93 {offsets = [0, 0], sizes = [8, 256], strides = [1, 1]} : vector<8x384xf32> to vector<8x256xf32>
    %97 = vector.extract_strided_slice %95 {offsets = [0, 0], sizes = [8, 256], strides = [1, 1]} : vector<8x384xf32> to vector<8x256xf32>
    %98 = arith.addf %96, %97 : vector<8x256xf32>
    %99 = arith.negf %98 : vector<8x256xf32>
    %100 = math.exp %99 : vector<8x256xf32>
    %cst_29 = arith.constant 1.000000e+00 : f32
    %101 = vector.broadcast %cst_29 : f32 to vector<8x256xf32>
    %102 = arith.addf %101, %100 : vector<8x256xf32>
    %103 = arith.divf %101, %102 : vector<8x256xf32>
    %104 = vector.extract_strided_slice %103 {offsets = [0, 0], sizes = [8, 128], strides = [1, 1]} : vector<8x256xf32> to vector<8x128xf32>
    %105 = vector.extract_strided_slice %103 {offsets = [0, 128], sizes = [8, 128], strides = [1, 1]} : vector<8x256xf32> to vector<8x128xf32>
    %106 = vector.extract_strided_slice %93 {offsets = [0, 256], sizes = [8, 128], strides = [1, 1]} : vector<8x384xf32> to vector<8x128xf32>
    %107 = vector.extract_strided_slice %95 {offsets = [0, 256], sizes = [8, 128], strides = [1, 1]} : vector<8x384xf32> to vector<8x128xf32>
    %108 = arith.mulf %104, %107 : vector<8x128xf32>
    %109 = arith.addf %106, %108 : vector<8x128xf32>
    %110 = math.tanh %109 : vector<8x128xf32>
    %111 = arith.subf %87, %110 : vector<8x128xf32>
    %112 = arith.mulf %105, %111 : vector<8x128xf32>
    %113 = arith.addf %110, %112 : vector<8x128xf32>
    %114 = arith.index_cast %91 : i32 to index
    %c0_30 = arith.constant 0 : index
    %115 = vector.load %arg13[%114, %c0_30] : memref<64x128xf32, #tpu.memory_space<vmem>>, vector<8x128xf32>
    tpu.vector_store %arg13[%114, %c0_30], %113 {strides = array<i32>} : memref<64x128xf32, #tpu.memory_space<vmem>>, vector<8x128xf32>,
    %c4_i32 = arith.constant 4 : i32
    %c8_i32_31 = arith.constant 8 : i32
    %116 = arith.muli %c4_i32, %c8_i32_31 : i32
    %117 = tpu.assume_multiple %116, 8 : i32
    %118 = arith.index_cast %117 : i32 to index
    %c0_32 = arith.constant 0 : index
    %119 = vector.load %arg12[%118, %c0_32] : memref<64x384xf32, #tpu.memory_space<vmem>>, vector<8x384xf32>
    %cst_33 = arith.constant dense<0.000000e+00> : vector<8x384xf32>
    %120 = tpu.matmul %113, %1, %cst_33 {dimension_numbers = #tpu.dot_dimension_numbers<[1], [0], [0], [1], [0, 0, 1, 1], [], []>} : vector<8x128xf32>, vector<128x384xf32>, vector<8x384xf32> -> vector<8x384xf32>
    %121 = arith.addf %120, %5 : vector<8x384xf32>
    %122 = vector.extract_strided_slice %119 {offsets = [0, 0], sizes = [8, 256], strides = [1, 1]} : vector<8x384xf32> to vector<8x256xf32>
    %123 = vector.extract_strided_slice %121 {offsets = [0, 0], sizes = [8, 256], strides = [1, 1]} : vector<8x384xf32> to vector<8x256xf32>
    %124 = arith.addf %122, %123 : vector<8x256xf32>
    %125 = arith.negf %124 : vector<8x256xf32>
    %126 = math.exp %125 : vector<8x256xf32>
    %cst_34 = arith.constant 1.000000e+00 : f32
    %127 = vector.broadcast %cst_34 : f32 to vector<8x256xf32>
    %128 = arith.addf %127, %126 : vector<8x256xf32>
    %129 = arith.divf %127, %128 : vector<8x256xf32>
    %130 = vector.extract_strided_slice %129 {offsets = [0, 0], sizes = [8, 128], strides = [1, 1]} : vector<8x256xf32> to vector<8x128xf32>
    %131 = vector.extract_strided_slice %129 {offsets = [0, 128], sizes = [8, 128], strides = [1, 1]} : vector<8x256xf32> to vector<8x128xf32>
    %132 = vector.extract_strided_slice %119 {offsets = [0, 256], sizes = [8, 128], strides = [1, 1]} : vector<8x384xf32> to vector<8x128xf32>
    %133 = vector.extract_strided_slice %121 {offsets = [0, 256], sizes = [8, 128], strides = [1, 1]} : vector<8x384xf32> to vector<8x128xf32>
    %134 = arith.mulf %130, %133 : vector<8x128xf32>
    %135 = arith.addf %132, %134 : vector<8x128xf32>
    %136 = math.tanh %135 : vector<8x128xf32>
    %137 = arith.subf %113, %136 : vector<8x128xf32>
    %138 = arith.mulf %131, %137 : vector<8x128xf32>
    %139 = arith.addf %136, %138 : vector<8x128xf32>
    %140 = arith.index_cast %117 : i32 to index
    %c0_35 = arith.constant 0 : index
    %141 = vector.load %arg13[%140, %c0_35] : memref<64x128xf32, #tpu.memory_space<vmem>>, vector<8x128xf32>
    tpu.vector_store %arg13[%140, %c0_35], %139 {strides = array<i32>} : memref<64x128xf32, #tpu.memory_space<vmem>>, vector<8x128xf32>,
    %c5_i32 = arith.constant 5 : i32
    %c8_i32_36 = arith.constant 8 : i32
    %142 = arith.muli %c5_i32, %c8_i32_36 : i32
    %143 = tpu.assume_multiple %142, 8 : i32
    %144 = arith.index_cast %143 : i32 to index
    %c0_37 = arith.constant 0 : index
    %145 = vector.load %arg12[%144, %c0_37] : memref<64x384xf32, #tpu.memory_space<vmem>>, vector<8x384xf32>
    %cst_38 = arith.constant dense<0.000000e+00> : vector<8x384xf32>
    %146 = tpu.matmul %139, %1, %cst_38 {dimension_numbers = #tpu.dot_dimension_numbers<[1], [0], [0], [1], [0, 0, 1, 1], [], []>} : vector<8x128xf32>, vector<128x384xf32>, vector<8x384xf32> -> vector<8x384xf32>
    %147 = arith.addf %146, %5 : vector<8x384xf32>
    %148 = vector.extract_strided_slice %145 {offsets = [0, 0], sizes = [8, 256], strides = [1, 1]} : vector<8x384xf32> to vector<8x256xf32>
    %149 = vector.extract_strided_slice %147 {offsets = [0, 0], sizes = [8, 256], strides = [1, 1]} : vector<8x384xf32> to vector<8x256xf32>
    %150 = arith.addf %148, %149 : vector<8x256xf32>
    %151 = arith.negf %150 : vector<8x256xf32>
    %152 = math.exp %151 : vector<8x256xf32>
    %cst_39 = arith.constant 1.000000e+00 : f32
    %153 = vector.broadcast %cst_39 : f32 to vector<8x256xf32>
    %154 = arith.addf %153, %152 : vector<8x256xf32>
    %155 = arith.divf %153, %154 : vector<8x256xf32>
    %156 = vector.extract_strided_slice %155 {offsets = [0, 0], sizes = [8, 128], strides = [1, 1]} : vector<8x256xf32> to vector<8x128xf32>
    %157 = vector.extract_strided_slice %155 {offsets = [0, 128], sizes = [8, 128], strides = [1, 1]} : vector<8x256xf32> to vector<8x128xf32>
    %158 = vector.extract_strided_slice %145 {offsets = [0, 256], sizes = [8, 128], strides = [1, 1]} : vector<8x384xf32> to vector<8x128xf32>
    %159 = vector.extract_strided_slice %147 {offsets = [0, 256], sizes = [8, 128], strides = [1, 1]} : vector<8x384xf32> to vector<8x128xf32>
    %160 = arith.mulf %156, %159 : vector<8x128xf32>
    %161 = arith.addf %158, %160 : vector<8x128xf32>
    %162 = math.tanh %161 : vector<8x128xf32>
    %163 = arith.subf %139, %162 : vector<8x128xf32>
    %164 = arith.mulf %157, %163 : vector<8x128xf32>
    %165 = arith.addf %162, %164 : vector<8x128xf32>
    %166 = arith.index_cast %143 : i32 to index
    %c0_40 = arith.constant 0 : index
    %167 = vector.load %arg13[%166, %c0_40] : memref<64x128xf32, #tpu.memory_space<vmem>>, vector<8x128xf32>
    tpu.vector_store %arg13[%166, %c0_40], %165 {strides = array<i32>} : memref<64x128xf32, #tpu.memory_space<vmem>>, vector<8x128xf32>,
    %c6_i32 = arith.constant 6 : i32
    %c8_i32_41 = arith.constant 8 : i32
    %168 = arith.muli %c6_i32, %c8_i32_41 : i32
    %169 = tpu.assume_multiple %168, 8 : i32
    %170 = arith.index_cast %169 : i32 to index
    %c0_42 = arith.constant 0 : index
    %171 = vector.load %arg12[%170, %c0_42] : memref<64x384xf32, #tpu.memory_space<vmem>>, vector<8x384xf32>
    %cst_43 = arith.constant dense<0.000000e+00> : vector<8x384xf32>
    %172 = tpu.matmul %165, %1, %cst_43 {dimension_numbers = #tpu.dot_dimension_numbers<[1], [0], [0], [1], [0, 0, 1, 1], [], []>} : vector<8x128xf32>, vector<128x384xf32>, vector<8x384xf32> -> vector<8x384xf32>
    %173 = arith.addf %172, %5 : vector<8x384xf32>
    %174 = vector.extract_strided_slice %171 {offsets = [0, 0], sizes = [8, 256], strides = [1, 1]} : vector<8x384xf32> to vector<8x256xf32>
    %175 = vector.extract_strided_slice %173 {offsets = [0, 0], sizes = [8, 256], strides = [1, 1]} : vector<8x384xf32> to vector<8x256xf32>
    %176 = arith.addf %174, %175 : vector<8x256xf32>
    %177 = arith.negf %176 : vector<8x256xf32>
    %178 = math.exp %177 : vector<8x256xf32>
    %cst_44 = arith.constant 1.000000e+00 : f32
    %179 = vector.broadcast %cst_44 : f32 to vector<8x256xf32>
    %180 = arith.addf %179, %178 : vector<8x256xf32>
    %181 = arith.divf %179, %180 : vector<8x256xf32>
    %182 = vector.extract_strided_slice %181 {offsets = [0, 0], sizes = [8, 128], strides = [1, 1]} : vector<8x256xf32> to vector<8x128xf32>
    %183 = vector.extract_strided_slice %181 {offsets = [0, 128], sizes = [8, 128], strides = [1, 1]} : vector<8x256xf32> to vector<8x128xf32>
    %184 = vector.extract_strided_slice %171 {offsets = [0, 256], sizes = [8, 128], strides = [1, 1]} : vector<8x384xf32> to vector<8x128xf32>
    %185 = vector.extract_strided_slice %173 {offsets = [0, 256], sizes = [8, 128], strides = [1, 1]} : vector<8x384xf32> to vector<8x128xf32>
    %186 = arith.mulf %182, %185 : vector<8x128xf32>
    %187 = arith.addf %184, %186 : vector<8x128xf32>
    %188 = math.tanh %187 : vector<8x128xf32>
    %189 = arith.subf %165, %188 : vector<8x128xf32>
    %190 = arith.mulf %183, %189 : vector<8x128xf32>
    %191 = arith.addf %188, %190 : vector<8x128xf32>
    %192 = arith.index_cast %169 : i32 to index
    %c0_45 = arith.constant 0 : index
    %193 = vector.load %arg13[%192, %c0_45] : memref<64x128xf32, #tpu.memory_space<vmem>>, vector<8x128xf32>
    tpu.vector_store %arg13[%192, %c0_45], %191 {strides = array<i32>} : memref<64x128xf32, #tpu.memory_space<vmem>>, vector<8x128xf32>,
    %c7_i32 = arith.constant 7 : i32
    %c8_i32_46 = arith.constant 8 : i32
    %194 = arith.muli %c7_i32, %c8_i32_46 : i32
    %195 = tpu.assume_multiple %194, 8 : i32
    %196 = arith.index_cast %195 : i32 to index
    %c0_47 = arith.constant 0 : index
    %197 = vector.load %arg12[%196, %c0_47] : memref<64x384xf32, #tpu.memory_space<vmem>>, vector<8x384xf32>
    %cst_48 = arith.constant dense<0.000000e+00> : vector<8x384xf32>
    %198 = tpu.matmul %191, %1, %cst_48 {dimension_numbers = #tpu.dot_dimension_numbers<[1], [0], [0], [1], [0, 0, 1, 1], [], []>} : vector<8x128xf32>, vector<128x384xf32>, vector<8x384xf32> -> vector<8x384xf32>
    %199 = arith.addf %198, %5 : vector<8x384xf32>
    %200 = vector.extract_strided_slice %197 {offsets = [0, 0], sizes = [8, 256], strides = [1, 1]} : vector<8x384xf32> to vector<8x256xf32>
    %201 = vector.extract_strided_slice %199 {offsets = [0, 0], sizes = [8, 256], strides = [1, 1]} : vector<8x384xf32> to vector<8x256xf32>
    %202 = arith.addf %200, %201 : vector<8x256xf32>
    %203 = arith.negf %202 : vector<8x256xf32>
    %204 = math.exp %203 : vector<8x256xf32>
    %cst_49 = arith.constant 1.000000e+00 : f32
    %205 = vector.broadcast %cst_49 : f32 to vector<8x256xf32>
    %206 = arith.addf %205, %204 : vector<8x256xf32>
    %207 = arith.divf %205, %206 : vector<8x256xf32>
    %208 = vector.extract_strided_slice %207 {offsets = [0, 0], sizes = [8, 128], strides = [1, 1]} : vector<8x256xf32> to vector<8x128xf32>
    %209 = vector.extract_strided_slice %207 {offsets = [0, 128], sizes = [8, 128], strides = [1, 1]} : vector<8x256xf32> to vector<8x128xf32>
    %210 = vector.extract_strided_slice %197 {offsets = [0, 256], sizes = [8, 128], strides = [1, 1]} : vector<8x384xf32> to vector<8x128xf32>
    %211 = vector.extract_strided_slice %199 {offsets = [0, 256], sizes = [8, 128], strides = [1, 1]} : vector<8x384xf32> to vector<8x128xf32>
    %212 = arith.mulf %208, %211 : vector<8x128xf32>
    %213 = arith.addf %210, %212 : vector<8x128xf32>
    %214 = math.tanh %213 : vector<8x128xf32>
    %215 = arith.subf %191, %214 : vector<8x128xf32>
    %216 = arith.mulf %209, %215 : vector<8x128xf32>
    %217 = arith.addf %214, %216 : vector<8x128xf32>
    %218 = arith.index_cast %195 : i32 to index
    %c0_50 = arith.constant 0 : index
    %219 = vector.load %arg13[%218, %c0_50] : memref<64x128xf32, #tpu.memory_space<vmem>>, vector<8x128xf32>
    tpu.vector_store %arg13[%218, %c0_50], %217 {strides = array<i32>} : memref<64x128xf32, #tpu.memory_space<vmem>>, vector<8x128xf32>,
    %c8_i32_51 = arith.constant 8 : i32
    %c0_52 = arith.constant 0 : index
    %c0_53 = arith.constant 0 : index
    %220 = vector.load %arg5[%c0_52, %c0_53] : memref<128x384xf32, #tpu.memory_space<vmem>>, vector<128x384xf32>
    %c0_54 = arith.constant 0 : index
    %c0_55 = arith.constant 0 : index
    %221 = vector.load %arg6[%c0_54, %c0_55] : memref<128x384xf32, #tpu.memory_space<vmem>>, vector<128x384xf32>
    %c0_56 = arith.constant 0 : index
    %c0_57 = arith.constant 0 : index
    %222 = vector.load %arg7[%c0_56, %c0_57] : memref<1x384xf32, #tpu.memory_space<vmem>>, vector<1x384xf32>
    %c0_58 = arith.constant 0 : index
    %c0_59 = arith.constant 0 : index
    %223 = vector.load %arg8[%c0_58, %c0_59] : memref<1x384xf32, #tpu.memory_space<vmem>>, vector<1x384xf32>
    %224 = vector.shape_cast %223 : vector<1x384xf32> to vector<1x384xf32>
    %225 = vector.broadcast %224 : vector<1x384xf32> to vector<8x384xf32>
    %c0_60 = arith.constant 0 : index
    %c0_61 = arith.constant 0 : index
    %226 = vector.load %arg13[%c0_60, %c0_61] : memref<64x128xf32, #tpu.memory_space<vmem>>, vector<64x128xf32>
    %cst_62 = arith.constant dense<0.000000e+00> : vector<64x384xf32>
    %227 = tpu.matmul %226, %220, %cst_62 {dimension_numbers = #tpu.dot_dimension_numbers<[1], [0], [0], [1], [0, 0, 1, 1], [], []>} : vector<64x128xf32>, vector<128x384xf32>, vector<64x384xf32> -> vector<64x384xf32>
    %228 = vector.broadcast %222 : vector<1x384xf32> to vector<64x384xf32>
    %229 = arith.addf %227, %228 : vector<64x384xf32>
    %c0_63 = arith.constant 0 : index
    %c0_64 = arith.constant 0 : index
    %230 = vector.load %arg12[%c0_63, %c0_64] : memref<64x384xf32, #tpu.memory_space<vmem>>, vector<64x384xf32>
    tpu.vector_store %arg12[%c0_63, %c0_64], %229 {strides = array<i32>} : memref<64x384xf32, #tpu.memory_space<vmem>>, vector<64x384xf32>,
    %cst_65 = arith.constant 0.000000e+00 : f32
    %231 = vector.broadcast %cst_65 : f32 to vector<8x128xf32>
    %c0_i32_66 = arith.constant 0 : i32
    %c8_i32_67 = arith.constant 8 : i32
    %232 = arith.muli %c0_i32_66, %c8_i32_67 : i32
    %233 = tpu.assume_multiple %232, 8 : i32
    %234 = arith.index_cast %233 : i32 to index
    %c0_68 = arith.constant 0 : index
    %235 = vector.load %arg12[%234, %c0_68] : memref<64x384xf32, #tpu.memory_space<vmem>>, vector<8x384xf32>
    %cst_69 = arith.constant dense<0.000000e+00> : vector<8x384xf32>
    %236 = tpu.matmul %231, %221, %cst_69 {dimension_numbers = #tpu.dot_dimension_numbers<[1], [0], [0], [1], [0, 0, 1, 1], [], []>} : vector<8x128xf32>, vector<128x384xf32>, vector<8x384xf32> -> vector<8x384xf32>
    %237 = arith.addf %236, %225 : vector<8x384xf32>
    %238 = vector.extract_strided_slice %235 {offsets = [0, 0], sizes = [8, 256], strides = [1, 1]} : vector<8x384xf32> to vector<8x256xf32>
    %239 = vector.extract_strided_slice %237 {offsets = [0, 0], sizes = [8, 256], strides = [1, 1]} : vector<8x384xf32> to vector<8x256xf32>
    %240 = arith.addf %238, %239 : vector<8x256xf32>
    %241 = arith.negf %240 : vector<8x256xf32>
    %242 = math.exp %241 : vector<8x256xf32>
    %cst_70 = arith.constant 1.000000e+00 : f32
    %243 = vector.broadcast %cst_70 : f32 to vector<8x256xf32>
    %244 = arith.addf %243, %242 : vector<8x256xf32>
    %245 = arith.divf %243, %244 : vector<8x256xf32>
    %246 = vector.extract_strided_slice %245 {offsets = [0, 0], sizes = [8, 128], strides = [1, 1]} : vector<8x256xf32> to vector<8x128xf32>
    %247 = vector.extract_strided_slice %245 {offsets = [0, 128], sizes = [8, 128], strides = [1, 1]} : vector<8x256xf32> to vector<8x128xf32>
    %248 = vector.extract_strided_slice %235 {offsets = [0, 256], sizes = [8, 128], strides = [1, 1]} : vector<8x384xf32> to vector<8x128xf32>
    %249 = vector.extract_strided_slice %237 {offsets = [0, 256], sizes = [8, 128], strides = [1, 1]} : vector<8x384xf32> to vector<8x128xf32>
    %250 = arith.mulf %246, %249 : vector<8x128xf32>
    %251 = arith.addf %248, %250 : vector<8x128xf32>
    %252 = math.tanh %251 : vector<8x128xf32>
    %253 = arith.subf %231, %252 : vector<8x128xf32>
    %254 = arith.mulf %247, %253 : vector<8x128xf32>
    %255 = arith.addf %252, %254 : vector<8x128xf32>
    %c1_i32_71 = arith.constant 1 : i32
    %c8_i32_72 = arith.constant 8 : i32
    %256 = arith.muli %c1_i32_71, %c8_i32_72 : i32
    %257 = tpu.assume_multiple %256, 8 : i32
    %258 = arith.index_cast %257 : i32 to index
    %c0_73 = arith.constant 0 : index
    %259 = vector.load %arg12[%258, %c0_73] : memref<64x384xf32, #tpu.memory_space<vmem>>, vector<8x384xf32>
    %cst_74 = arith.constant dense<0.000000e+00> : vector<8x384xf32>
    %260 = tpu.matmul %255, %221, %cst_74 {dimension_numbers = #tpu.dot_dimension_numbers<[1], [0], [0], [1], [0, 0, 1, 1], [], []>} : vector<8x128xf32>, vector<128x384xf32>, vector<8x384xf32> -> vector<8x384xf32>
    %261 = arith.addf %260, %225 : vector<8x384xf32>
    %262 = vector.extract_strided_slice %259 {offsets = [0, 0], sizes = [8, 256], strides = [1, 1]} : vector<8x384xf32> to vector<8x256xf32>
    %263 = vector.extract_strided_slice %261 {offsets = [0, 0], sizes = [8, 256], strides = [1, 1]} : vector<8x384xf32> to vector<8x256xf32>
    %264 = arith.addf %262, %263 : vector<8x256xf32>
    %265 = arith.negf %264 : vector<8x256xf32>
    %266 = math.exp %265 : vector<8x256xf32>
    %cst_75 = arith.constant 1.000000e+00 : f32
    %267 = vector.broadcast %cst_75 : f32 to vector<8x256xf32>
    %268 = arith.addf %267, %266 : vector<8x256xf32>
    %269 = arith.divf %267, %268 : vector<8x256xf32>
    %270 = vector.extract_strided_slice %269 {offsets = [0, 0], sizes = [8, 128], strides = [1, 1]} : vector<8x256xf32> to vector<8x128xf32>
    %271 = vector.extract_strided_slice %269 {offsets = [0, 128], sizes = [8, 128], strides = [1, 1]} : vector<8x256xf32> to vector<8x128xf32>
    %272 = vector.extract_strided_slice %259 {offsets = [0, 256], sizes = [8, 128], strides = [1, 1]} : vector<8x384xf32> to vector<8x128xf32>
    %273 = vector.extract_strided_slice %261 {offsets = [0, 256], sizes = [8, 128], strides = [1, 1]} : vector<8x384xf32> to vector<8x128xf32>
    %274 = arith.mulf %270, %273 : vector<8x128xf32>
    %275 = arith.addf %272, %274 : vector<8x128xf32>
    %276 = math.tanh %275 : vector<8x128xf32>
    %277 = arith.subf %255, %276 : vector<8x128xf32>
    %278 = arith.mulf %271, %277 : vector<8x128xf32>
    %279 = arith.addf %276, %278 : vector<8x128xf32>
    %c2_i32_76 = arith.constant 2 : i32
    %c8_i32_77 = arith.constant 8 : i32
    %280 = arith.muli %c2_i32_76, %c8_i32_77 : i32
    %281 = tpu.assume_multiple %280, 8 : i32
    %282 = arith.index_cast %281 : i32 to index
    %c0_78 = arith.constant 0 : index
    %283 = vector.load %arg12[%282, %c0_78] : memref<64x384xf32, #tpu.memory_space<vmem>>, vector<8x384xf32>
    %cst_79 = arith.constant dense<0.000000e+00> : vector<8x384xf32>
    %284 = tpu.matmul %279, %221, %cst_79 {dimension_numbers = #tpu.dot_dimension_numbers<[1], [0], [0], [1], [0, 0, 1, 1], [], []>} : vector<8x128xf32>, vector<128x384xf32>, vector<8x384xf32> -> vector<8x384xf32>
    %285 = arith.addf %284, %225 : vector<8x384xf32>
    %286 = vector.extract_strided_slice %283 {offsets = [0, 0], sizes = [8, 256], strides = [1, 1]} : vector<8x384xf32> to vector<8x256xf32>
    %287 = vector.extract_strided_slice %285 {offsets = [0, 0], sizes = [8, 256], strides = [1, 1]} : vector<8x384xf32> to vector<8x256xf32>
    %288 = arith.addf %286, %287 : vector<8x256xf32>
    %289 = arith.negf %288 : vector<8x256xf32>
    %290 = math.exp %289 : vector<8x256xf32>
    %cst_80 = arith.constant 1.000000e+00 : f32
    %291 = vector.broadcast %cst_80 : f32 to vector<8x256xf32>
    %292 = arith.addf %291, %290 : vector<8x256xf32>
    %293 = arith.divf %291, %292 : vector<8x256xf32>
    %294 = vector.extract_strided_slice %293 {offsets = [0, 0], sizes = [8, 128], strides = [1, 1]} : vector<8x256xf32> to vector<8x128xf32>
    %295 = vector.extract_strided_slice %293 {offsets = [0, 128], sizes = [8, 128], strides = [1, 1]} : vector<8x256xf32> to vector<8x128xf32>
    %296 = vector.extract_strided_slice %283 {offsets = [0, 256], sizes = [8, 128], strides = [1, 1]} : vector<8x384xf32> to vector<8x128xf32>
    %297 = vector.extract_strided_slice %285 {offsets = [0, 256], sizes = [8, 128], strides = [1, 1]} : vector<8x384xf32> to vector<8x128xf32>
    %298 = arith.mulf %294, %297 : vector<8x128xf32>
    %299 = arith.addf %296, %298 : vector<8x128xf32>
    %300 = math.tanh %299 : vector<8x128xf32>
    %301 = arith.subf %279, %300 : vector<8x128xf32>
    %302 = arith.mulf %295, %301 : vector<8x128xf32>
    %303 = arith.addf %300, %302 : vector<8x128xf32>
    %c3_i32_81 = arith.constant 3 : i32
    %c8_i32_82 = arith.constant 8 : i32
    %304 = arith.muli %c3_i32_81, %c8_i32_82 : i32
    %305 = tpu.assume_multiple %304, 8 : i32
    %306 = arith.index_cast %305 : i32 to index
    %c0_83 = arith.constant 0 : index
    %307 = vector.load %arg12[%306, %c0_83] : memref<64x384xf32, #tpu.memory_space<vmem>>, vector<8x384xf32>
    %cst_84 = arith.constant dense<0.000000e+00> : vector<8x384xf32>
    %308 = tpu.matmul %303, %221, %cst_84 {dimension_numbers = #tpu.dot_dimension_numbers<[1], [0], [0], [1], [0, 0, 1, 1], [], []>} : vector<8x128xf32>, vector<128x384xf32>, vector<8x384xf32> -> vector<8x384xf32>
    %309 = arith.addf %308, %225 : vector<8x384xf32>
    %310 = vector.extract_strided_slice %307 {offsets = [0, 0], sizes = [8, 256], strides = [1, 1]} : vector<8x384xf32> to vector<8x256xf32>
    %311 = vector.extract_strided_slice %309 {offsets = [0, 0], sizes = [8, 256], strides = [1, 1]} : vector<8x384xf32> to vector<8x256xf32>
    %312 = arith.addf %310, %311 : vector<8x256xf32>
    %313 = arith.negf %312 : vector<8x256xf32>
    %314 = math.exp %313 : vector<8x256xf32>
    %cst_85 = arith.constant 1.000000e+00 : f32
    %315 = vector.broadcast %cst_85 : f32 to vector<8x256xf32>
    %316 = arith.addf %315, %314 : vector<8x256xf32>
    %317 = arith.divf %315, %316 : vector<8x256xf32>
    %318 = vector.extract_strided_slice %317 {offsets = [0, 0], sizes = [8, 128], strides = [1, 1]} : vector<8x256xf32> to vector<8x128xf32>
    %319 = vector.extract_strided_slice %317 {offsets = [0, 128], sizes = [8, 128], strides = [1, 1]} : vector<8x256xf32> to vector<8x128xf32>
    %320 = vector.extract_strided_slice %307 {offsets = [0, 256], sizes = [8, 128], strides = [1, 1]} : vector<8x384xf32> to vector<8x128xf32>
    %321 = vector.extract_strided_slice %309 {offsets = [0, 256], sizes = [8, 128], strides = [1, 1]} : vector<8x384xf32> to vector<8x128xf32>
    %322 = arith.mulf %318, %321 : vector<8x128xf32>
    %323 = arith.addf %320, %322 : vector<8x128xf32>
    %324 = math.tanh %323 : vector<8x128xf32>
    %325 = arith.subf %303, %324 : vector<8x128xf32>
    %326 = arith.mulf %319, %325 : vector<8x128xf32>
    %327 = arith.addf %324, %326 : vector<8x128xf32>
    %c4_i32_86 = arith.constant 4 : i32
    %c8_i32_87 = arith.constant 8 : i32
    %328 = arith.muli %c4_i32_86, %c8_i32_87 : i32
    %329 = tpu.assume_multiple %328, 8 : i32
    %330 = arith.index_cast %329 : i32 to index
    %c0_88 = arith.constant 0 : index
    %331 = vector.load %arg12[%330, %c0_88] : memref<64x384xf32, #tpu.memory_space<vmem>>, vector<8x384xf32>
    %cst_89 = arith.constant dense<0.000000e+00> : vector<8x384xf32>
    %332 = tpu.matmul %327, %221, %cst_89 {dimension_numbers = #tpu.dot_dimension_numbers<[1], [0], [0], [1], [0, 0, 1, 1], [], []>} : vector<8x128xf32>, vector<128x384xf32>, vector<8x384xf32> -> vector<8x384xf32>
    %333 = arith.addf %332, %225 : vector<8x384xf32>
    %334 = vector.extract_strided_slice %331 {offsets = [0, 0], sizes = [8, 256], strides = [1, 1]} : vector<8x384xf32> to vector<8x256xf32>
    %335 = vector.extract_strided_slice %333 {offsets = [0, 0], sizes = [8, 256], strides = [1, 1]} : vector<8x384xf32> to vector<8x256xf32>
    %336 = arith.addf %334, %335 : vector<8x256xf32>
    %337 = arith.negf %336 : vector<8x256xf32>
    %338 = math.exp %337 : vector<8x256xf32>
    %cst_90 = arith.constant 1.000000e+00 : f32
    %339 = vector.broadcast %cst_90 : f32 to vector<8x256xf32>
    %340 = arith.addf %339, %338 : vector<8x256xf32>
    %341 = arith.divf %339, %340 : vector<8x256xf32>
    %342 = vector.extract_strided_slice %341 {offsets = [0, 0], sizes = [8, 128], strides = [1, 1]} : vector<8x256xf32> to vector<8x128xf32>
    %343 = vector.extract_strided_slice %341 {offsets = [0, 128], sizes = [8, 128], strides = [1, 1]} : vector<8x256xf32> to vector<8x128xf32>
    %344 = vector.extract_strided_slice %331 {offsets = [0, 256], sizes = [8, 128], strides = [1, 1]} : vector<8x384xf32> to vector<8x128xf32>
    %345 = vector.extract_strided_slice %333 {offsets = [0, 256], sizes = [8, 128], strides = [1, 1]} : vector<8x384xf32> to vector<8x128xf32>
    %346 = arith.mulf %342, %345 : vector<8x128xf32>
    %347 = arith.addf %344, %346 : vector<8x128xf32>
    %348 = math.tanh %347 : vector<8x128xf32>
    %349 = arith.subf %327, %348 : vector<8x128xf32>
    %350 = arith.mulf %343, %349 : vector<8x128xf32>
    %351 = arith.addf %348, %350 : vector<8x128xf32>
    %c5_i32_91 = arith.constant 5 : i32
    %c8_i32_92 = arith.constant 8 : i32
    %352 = arith.muli %c5_i32_91, %c8_i32_92 : i32
    %353 = tpu.assume_multiple %352, 8 : i32
    %354 = arith.index_cast %353 : i32 to index
    %c0_93 = arith.constant 0 : index
    %355 = vector.load %arg12[%354, %c0_93] : memref<64x384xf32, #tpu.memory_space<vmem>>, vector<8x384xf32>
    %cst_94 = arith.constant dense<0.000000e+00> : vector<8x384xf32>
    %356 = tpu.matmul %351, %221, %cst_94 {dimension_numbers = #tpu.dot_dimension_numbers<[1], [0], [0], [1], [0, 0, 1, 1], [], []>} : vector<8x128xf32>, vector<128x384xf32>, vector<8x384xf32> -> vector<8x384xf32>
    %357 = arith.addf %356, %225 : vector<8x384xf32>
    %358 = vector.extract_strided_slice %355 {offsets = [0, 0], sizes = [8, 256], strides = [1, 1]} : vector<8x384xf32> to vector<8x256xf32>
    %359 = vector.extract_strided_slice %357 {offsets = [0, 0], sizes = [8, 256], strides = [1, 1]} : vector<8x384xf32> to vector<8x256xf32>
    %360 = arith.addf %358, %359 : vector<8x256xf32>
    %361 = arith.negf %360 : vector<8x256xf32>
    %362 = math.exp %361 : vector<8x256xf32>
    %cst_95 = arith.constant 1.000000e+00 : f32
    %363 = vector.broadcast %cst_95 : f32 to vector<8x256xf32>
    %364 = arith.addf %363, %362 : vector<8x256xf32>
    %365 = arith.divf %363, %364 : vector<8x256xf32>
    %366 = vector.extract_strided_slice %365 {offsets = [0, 0], sizes = [8, 128], strides = [1, 1]} : vector<8x256xf32> to vector<8x128xf32>
    %367 = vector.extract_strided_slice %365 {offsets = [0, 128], sizes = [8, 128], strides = [1, 1]} : vector<8x256xf32> to vector<8x128xf32>
    %368 = vector.extract_strided_slice %355 {offsets = [0, 256], sizes = [8, 128], strides = [1, 1]} : vector<8x384xf32> to vector<8x128xf32>
    %369 = vector.extract_strided_slice %357 {offsets = [0, 256], sizes = [8, 128], strides = [1, 1]} : vector<8x384xf32> to vector<8x128xf32>
    %370 = arith.mulf %366, %369 : vector<8x128xf32>
    %371 = arith.addf %368, %370 : vector<8x128xf32>
    %372 = math.tanh %371 : vector<8x128xf32>
    %373 = arith.subf %351, %372 : vector<8x128xf32>
    %374 = arith.mulf %367, %373 : vector<8x128xf32>
    %375 = arith.addf %372, %374 : vector<8x128xf32>
    %c6_i32_96 = arith.constant 6 : i32
    %c8_i32_97 = arith.constant 8 : i32
    %376 = arith.muli %c6_i32_96, %c8_i32_97 : i32
    %377 = tpu.assume_multiple %376, 8 : i32
    %378 = arith.index_cast %377 : i32 to index
    %c0_98 = arith.constant 0 : index
    %379 = vector.load %arg12[%378, %c0_98] : memref<64x384xf32, #tpu.memory_space<vmem>>, vector<8x384xf32>
    %cst_99 = arith.constant dense<0.000000e+00> : vector<8x384xf32>
    %380 = tpu.matmul %375, %221, %cst_99 {dimension_numbers = #tpu.dot_dimension_numbers<[1], [0], [0], [1], [0, 0, 1, 1], [], []>} : vector<8x128xf32>, vector<128x384xf32>, vector<8x384xf32> -> vector<8x384xf32>
    %381 = arith.addf %380, %225 : vector<8x384xf32>
    %382 = vector.extract_strided_slice %379 {offsets = [0, 0], sizes = [8, 256], strides = [1, 1]} : vector<8x384xf32> to vector<8x256xf32>
    %383 = vector.extract_strided_slice %381 {offsets = [0, 0], sizes = [8, 256], strides = [1, 1]} : vector<8x384xf32> to vector<8x256xf32>
    %384 = arith.addf %382, %383 : vector<8x256xf32>
    %385 = arith.negf %384 : vector<8x256xf32>
    %386 = math.exp %385 : vector<8x256xf32>
    %cst_100 = arith.constant 1.000000e+00 : f32
    %387 = vector.broadcast %cst_100 : f32 to vector<8x256xf32>
    %388 = arith.addf %387, %386 : vector<8x256xf32>
    %389 = arith.divf %387, %388 : vector<8x256xf32>
    %390 = vector.extract_strided_slice %389 {offsets = [0, 0], sizes = [8, 128], strides = [1, 1]} : vector<8x256xf32> to vector<8x128xf32>
    %391 = vector.extract_strided_slice %389 {offsets = [0, 128], sizes = [8, 128], strides = [1, 1]} : vector<8x256xf32> to vector<8x128xf32>
    %392 = vector.extract_strided_slice %379 {offsets = [0, 256], sizes = [8, 128], strides = [1, 1]} : vector<8x384xf32> to vector<8x128xf32>
    %393 = vector.extract_strided_slice %381 {offsets = [0, 256], sizes = [8, 128], strides = [1, 1]} : vector<8x384xf32> to vector<8x128xf32>
    %394 = arith.mulf %390, %393 : vector<8x128xf32>
    %395 = arith.addf %392, %394 : vector<8x128xf32>
    %396 = math.tanh %395 : vector<8x128xf32>
    %397 = arith.subf %375, %396 : vector<8x128xf32>
    %398 = arith.mulf %391, %397 : vector<8x128xf32>
    %399 = arith.addf %396, %398 : vector<8x128xf32>
    %c7_i32_101 = arith.constant 7 : i32
    %c8_i32_102 = arith.constant 8 : i32
    %400 = arith.muli %c7_i32_101, %c8_i32_102 : i32
    %401 = tpu.assume_multiple %400, 8 : i32
    %402 = arith.index_cast %401 : i32 to index
    %c0_103 = arith.constant 0 : index
    %403 = vector.load %arg12[%402, %c0_103] : memref<64x384xf32, #tpu.memory_space<vmem>>, vector<8x384xf32>
    %cst_104 = arith.constant dense<0.000000e+00> : vector<8x384xf32>
    %404 = tpu.matmul %399, %221, %cst_104 {dimension_numbers = #tpu.dot_dimension_numbers<[1], [0], [0], [1], [0, 0, 1, 1], [], []>} : vector<8x128xf32>, vector<128x384xf32>, vector<8x384xf32> -> vector<8x384xf32>
    %405 = arith.addf %404, %225 : vector<8x384xf32>
    %406 = vector.extract_strided_slice %403 {offsets = [0, 0], sizes = [8, 256], strides = [1, 1]} : vector<8x384xf32> to vector<8x256xf32>
    %407 = vector.extract_strided_slice %405 {offsets = [0, 0], sizes = [8, 256], strides = [1, 1]} : vector<8x384xf32> to vector<8x256xf32>
    %408 = arith.addf %406, %407 : vector<8x256xf32>
    %409 = arith.negf %408 : vector<8x256xf32>
    %410 = math.exp %409 : vector<8x256xf32>
    %cst_105 = arith.constant 1.000000e+00 : f32
    %411 = vector.broadcast %cst_105 : f32 to vector<8x256xf32>
    %412 = arith.addf %411, %410 : vector<8x256xf32>
    %413 = arith.divf %411, %412 : vector<8x256xf32>
    %414 = vector.extract_strided_slice %413 {offsets = [0, 0], sizes = [8, 128], strides = [1, 1]} : vector<8x256xf32> to vector<8x128xf32>
    %415 = vector.extract_strided_slice %413 {offsets = [0, 128], sizes = [8, 128], strides = [1, 1]} : vector<8x256xf32> to vector<8x128xf32>
    %416 = vector.extract_strided_slice %403 {offsets = [0, 256], sizes = [8, 128], strides = [1, 1]} : vector<8x384xf32> to vector<8x128xf32>
    %417 = vector.extract_strided_slice %405 {offsets = [0, 256], sizes = [8, 128], strides = [1, 1]} : vector<8x384xf32> to vector<8x128xf32>
    %418 = arith.mulf %414, %417 : vector<8x128xf32>
    %419 = arith.addf %416, %418 : vector<8x128xf32>
    %420 = math.tanh %419 : vector<8x128xf32>
    %421 = arith.subf %399, %420 : vector<8x128xf32>
    %422 = arith.mulf %415, %421 : vector<8x128xf32>
    %423 = arith.addf %420, %422 : vector<8x128xf32>
    %c8_i32_106 = arith.constant 8 : i32
    %c0_107 = arith.constant 0 : index
    %c0_108 = arith.constant 0 : index
    %424 = vector.load %arg9[%c0_107, %c0_108] : memref<128x128xf32, #tpu.memory_space<vmem>>, vector<128x128xf32>
    %cst_109 = arith.constant dense<0.000000e+00> : vector<8x128xf32>
    %425 = tpu.matmul %423, %424, %cst_109 {dimension_numbers = #tpu.dot_dimension_numbers<[1], [0], [0], [1], [0, 0, 1, 1], [], []>} : vector<8x128xf32>, vector<128x128xf32>, vector<8x128xf32> -> vector<8x128xf32>
    %c0_110 = arith.constant 0 : index
    %c0_111 = arith.constant 0 : index
    %426 = vector.load %arg10[%c0_110, %c0_111] : memref<1x128xf32, #tpu.memory_space<vmem>>, vector<1x128xf32>
    %427 = vector.broadcast %426 : vector<1x128xf32> to vector<8x128xf32>
    %428 = arith.addf %425, %427 : vector<8x128xf32>
    %c0_112 = arith.constant 0 : index
    %c0_113 = arith.constant 0 : index
    %429 = vector.load %arg11[%c0_112, %c0_113] : memref<8x128xf32, #tpu.memory_space<vmem>>, vector<8x128xf32>
    tpu.vector_store %arg11[%c0_112, %c0_113], %428 {strides = array<i32>} : memref<8x128xf32, #tpu.memory_space<vmem>>, vector<8x128xf32>,
    return
  }
}

</mosaic_0001>

<bundles_post_ra>
// kernel: tpu_custom_call.1
= control target key start
LH: loop header
LB: loop body
LE: loop exit
PB: predicated region body
PF: predicated region fallthrough
CT: control target
= control target key end

     0   :  { %16 = vsyncpa [#allocation5], 0  ;;  %s7007_s0 = inlined_call_operand.vmem [shape: f32[64,16], index: 0, kind: input, shape index: {}]   ;;  %s7008_s1 = inlined_call_operand.vmem [shape: f32[16,384], index: 1, kind: input, shape index: {}]   ;;  %s7009_s2 = inlined_call_operand.hbm [shape: f32[128,384], index: 2, kind: input, shape index: {}]   ;;  %s7010_s3 = inlined_call_operand.vmem [shape: f32[1,384], index: 3, kind: input, shape index: {}]   ;;  %s7011_s4 = inlined_call_operand.vmem [shape: f32[1,384], index: 4, kind: input, shape index: {}]   ;;  %s7012_s5 = inlined_call_operand.hbm [shape: f32[128,384], index: 5, kind: input, shape index: {}]   ;;  %s7013_s6 = inlined_call_operand.hbm [shape: f32[128,384], index: 6, kind: input, shape index: {}]   ;;  %s7014_s7 = inlined_call_operand.vmem [shape: f32[1,384], index: 7, kind: input, shape index: {}]   ;;  %s7015_s8 = inlined_call_operand.vmem [shape: f32[1,384], index: 8, kind: input, shape index: {}]   ;;  %s7016_s9 = inlined_call_operand.hbm [shape: f32[128,128], index: 9, kind: input, shape index: {}]   ;;  %s7017_s10 = inlined_call_operand.vmem [shape: f32[1,128], index: 10, kind: input, shape index: {}]   ;;  %s7018_s11 = inlined_call_operand.hbm [shape: f32[8,128], index: 11, kind: output, shape index: {}]  }
   0x1   :  { %17 = vsyncpa [#allocation8], 0 }
   0x2   :  { %18 = vsyncpa [#allocation11], 0 }
   0x3   :  { %19 = vsyncpa [#allocation6], 0  ;;  %s5020_s17 = smov [#allocation7]   ;;  %s5021_s19 = smov [#allocation4]  }
   0x4   :  { %s45_s18 = sshll.u32 %s5020_s17, 4  ;;  %s29_s20 = sshll.u32 %s5021_s19, 4  ;;  %s46_s18 = int_to_ptr.vmem [resolvable:$true] %s45_s18  ;;  %s30_s20 = int_to_ptr.vmem [resolvable:$true] %s29_s20 }
   0x5   :  { %s4920_s21 = scalar_lea.vmem %s46_s18, 6144  ;;  %p4925_p1 = scmp.lt.s32.totalorder %s46_s18, %s46_s18 }
   0x6   :  { %p4921_p0 = scmp.ne.s32.totalorder %s46_s18, %s4920_s21  ;;  %p4926_p2 = scmp.lt.s32.totalorder %s4920_s21, %s4920_s21 }
   0x8   :  { %p4927_p3 = por %p4926_p2, %p4925_p1 }
   0xa   :  { %p4928_p4 = pnand %p4927_p3, %p4921_p0 }
   0xc   :  { %4931 = shalt.err (!%p4928_p4)
}
   0xd   :  { %s5022_s22 = smov 384   ;;  %s5023_s23 = smov 24  }
   0xe   :  { %51 = dma.hbm_to_vmem [thread:$0]  %s7012_s5, 6144, %s46_s18, [#allocation8], %s5022_s22, %s5022_s22, %s5023_s23  }
   0xf   :  { %s4940_s26 = scalar_lea.vmem %s30_s20, 6144  ;;  %p4945_p6 = scmp.lt.s32.totalorder %s30_s20, %s30_s20 }
  0x10   :  { %p4941_p5 = scmp.ne.s32.totalorder %s30_s20, %s4940_s26  ;;  %p4946_p7 = scmp.lt.s32.totalorder %s4940_s26, %s4940_s26 }
  0x12   :  { %p4947_p8 = por %p4946_p7, %p4945_p6 }
  0x14   :  { %p4948_p9 = pnand %p4947_p8, %p4941_p5 }
  0x16   :  { %4951 = shalt.err (!%p4948_p9)
}
  0x17   :  { %35 = dma.hbm_to_vmem [thread:$0]  %s7009_s2, 6144, %s30_s20, [#allocation5], %s5022_s22, %s5022_s22, %s5023_s23  }
  0x18   :  { %s5024_s29 = smov [#allocation9]   ;;  %s5025_s12 = smov [#allocation10]  }
  0x19   :  { %s57_s30 = sshll.u32 %s5024_s29, 4  ;;  %s73_s13 = sshll.u32 %s5025_s12, 4  ;;  %s58_s30 = int_to_ptr.vmem [resolvable:$true] %s57_s30  ;;  %s74_s13 = int_to_ptr.vmem [resolvable:$true] %s73_s13 }
  0x1a   :  { %s4960_s14 = scalar_lea.vmem %s58_s30, 6144  ;;  %p4965_p11 = scmp.lt.s32.totalorder %s58_s30, %s58_s30 }
  0x1b   :  { %p4961_p10 = scmp.ne.s32.totalorder %s58_s30, %s4960_s14  ;;  %p4966_p12 = scmp.lt.s32.totalorder %s4960_s14, %s4960_s14 }
  0x1d   :  { %p4967_p13 = por %p4966_p12, %p4965_p11 }
  0x1f   :  { %p4968_p0 = pnand %p4967_p13, %p4961_p10 }
  0x21   :  { %4971 = shalt.err (!%p4968_p0)
}
  0x22   :  { %63 = dma.hbm_to_vmem [thread:$0]  %s7013_s6, 6144, %s58_s30, [#allocation8], %s5022_s22, %s5022_s22, %s5023_s23  }
  0x23   :  { %s4980_s16 = scalar_lea.vmem %s74_s13, 2048  ;;  %p4985_p2 = scmp.lt.s32.totalorder %s74_s13, %s74_s13 }
  0x24   :  { %p4981_p1 = scmp.ne.s32.totalorder %s74_s13, %s4980_s16  ;;  %p4986_p3 = scmp.lt.s32.totalorder %s4980_s16, %s4980_s16 }
  0x26   :  { %p4987_p4 = por %p4986_p3, %p4985_p2 }
  0x28   :  { %p4988_p5 = pnand %p4987_p4, %p4981_p1 }
  0x2a   :  { %4991 = shalt.err (!%p4988_p5)
}
  0x2b   :  { %s5026_s2 = smov 128   ;;  %s5027_s17 = smov 8  }
  0x2c   :  { %79 = dma.hbm_to_vmem [thread:$0]  %s7016_s9, 2048, %s74_s13, [#allocation11], %s5026_s2, %s5026_s2, %s5027_s17  }
  0x2d   :  { %5012 = dma.done.wait [#allocation5], 6144  }
  0x2e   :  { %5013 = vsyncadd [#allocation5], 4294961152 }
  0x2f   :  { %5014 = dma.done.wait [#allocation8], 12288  }
  0x30   :  { %5015 = vsyncadd [#allocation8], 4294955008 }
  0x31   :  { %5016 = dma.done.wait [#allocation11], 2048  }
  0x32   :  { %5017 = vsyncadd [#allocation11], 4294965248  ;;  %v7019_v0 = vmov 0.0   ;;  %v98_v1 = vld [vmem:[%s7008_s1 + $0x20] sm:$0xff]  ;;  %v97_v2 = vld [vmem:[%s7008_s1 + $0x18] sm:$0xff]  ;;  %vm190_vm0 = vcmask 130048   ;;  %v151_v63 = vlaneseq }
  0x33   :  { %279 = vmatprep.mubr.f32.mxu0 %v7019_v0  ;;  %v95_v3 = vld [vmem:[%s7008_s1 + $0x8] sm:$0xff]  ;;  %243 = vmatprep.subr.mxu0 %v98_v1  ;;  %v94_v4 = vld [vmem:[%s7008_s1] sm:$0xff]  ;;  %v5119_v6 = vld [vmem:[#allocation4 + $0x170] sm:$0xff]  ;;  %vm5029_vm1 = vmmov 0   ;;  %s5030_s27 = smov [#allocation12]  }
  0x34   :  { %v166_v5 = vld [vmem:[%s7007_s0] sm:$0xff]  ;;  %244 = vmatpush1.msra.mxu0 %v97_v2  ;;  %7094 = vst [vmem:[#allocation17_spill] sm:$0xff] %v5119_v6  ;;  %v5122_v7 = vld [vmem:[#allocation4 + $0x168] sm:$0xff]  ;;  %v5124_v8 = vld [vmem:[#allocation4 + $0x158] sm:$0xff]  ;;  %v152_v1 = vshrl.u32 %v151_v63, 7  ;;  %s3600_s28 = sshll.u32 %s5030_s27, 4  ;;  %s3601_s28 = int_to_ptr.vmem [resolvable:$true] %s3600_s28 }
  0x35   :  { %3994 = vmatprep.mubr.msk.f32.mxu1 %vm190_vm0, %v166_v5  ;;  %245 = vmatprep.subr.mxu0 %v95_v3  ;;  %v5128_v9 = vld [vmem:[#allocation4 + $0x150] sm:$0xff]  ;;  %v167_v10 = vld [vmem:[%s7007_s0 + $0x8] sm:$0xff]  ;;  %v5135_v11 = vld [vmem:[#allocation4 + $0x140] sm:$0xff]  ;;  %s4992_s29 = scalar_lea.vmem %s3601_s28, 128  ;;  %p4997_p7 = scmp.lt.s32.totalorder %s3601_s28, %s3601_s28 }
  0x36   :  { %246 = vmatpush1.msra.mxu0 %v94_v4  ;;  %v5138_v12 = vld [vmem:[#allocation4 + $0x138] sm:$0xff]  ;;  %v5141_v13 = vld [vmem:[#allocation4 + $0x128] sm:$0xff]  ;;  %v5145_v14 = vld [vmem:[#allocation4 + $0x120] sm:$0xff]  ;;  %v5419_v2 = vsub.s32 0, %v152_v1  ;;  %p4993_p6 = scmp.ne.s32.totalorder %s3601_s28, %s4992_s29  ;;  %p4998_p8 = scmp.lt.s32.totalorder %s4992_s29, %s4992_s29 }
  0x37   :  { %3618 = vmatmul.mubr.msk.f32.vlgmr.msra.gmra.mxu0 %vm190_vm0, %v166_v5  ;;  %463 = vmatprep.subr.mxu0 %v5119_v6  ;;  %v5152_v15 = vld [vmem:[%s7007_s0 + $0x10] sm:$0xff]  ;;  %v5157_v17 = vld [vmem:[#allocation4 + $0x108] sm:$0xff]  ;;  %v5160_v18 = vld [vmem:[#allocation4 + $0xf8] sm:$0xff]  ;;  %v5424_v5 = vsub.s32 1, %v152_v1 }
  0x38   :  { %464 = vmatpush1.msra.mxu0 %v5122_v7  ;;  %285 = vmatprep.mubr.f32.mxu0 %v7019_v0  ;;  %v5154_v16 = vld [vmem:[#allocation4 + $0x110] sm:$0xff]  ;;  %v99_v20 = vld [vmem:[%s7008_s1 + $0x28] sm:$0xff]  ;;  %v5175_v21 = vld [vmem:[%s7007_s0 + $0x18] sm:$0xff]  ;;  %7101 = vst [vmem:[#allocation24_spill] sm:$0xff] %v5419_v2  ;;  %p4999_p9 = por %p4998_p8, %p4997_p7 }
  0x39   :  { %465 = vmatprep.subr.mxu0 %v5124_v8  ;;  %v5165_v19 = vld [vmem:[#allocation4 + $0xf0] sm:$0xff]  ;;  %v5177_v22 = vld [vmem:[#allocation4 + $0xe0] sm:$0xff]  ;;  %v5180_v23 = vld [vmem:[#allocation4 + $0xd8] sm:$0xff]  ;;  %3990 = vmatprep.subr.mxu1 %v99_v20  ;;  %7102 = vst [vmem:[#allocation25_spill] sm:$0xff] %v5424_v5 }
  0x3a   :  { %466 = vmatpush1.msra.mxu0 %v5128_v9  ;;  %v5183_v24 = vld [vmem:[#allocation4 + $0xc8] sm:$0xff]  ;;  %3991 = vmatpush3.msra.mxu1 %v99_v20  ;;  %v96_v25 = vld [vmem:[%s7008_s1 + $0x10] sm:$0xff]  ;;  %v5191_v26 = vld [vmem:[#allocation4 + $0xc0] sm:$0xff]  ;;  %p5000_p10 = pnand %p4999_p9, %p4993_p6 }
  0x3b   :  { %3619 = vmatmul.mubr.msk.f32.gmra.mxu0 %vm190_vm0, %v167_v10  ;;  %467 = vmatprep.subr.mxu0 %v5135_v11  ;;  %v5198_v27 = vld [vmem:[%s7007_s0 + $0x20] sm:$0xff]  ;;  %v5200_v28 = vld [vmem:[#allocation4 + $0xb0] sm:$0xff]  ;;  %v5203_v29 = vld [vmem:[#allocation4 + $0xa8] sm:$0xff] }
  0x3c   :  { %468 = vmatpush1.msra.mxu0 %v5138_v12  ;;  %291 = vmatprep.mubr.f32.mxu0 %v7019_v0  ;;  %v5206_v30 = vld [vmem:[#allocation4 + $0x98] sm:$0xff]  ;;  %v5211_v31 = vld [vmem:[#allocation4 + $0x90] sm:$0xff]  ;;  %v5218_v32 = vld [vmem:[%s7007_s0 + $0x28] sm:$0xff] }
  0x3d   :  { %469 = vmatprep.subr.mxu0 %v5141_v13  ;;  %3992 = vmatprep.subr.mxu1 %v96_v25  ;;  %v5220_v33 = vld [vmem:[#allocation4 + $0x80] sm:$0xff]  ;;  %v5223_v34 = vld [vmem:[#allocation4 + $0x78] sm:$0xff]  ;;  %v5227_v35 = vld [vmem:[#allocation4 + $0x68] sm:$0xff] }
  0x3e   :  { %470 = vmatpush1.msra.mxu0 %v5145_v14  ;;  %3993 = vmatpush3.msra.mxu1 %v96_v25  ;;  %v5230_v36 = vld [vmem:[#allocation4 + $0x178] sm:$0xff]  ;;  %v5235_v37 = vld [vmem:[#allocation4 + $0x60] sm:$0xff]  ;;  %v172_v38 = vld [vmem:[%s7007_s0 + $0x30] sm:$0xff] }
  0x3f   :  { %3620 = vmatmul.mubr.msk.f32.gmra.mxu0 %vm190_vm0, %v5152_v15  ;;  %471 = vmatprep.subr.mxu0 %v5154_v16  ;;  %v5242_v39 = vld [vmem:[#allocation4 + $0x50] sm:$0xff]  ;;  %v5245_v40 = vld [vmem:[#allocation4 + $0x48] sm:$0xff]  ;;  %v5249_v41 = vld [vmem:[#allocation4 + $0x38] sm:$0xff] }
  0x40   :  { %472 = vmatpush1.msra.mxu0 %v5157_v17  ;;  %297 = vmatprep.mubr.f32.mxu0 %v7019_v0  ;;  %v5252_v42 = vld [vmem:[#allocation4 + $0x160] sm:$0xff]  ;;  %v5256_v43 = vld [vmem:[#allocation4 + $0x30] sm:$0xff]  ;;  %v173_v44 = vld [vmem:[%s7007_s0 + $0x38] sm:$0xff] }
  0x41   :  { %473 = vmatprep.subr.mxu0 %v5160_v18  ;;  %4006 = vmatprep.subr.mxu1 %v7019_v0  ;;  %v5263_v45 = vld [vmem:[#allocation4 + $0x20] sm:$0xff]  ;;  %v5266_v46 = vld [vmem:[#allocation4 + $0x18] sm:$0xff]  ;;  %v5270_v47 = vld [vmem:[#allocation4 + $0x8] sm:$0xff] }
  0x42   :  { %474 = vmatpush1.msra.mxu0 %v5165_v19  ;;  %3995 = vmatmul.mubr.msk.f32.vlgmr.msra.gmra.mxu1 %vm190_vm0, %v167_v10  ;;  %7095 = vst [vmem:[#allocation18_spill] sm:$0xff] %v5263_v45  ;;  %7096 = vst [vmem:[#allocation19_spill] sm:$0xff] %v5266_v46  ;;  %v5273_v48 = vld [vmem:[#allocation4 + $0x148] sm:$0xff]  ;;  %v5277_v49 = vld [vmem:[#allocation4] sm:$0xff] }
  0x43   :  { %3621 = vmatmul.mubr.msk.f32.gmra.mxu0 %vm190_vm0, %v5175_v21  ;;  %475 = vmatprep.subr.mxu0 %v5177_v22  ;;  %7097 = vst [vmem:[#allocation20_spill] sm:$0xff] %v5270_v47  ;;  %7098 = vst [vmem:[#allocation21_spill] sm:$0xff] %v5277_v49  ;;  %v5281_v50 = vld [vmem:[#allocation4 + $0x130] sm:$0xff]  ;;  %v5287_v51 = vld [vmem:[#allocation4 + $0x118] sm:$0xff] }
  0x44   :  { %476 = vmatpush1.msra.mxu0 %v5180_v23  ;;  %303 = vmatprep.mubr.f32.mxu0 %v7019_v0  ;;  %v5292_v52 = vld [vmem:[#allocation4 + $0x100] sm:$0xff]  ;;  %v5299_v53 = vld [vmem:[#allocation4 + $0xe8] sm:$0xff]  ;;  %v5307_v54 = vld [vmem:[#allocation4 + $0xd0] sm:$0xff] }
  0x45   :  { %477 = vmatprep.subr.mxu0 %v5183_v24  ;;  %4007 = vmatpush3.msra.mxu1 %v5230_v36  ;;  %v5313_v55 = vld [vmem:[#allocation4 + $0xb8] sm:$0xff]  ;;  %v5320_v56 = vld [vmem:[#allocation4 + $0xa0] sm:$0xff]  ;;  %v5326_v57 = vld [vmem:[#allocation4 + $0x88] sm:$0xff] }
  0x46   :  { %478 = vmatpush1.msra.mxu0 %v5191_v26  ;;  %4008 = vmatprep.subr.mxu1 %v7019_v0  ;;  %v5333_v58 = vld [vmem:[#allocation4 + $0x70] sm:$0xff]  ;;  %v5339_v59 = vld [vmem:[#allocation4 + $0x58] sm:$0xff]  ;;  %v5345_v60 = vld [vmem:[#allocation4 + $0x40] sm:$0xff] }
  0x47   :  { %3622 = vmatmul.mubr.msk.f32.gmra.mxu0 %vm190_vm0, %v5198_v27  ;;  %479 = vmatprep.subr.mxu0 %v5200_v28  ;;  %v5351_v61 = vld [vmem:[#allocation4 + $0x28] sm:$0xff]  ;;  %v5357_v62 = vld [vmem:[#allocation4 + $0x10] sm:$0xff]  ;;  %v148_v3 = vld [vmem:[%s7010_s3] sm:$0x7] }
  0x48   :  { %480 = vmatpush1.msra.mxu0 %v5203_v29  ;;  %309 = vmatprep.mubr.f32.mxu0 %v7019_v0  ;;  %7099 = vst [vmem:[#allocation22_spill] sm:$0xff] %v5351_v61  ;;  %7100 = vst [vmem:[#allocation23_spill] sm:$0xff] %v5357_v62 }
  0x49   :  { %481 = vmatprep.subr.mxu0 %v5206_v30  ;;  %4009 = vmatpush3.msra.mxu1 %v5252_v42 }
  0x4a   :  { %482 = vmatpush1.msra.mxu0 %v5211_v31  ;;  %4010 = vmatprep.subr.mxu1 %v7019_v0 }
  0x4b   :  { %3623 = vmatmul.mubr.msk.f32.gmra.mxu0 %vm190_vm0, %v5218_v32  ;;  %483 = vmatprep.subr.mxu0 %v5220_v33 }
  0x4c   :  { %484 = vmatpush1.msra.mxu0 %v5223_v34  ;;  %315 = vmatprep.mubr.f32.mxu0 %v7019_v0 }
  0x4d   :  { %485 = vmatprep.subr.mxu0 %v5227_v35  ;;  %4011 = vmatpush3.msra.mxu1 %v5273_v48 }
  0x4e   :  { %486 = vmatpush1.msra.mxu0 %v5235_v37  ;;  %4012 = vmatprep.subr.mxu1 %v7019_v0 }
  0x4f   :  { %3624 = vmatmul.mubr.msk.f32.gmra.mxu0 %vm190_vm0, %v172_v38  ;;  %487 = vmatprep.subr.mxu0 %v5242_v39 }
  0x50   :  { %488 = vmatpush1.msra.mxu0 %v5245_v40  ;;  %321 = vmatprep.mubr.f32.mxu0 %v7019_v0 }
  0x51   :  { %489 = vmatprep.subr.mxu0 %v5249_v41  ;;  %4013 = vmatpush3.msra.mxu1 %v5281_v50 }
  0x52   :  { %490 = vmatpush1.msra.mxu0 %v5256_v43  ;;  %4014 = vmatprep.subr.mxu1 %v7019_v0 }
  0x53   :  { %3625 = vmatmul.mubr.msk.f32.gmra.mxu0 %vm190_vm0, %v173_v44  ;;  %491 = vmatprep.subr.mxu0 %v5263_v45 }
  0x54   :  { %492 = vmatpush1.msra.mxu0 %v5266_v46  ;;  %527 = vmatprep.mubr.f32.mxu0 %v7019_v0 }
  0x55   :  { %493 = vmatprep.subr.mxu0 %v5270_v47  ;;  %3997 = vmatprep.mubr.msk.f32.mxu1 %vm190_vm0, %v5152_v15  ;;  %v178_v15 = vrot.slane %v148_v3, %v5419_v2 }
  0x56   :  { %494 = vmatpush1.msra.mxu0 %v5277_v49  ;;  %4015 = vmatpush3.msra.mxu1 %v5287_v51 }
  0x57   :  { %528 = vmatmul.mubr.f32.vlgmr.msra.gmra.mxu0 %v7019_v0  ;;  %631 = vmatprep.subr.mxu0 %v5119_v6 }
  0x58   :  { %4016 = vmatprep.subr.mxu1 %v7019_v0  ;;  %3998 = vmatmul.mubr.msk.f32.gmra.mxu1 %vm190_vm0, %v5175_v21  ;;  %v182_v21 = vrot.slane %v148_v3, %v5424_v5 }
  0x59   :  { %4017 = vmatpush3.msra.mxu1 %v5292_v52  ;;  %4000 = vmatprep.mubr.msk.f32.mxu1 %vm190_vm0, %v5198_v27 }
  0x5a   :  { %4018 = vmatprep.subr.mxu1 %v7019_v0  ;;  %632 = vmatpush1.msra.mxu0 %v5122_v7 }
  0x5b   :  { %4019 = vmatpush3.msra.mxu1 %v5299_v53  ;;  %633 = vmatprep.subr.mxu0 %v5124_v8 }
  0x5c   :  { %4020 = vmatprep.subr.mxu1 %v7019_v0  ;;  %4001 = vmatmul.mubr.msk.f32.gmra.mxu1 %vm190_vm0, %v5218_v32 }
  0x5d   :  { %4021 = vmatpush3.msra.mxu1 %v5307_v54  ;;  %4003 = vmatprep.mubr.msk.f32.mxu1 %vm190_vm0, %v172_v38 }
  0x5e   :  { %4022 = vmatprep.subr.mxu1 %v7019_v0  ;;  %634 = vmatpush1.msra.mxu0 %v5128_v9 }
  0x5f   :  { %4023 = vmatpush3.msra.mxu1 %v5313_v55  ;;  %635 = vmatprep.subr.mxu0 %v5135_v11 }
  0x60   :  { %4024 = vmatprep.subr.mxu1 %v7019_v0  ;;  %4004 = vmatmul.mubr.msk.f32.gmra.mxu1 %vm190_vm0, %v173_v44 }
  0x61   :  { %4025 = vmatpush3.msra.mxu1 %v5320_v56  ;;  %4038 = vmatprep.mubr.msk.f32.mxu1 %vm5029_vm1, %v7019_v0 }
  0x62   :  { %4026 = vmatprep.subr.mxu1 %v7019_v0  ;;  %636 = vmatpush1.msra.mxu0 %v5138_v12 }
  0x63   :  { %4027 = vmatpush3.msra.mxu1 %v5326_v57  ;;  %637 = vmatprep.subr.mxu0 %v5141_v13 }
  0x64   :  { %4028 = vmatprep.subr.mxu1 %v7019_v0  ;;  %638 = vmatpush1.msra.mxu0 %v5145_v14 }
  0x65   :  { %4029 = vmatpush3.msra.mxu1 %v5333_v58  ;;  %639 = vmatprep.subr.mxu0 %v5154_v16 }
  0x66   :  { %4030 = vmatprep.subr.mxu1 %v7019_v0  ;;  %640 = vmatpush1.msra.mxu0 %v5157_v17 }
  0x67   :  { %4031 = vmatpush3.msra.mxu1 %v5339_v59  ;;  %641 = vmatprep.subr.mxu0 %v5160_v18 }
  0x68   :  { %4032 = vmatprep.subr.mxu1 %v7019_v0  ;;  %642 = vmatpush1.msra.mxu0 %v5165_v19 }
  0x69   :  { %4033 = vmatpush3.msra.mxu1 %v5345_v60  ;;  %643 = vmatprep.subr.mxu0 %v5177_v22 }
  0x6a   :  { %4034 = vmatprep.subr.mxu1 %v7019_v0  ;;  %644 = vmatpush1.msra.mxu0 %v5180_v23 }
  0x6b   :  { %4035 = vmatpush3.msra.mxu1 %v5351_v61  ;;  %645 = vmatprep.subr.mxu0 %v5183_v24 }
  0x6c   :  { %4036 = vmatprep.subr.mxu1 %v7019_v0  ;;  %646 = vmatpush1.msra.mxu0 %v5191_v26 }
  0x6d   :  { %4037 = vmatpush3.msra.mxu1 %v5357_v62  ;;  %647 = vmatprep.subr.mxu0 %v5200_v28 }
  0x6e   :  { %4039 = vmatmul.mubr.f32.vlgmr.msra.gmra.mxu1 %v7019_v0  ;;  %4041 = vmatprep.subr.mxu1 %v7019_v0 }
  0x6f   :  { %4042 = vmatpush3.msra.mxu1 %v5230_v36  ;;  %648 = vmatpush1.msra.mxu0 %v5203_v29 }
  0x70   :  { %4043 = vmatprep.subr.mxu1 %v7019_v0  ;;  %649 = vmatprep.subr.mxu0 %v5206_v30 }
  0x71   :  { %4044 = vmatpush3.msra.mxu1 %v5252_v42  ;;  %650 = vmatpush1.msra.mxu0 %v5211_v31 }
  0x72   :  { %4045 = vmatprep.subr.mxu1 %v7019_v0  ;;  %651 = vmatprep.subr.mxu0 %v5220_v33 }
  0x73   :  { %4046 = vmatpush3.msra.mxu1 %v5273_v48  ;;  %652 = vmatpush1.msra.mxu0 %v5223_v34 }
  0x74   :  { %4047 = vmatprep.subr.mxu1 %v7019_v0  ;;  %653 = vmatprep.subr.mxu0 %v5227_v35 }
  0x75   :  { %4048 = vmatpush3.msra.mxu1 %v5281_v50  ;;  %654 = vmatpush1.msra.mxu0 %v5235_v37 }
  0x76   :  { %4049 = vmatprep.subr.mxu1 %v7019_v0  ;;  %655 = vmatprep.subr.mxu0 %v5242_v39 }
  0x77   :  { %4050 = vmatpush3.msra.mxu1 %v5287_v51  ;;  %656 = vmatpush1.msra.mxu0 %v5245_v40 }
  0x78   :  { %4051 = vmatprep.subr.mxu1 %v7019_v0  ;;  %657 = vmatprep.subr.mxu0 %v5249_v41 }
  0x79   :  { %4052 = vmatpush3.msra.mxu1 %v5292_v52  ;;  %658 = vmatpush1.msra.mxu0 %v5256_v43 }
  0x7a   :  { %4053 = vmatprep.subr.mxu1 %v7019_v0  ;;  %659 = vmatprep.subr.mxu0 %v5263_v45 }
  0x7b   :  { %4054 = vmatpush3.msra.mxu1 %v5299_v53  ;;  %660 = vmatpush1.msra.mxu0 %v5266_v46 }
  0x7c   :  { %4055 = vmatprep.subr.mxu1 %v7019_v0  ;;  %661 = vmatprep.subr.mxu0 %v5270_v47 }
  0x7d   :  { %4056 = vmatpush3.msra.mxu1 %v5307_v54  ;;  %662 = vmatpush1.msra.mxu0 %v5277_v49 }
  0x7e   :  { %4057 = vmatprep.subr.mxu1 %v7019_v0  ;;  %695 = vmatprep.mubr.f32.mxu0 %v7019_v0 }
  0x7f   :  { %4058 = vmatpush3.msra.mxu1 %v5313_v55  ;;  %4073 = vmatprep.mubr.msk.f32.mxu1 %vm5029_vm1, %v7019_v0 }
  0x80   :  { %4059 = vmatprep.subr.mxu1 %v7019_v0  ;;  %800 = vmatprep.subr.mxu0 %v5119_v6 }
  0x81   :  { %4060 = vmatpush3.msra.mxu1 %v5320_v56 }
  0x82   :  { %4061 = vmatprep.subr.mxu1 %v7019_v0 }
  0x83   :  { %4062 = vmatpush3.msra.mxu1 %v5326_v57 }
  0x84   :  { %4063 = vmatprep.subr.mxu1 %v7019_v0 }
  0x85   :  { %4064 = vmatpush3.msra.mxu1 %v5333_v58 }
  0x86   :  { %4065 = vmatprep.subr.mxu1 %v7019_v0 }
  0x87   :  { %4066 = vmatpush3.msra.mxu1 %v5339_v59 }
  0x88   :  { %4067 = vmatprep.subr.mxu1 %v7019_v0 }
  0x89   :  { %4068 = vmatpush3.msra.mxu1 %v5345_v60 }
  0x8a   :  { %4069 = vmatprep.subr.mxu1 %v7019_v0 }
  0x8b   :  { %4070 = vmatpush3.msra.mxu1 %v5351_v61 }
  0x8c   :  { %4071 = vmatprep.subr.mxu1 %v7019_v0 }
  0x8d   :  { %4072 = vmatpush3.msra.mxu1 %v5357_v62  ;;  %v5436_v62 = vsub.s32 2, %v152_v1 }
  0x8e   :  { %4076 = vmatprep.subr.mxu1 %v7019_v0 }
  0x8f   :  { %7107 = vst [vmem:[#allocation30_spill] sm:$0xff] %v5436_v62 }
  0xf7   :  { %v281_v4 = vpop.f32.mrf.mxu0 }
  0xf9   :  { %v283_v10 = vpop.f32.mrf.mxu0 }
  0xfb   :  { %v287_v20 = vpop.f32.mrf.mxu0 }
  0xfc   :  { %v5428_v25 = vadd.f32 %v287_v20, %v178_v15  ;;  %v186_v20 = vrot.slane %v148_v3, %v5436_v62 }
  0xfd   :  { %v289_v27 = vpop.f32.mrf.mxu0 }
  0xfe   :  { %7103 = vst [vmem:[#allocation26_spill] sm:$0xff] %v5428_v25  ;;  %v5430_v32 = vadd.f32 %v289_v27, %v182_v21 }
  0xff   :  { %v293_v38 = vpop.f32.mrf.mxu0 }
 0x100   :  { %7104 = vst [vmem:[#allocation27_spill] sm:$0xff] %v5430_v32  ;;  %v5432_v44 = vadd.f32 %v293_v38, %v178_v15 }
 0x101   :  { %v295_v63 = vpop.f32.mrf.mxu0 }
 0x102   :  { %7105 = vst [vmem:[#allocation28_spill] sm:$0xff] %v5432_v44  ;;  %v5434_v0 = vadd.f32 %v295_v63, %v182_v21  ;;  %v3996_v38 = vpop.f32.mrf.mxu1 }
 0x103   :  { %v299_v6 = vpop.f32.mrf.mxu0  ;;  %v5447_v63 = vadd.f32 %v3996_v38, %v186_v20 }
 0x104   :  { %7106 = vst [vmem:[#allocation29_spill] sm:$0xff] %v5434_v0  ;;  %v5438_v49 = vadd.f32 %v299_v6, %v178_v15 }
 0x105   :  { %v301_v47 = vpop.f32.mrf.mxu0  ;;  %7112 = vst [vmem:[#allocation35_spill] sm:$0xff] %v5447_v63 }
 0x106   :  { %7108 = vst [vmem:[#allocation31_spill] sm:$0xff] %v5438_v49  ;;  %v5440_v61 = vadd.f32 %v301_v47, %v182_v21 }
 0x107   :  { %v305_v46 = vpop.f32.mrf.mxu0 }
 0x108   :  { %7109 = vst [vmem:[#allocation32_spill] sm:$0xff] %v5440_v61  ;;  %v5443_v25 = vadd.f32 %v305_v46, %v178_v15  ;;  %v149_v46 = vld [vmem:[%s7011_s4] sm:$0x7] }
 0x109   :  { %v307_v27 = vpop.f32.mrf.mxu0  ;;  %v5463_v38 = vrot.slane %v149_v46, %v5419_v2 }
 0x10a   :  { %7110 = vst [vmem:[#allocation33_spill] sm:$0xff] %v5443_v25  ;;  %v5445_v32 = vadd.f32 %v307_v27, %v182_v21 }
 0x10b   :  { %v311_v44 = vpop.f32.mrf.mxu0  ;;  %7118 = vst [vmem:[#allocation41_spill] sm:$0xff] %v5463_v38 }
 0x10c   :  { %7111 = vst [vmem:[#allocation34_spill] sm:$0xff] %v5445_v32  ;;  %v5449_v0 = vadd.f32 %v311_v44, %v178_v15 }
 0x10d   :  { %v313_v1 = vpop.f32.mrf.mxu0 }
 0x10e   :  { %7113 = vst [vmem:[#allocation36_spill] sm:$0xff] %v5449_v0  ;;  %v5451_v6 = vadd.f32 %v313_v1, %v182_v21 }
 0x10f   :  { %v317_v49 = vpop.f32.mrf.mxu0 }
 0x110   :  { %7114 = vst [vmem:[#allocation37_spill] sm:$0xff] %v5451_v6  ;;  %v5453_v47 = vadd.f32 %v317_v49, %v178_v15  ;;  %v282_v6 = vadd.f32 %v281_v4, %v178_v15 }
 0x111   :  { %v319_v61 = vpop.f32.mrf.mxu0 }
 0x112   :  { %7115 = vst [vmem:[#allocation38_spill] sm:$0xff] %v5453_v47  ;;  %v5458_v3 = vadd.f32 %v319_v61, %v182_v21  ;;  %v394_v47 = vpop.f32.mrf.mxu1 }
 0x113   :  { %v323_v27 = vpop.f32.mrf.mxu0 }
 0x114   :  { %7116 = vst [vmem:[#allocation39_spill] sm:$0xff] %v5458_v3  ;;  %v5460_v32 = vadd.f32 %v323_v27, %v178_v15  ;;  %v5471_v27 = vrot.slane %v149_v46, %v5424_v5 }
 0x115   :  { %v325_v44 = vpop.f32.mrf.mxu0 }
 0x116   :  { %7117 = vst [vmem:[#allocation40_spill] sm:$0xff] %v5460_v32  ;;  %v5465_v0 = vadd.f32 %v325_v44, %v182_v21 }
 0x117   :  { %v529_v1 = vpop.f32.mrf.mxu0 }
 0x118   :  { %7119 = vst [vmem:[#allocation42_spill] sm:$0xff] %v5465_v0  ;;  %v530_v49 = vadd.f32 %v529_v1, %v5463_v38  ;;  %v3999_v63 = vpop.f32.mrf.mxu1  ;;  %v5485_v38 = vrot.slane %v149_v46, %v5436_v62  ;;  %v7130_v46 = vld [vmem:[#allocation22_spill] sm:$0xff] }
 0x119   :  { %v5468_v45 = vadd.f32 %v3999_v63, %v186_v20  ;;  %v531_v2 = vpop.f32.mrf.mxu0  ;;  %v284_v63 = vadd.f32 %v283_v10, %v182_v21  ;;  %v395_v21 = vadd.f32 %v394_v47, %v186_v20  ;;  %v7129_v47 = vld [vmem:[#allocation19_spill] sm:$0xff] }
 0x11a   :  { %v604_v25 = vadd.f32 %v530_v49, %v282_v6  ;;  %v404_v3 = vpop.f32.mrf.mxu1  ;;  %v532_v15 = vadd.f32 %v531_v2, %v5471_v27 }
 0x11b   :  { %7120 = vst [vmem:[#allocation43_spill] sm:$0xff] %v5468_v45  ;;  %v5473_v32 = vadd.f32 %v404_v3, %v186_v20 }
 0x11c   :  { %v3634_v61 = vmul.f32 -1.442695, %v604_v25  ;;  %v4002_v44 = vpop.f32.mrf.mxu1  ;;  %v605_v45 = vadd.f32 %v532_v15, %v284_v63 }
 0x11d   :  { %7121 = vst [vmem:[#allocation44_spill] sm:$0xff] %v5473_v32  ;;  %v5475_v0 = vadd.f32 %v4002_v44, %v186_v20 }
 0x11e   :  { %4656 = vpow2.f32 %v3634_v61  ;;  %v414_v4 = vpop.f32.mrf.mxu1  ;;  %v3635_v3 = vmul.f32 -1.442695, %v605_v45 }
 0x11f   :  { %7122 = vst [vmem:[#allocation45_spill] sm:$0xff] %v5475_v0  ;;  %v5478_v1 = vadd.f32 %v414_v4, %v186_v20 }
 0x120   :  { %v4005_v6 = vpop.f32.mrf.mxu1  ;;  %4658 = vpow2.f32 %v3635_v3 }
 0x121   :  { %7123 = vst [vmem:[#allocation46_spill] sm:$0xff] %v5478_v1  ;;  %v5480_v49 = vadd.f32 %v4005_v6, %v186_v20 }
 0x122   :  { %v424_v25 = vpop.f32.mrf.mxu1 }
 0x123   :  { %7124 = vst [vmem:[#allocation47_spill] sm:$0xff] %v5480_v49  ;;  %v5482_v5 = vadd.f32 %v424_v25, %v186_v20  ;;  %v7128_v20 = vld [vmem:[#allocation18_spill] sm:$0xff] }
 0x125   :  { %7125 = vst [vmem:[#allocation48_spill] sm:$0xff] %v5482_v5  ;;  %v7137_v5 = vld [vmem:[#allocation27_spill] sm:$0xff] }
 0x12b   :  { %v4657_v32 = vpop.eup %4656 }
 0x12c   :  { %v612_v61 = vadd.f32 1.0, %v4657_v32 }
 0x12d   :  { %v4659_v4 = vpop.eup %4658 }
 0x12e   :  { %4660 = vrcp.f32 %v612_v61  ;;  %v600_v44 = vpop.f32.mrf.mxu1  ;;  %v613_v49 = vadd.f32 1.0, %v4659_v4  ;;  %v7132_v61 = vld [vmem:[#allocation21_spill] sm:$0xff] }
 0x12f   :  { %v601_v2 = vadd.f32 %v600_v44, %v5485_v38  ;;  %v7133_v44 = vld [vmem:[#allocation23_spill] sm:$0xff] }
 0x130   :  { %v4040_v0 = vpop.f32.mrf.mxu1 }
 0x131   :  { %v7127_v0 = vmov 0.0  }
 0x13b   :  { %v4661_v10 = vpop.eup %4660 }
 0x13c   :  { %v618_v6 = vmul.f32 %v4661_v10, %v601_v2  ;;  %v7134_v2 = vld [vmem:[#allocation17_spill] sm:$0xff] }
 0x13e   :  { %v619_v15 = vadd.f32 %v618_v6, %v395_v21  ;;  %v7135_v21 = vld [vmem:[#allocation41_spill] sm:$0xff] }
 0x140   :  { %4662 = vtanh.f32 %v619_v15 }
 0x141   :  { %4664 = vrcp.f32 %v613_v49  ;;  %v7131_v49 = vld [vmem:[#allocation20_spill] sm:$0xff] }
 0x14d   :  { %v4663_v45 = vpop.eup %4662 }
 0x14e   :  { %v621_v63 = vsub.f32 0.0, %v4663_v45  ;;  %v4665_v32 = vpop.eup %4664 }
 0x150   :  { %v622_v25 = vmul.f32 %v4665_v32, %v621_v63 }
 0x152   :  { %v5488_v3 = vadd.f32 %v4663_v45, %v622_v25  ;;  %v7136_v45 = vld [vmem:[#allocation26_spill] sm:$0xff] }
 0x154   :  { %7126 = vst [vmem:[#allocation49_spill] sm:$0xff] %v5488_v3  ;;  %696 = vmatmul.mubr.f32.vlgmr.msra.gmra.mxu0 %v5488_v3  ;;  %4074 = vmatmul.mubr.f32.vlgmr.msra.gmra.mxu1 %v5488_v3 }
 0x155   :  { %801 = vmatpush1.msra.mxu0 %v5122_v7  ;;  %4077 = vmatpush3.msra.mxu1 %v5230_v36 }
 0x156   :  { %802 = vmatprep.subr.mxu0 %v5124_v8  ;;  %4078 = vmatprep.subr.mxu1 %v7127_v0 }
 0x157   :  { %803 = vmatpush1.msra.mxu0 %v5128_v9  ;;  %4079 = vmatpush3.msra.mxu1 %v5252_v42 }
 0x158   :  { %804 = vmatprep.subr.mxu0 %v5135_v11  ;;  %4080 = vmatprep.subr.mxu1 %v7127_v0 }
 0x159   :  { %805 = vmatpush1.msra.mxu0 %v5138_v12  ;;  %4081 = vmatpush3.msra.mxu1 %v5273_v48 }
 0x15a   :  { %806 = vmatprep.subr.mxu0 %v5141_v13  ;;  %4082 = vmatprep.subr.mxu1 %v7127_v0 }
 0x15b   :  { %807 = vmatpush1.msra.mxu0 %v5145_v14  ;;  %4083 = vmatpush3.msra.mxu1 %v5281_v50 }
 0x15c   :  { %808 = vmatprep.subr.mxu0 %v5154_v16  ;;  %4084 = vmatprep.subr.mxu1 %v7127_v0 }
 0x15d   :  { %809 = vmatpush1.msra.mxu0 %v5157_v17  ;;  %4085 = vmatpush3.msra.mxu1 %v5287_v51 }
 0x15e   :  { %810 = vmatprep.subr.mxu0 %v5160_v18  ;;  %4086 = vmatprep.subr.mxu1 %v7127_v0 }
 0x15f   :  { %811 = vmatpush1.msra.mxu0 %v5165_v19  ;;  %4087 = vmatpush3.msra.mxu1 %v5292_v52 }
 0x160   :  { %812 = vmatprep.subr.mxu0 %v5177_v22  ;;  %4088 = vmatprep.subr.mxu1 %v7127_v0 }
 0x161   :  { %813 = vmatpush1.msra.mxu0 %v5180_v23  ;;  %4089 = vmatpush3.msra.mxu1 %v5299_v53 }
 0x162   :  { %814 = vmatprep.subr.mxu0 %v5183_v24  ;;  %4090 = vmatprep.subr.mxu1 %v7127_v0 }
 0x163   :  { %815 = vmatpush1.msra.mxu0 %v5191_v26  ;;  %4091 = vmatpush3.msra.mxu1 %v5307_v54 }
 0x164   :  { %816 = vmatprep.subr.mxu0 %v5200_v28  ;;  %4092 = vmatprep.subr.mxu1 %v7127_v0 }
 0x165   :  { %817 = vmatpush1.msra.mxu0 %v5203_v29  ;;  %4093 = vmatpush3.msra.mxu1 %v5313_v55 }
 0x166   :  { %818 = vmatprep.subr.mxu0 %v5206_v30  ;;  %4094 = vmatprep.subr.mxu1 %v7127_v0 }
 0x167   :  { %819 = vmatpush1.msra.mxu0 %v5211_v31  ;;  %4095 = vmatpush3.msra.mxu1 %v5320_v56 }
 0x168   :  { %820 = vmatprep.subr.mxu0 %v5220_v33  ;;  %4096 = vmatprep.subr.mxu1 %v7127_v0 }
 0x169   :  { %821 = vmatpush1.msra.mxu0 %v5223_v34  ;;  %4097 = vmatpush3.msra.mxu1 %v5326_v57 }
 0x16a   :  { %822 = vmatprep.subr.mxu0 %v5227_v35  ;;  %4098 = vmatprep.subr.mxu1 %v7127_v0 }
 0x16b   :  { %823 = vmatpush1.msra.mxu0 %v5235_v37  ;;  %4099 = vmatpush3.msra.mxu1 %v5333_v58 }
 0x16c   :  { %824 = vmatprep.subr.mxu0 %v5242_v39  ;;  %4100 = vmatprep.subr.mxu1 %v7127_v0 }
 0x16d   :  { %825 = vmatpush1.msra.mxu0 %v5245_v40  ;;  %4101 = vmatpush3.msra.mxu1 %v5339_v59 }
 0x16e   :  { %826 = vmatprep.subr.mxu0 %v5249_v41  ;;  %4102 = vmatprep.subr.mxu1 %v7127_v0 }
 0x16f   :  { %827 = vmatpush1.msra.mxu0 %v5256_v43  ;;  %4103 = vmatpush3.msra.mxu1 %v5345_v60 }
 0x170   :  { %828 = vmatprep.subr.mxu0 %v7128_v20  ;;  %4104 = vmatprep.subr.mxu1 %v7127_v0 }
 0x171   :  { %829 = vmatpush1.msra.mxu0 %v7129_v47  ;;  %4105 = vmatpush3.msra.mxu1 %v7130_v46 }
 0x172   :  { %830 = vmatprep.subr.mxu0 %v7131_v49  ;;  %4106 = vmatprep.subr.mxu1 %v7127_v0 }
 0x173   :  { %831 = vmatpush1.msra.mxu0 %v7132_v61  ;;  %864 = vmatprep.mubr.f32.mxu0 %v7127_v0 }
 0x174   :  { %4107 = vmatpush3.msra.mxu1 %v7133_v44  ;;  %4108 = vmatprep.mubr.msk.f32.mxu1 %vm5029_vm1, %v7127_v0 }
 0x175   :  { %969 = vmatprep.subr.mxu0 %v7134_v2  ;;  %4111 = vmatprep.subr.mxu1 %v7127_v0 }
 0x214   :  { %v697_v4 = vpop.f32.mrf.mxu0  ;;  %v768_v10 = vpop.f32.mrf.mxu1 }
 0x215   :  { %v698_v6 = vadd.f32 %v697_v4, %v7135_v21  ;;  %v769_v46 = vadd.f32 %v768_v10, %v5485_v38 }
 0x216   :  { %v4075_v15 = vpop.f32.mrf.mxu1  ;;  %v699_v25 = vpop.f32.mrf.mxu0 }
 0x217   :  { %v772_v63 = vadd.f32 %v698_v6, %v7136_v45  ;;  %v700_v62 = vadd.f32 %v699_v25, %v5471_v27  ;;  %v7138_v15 = vld [vmem:[#allocation35_spill] sm:$0xff] }
 0x219   :  { %v3636_v32 = vmul.f32 -1.442695, %v772_v63  ;;  %v773_v1 = vadd.f32 %v700_v62, %v7137_v5 }
 0x21b   :  { %4666 = vpow2.f32 %v3636_v32  ;;  %v3637_v44 = vmul.f32 -1.442695, %v773_v1  ;;  %v7140_v1 = vld [vmem:[#allocation19_spill] sm:$0xff] }
 0x21d   :  { %4668 = vpow2.f32 %v3637_v44  ;;  %v7145_v44 = vld [vmem:[#allocation17_spill] sm:$0xff] }
 0x228   :  { %v4667_v61 = vpop.eup %4666 }
 0x229   :  { %v780_v49 = vadd.f32 1.0, %v4667_v61  ;;  %v7144_v61 = vld [vmem:[#allocation23_spill] sm:$0xff] }
 0x22a   :  { %v4669_v2 = vpop.eup %4668 }
 0x22b   :  { %4670 = vrcp.f32 %v780_v49  ;;  %v781_v6 = vadd.f32 1.0, %v4669_v2  ;;  %v7143_v49 = vld [vmem:[#allocation21_spill] sm:$0xff] }
 0x238   :  { %v4671_v47 = vpop.eup %4670 }
 0x239   :  { %v786_v4 = vmul.f32 %v4671_v47, %v769_v46  ;;  %v7141_v47 = vld [vmem:[#allocation22_spill] sm:$0xff]  ;;  %v7142_v46 = vld [vmem:[#allocation20_spill] sm:$0xff] }
 0x23b   :  { %v787_v21 = vadd.f32 %v786_v4, %v7138_v15  ;;  %v7147_v15 = vld [vmem:[#allocation28_spill] sm:$0xff] }
 0x23d   :  { %4672 = vtanh.f32 %v787_v21  ;;  %v7146_v21 = vld [vmem:[#allocation41_spill] sm:$0xff] }
 0x23e   :  { %4674 = vrcp.f32 %v781_v6 }
 0x24a   :  { %v4673_v45 = vpop.eup %4672 }
 0x24b   :  { %v789_v63 = vsub.f32 %v5488_v3, %v4673_v45  ;;  %v4675_v32 = vpop.eup %4674 }
 0x24d   :  { %v790_v62 = vmul.f32 %v4675_v32, %v789_v63 }
 0x24f   :  { %v5566_v5 = vadd.f32 %v4673_v45, %v790_v62  ;;  %v7148_v62 = vld [vmem:[#allocation29_spill] sm:$0xff] }
 0x251   :  { %7139 = vst [vmem:[#allocation18_spill] sm:$0xff] %v5566_v5  ;;  %865 = vmatmul.mubr.f32.vlgmr.msra.gmra.mxu0 %v5566_v5  ;;  %4109 = vmatmul.mubr.f32.vlgmr.msra.gmra.mxu1 %v5566_v5 }
 0x252   :  { %970 = vmatpush1.msra.mxu0 %v5122_v7  ;;  %4112 = vmatpush3.msra.mxu1 %v5230_v36 }
 0x253   :  { %971 = vmatprep.subr.mxu0 %v5124_v8  ;;  %4113 = vmatprep.subr.mxu1 %v7127_v0 }
 0x254   :  { %972 = vmatpush1.msra.mxu0 %v5128_v9  ;;  %4114 = vmatpush3.msra.mxu1 %v5252_v42 }
 0x255   :  { %973 = vmatprep.subr.mxu0 %v5135_v11  ;;  %4115 = vmatprep.subr.mxu1 %v7127_v0 }
 0x256   :  { %974 = vmatpush1.msra.mxu0 %v5138_v12  ;;  %4116 = vmatpush3.msra.mxu1 %v5273_v48 }
 0x257   :  { %975 = vmatprep.subr.mxu0 %v5141_v13  ;;  %4117 = vmatprep.subr.mxu1 %v7127_v0 }
 0x258   :  { %976 = vmatpush1.msra.mxu0 %v5145_v14  ;;  %4118 = vmatpush3.msra.mxu1 %v5281_v50 }
 0x259   :  { %977 = vmatprep.subr.mxu0 %v5154_v16  ;;  %4119 = vmatprep.subr.mxu1 %v7127_v0 }
 0x25a   :  { %978 = vmatpush1.msra.mxu0 %v5157_v17  ;;  %4120 = vmatpush3.msra.mxu1 %v5287_v51 }
 0x25b   :  { %979 = vmatprep.subr.mxu0 %v5160_v18  ;;  %4121 = vmatprep.subr.mxu1 %v7127_v0 }
 0x25c   :  { %980 = vmatpush1.msra.mxu0 %v5165_v19  ;;  %4122 = vmatpush3.msra.mxu1 %v5292_v52 }
 0x25d   :  { %981 = vmatprep.subr.mxu0 %v5177_v22  ;;  %4123 = vmatprep.subr.mxu1 %v7127_v0 }
 0x25e   :  { %982 = vmatpush1.msra.mxu0 %v5180_v23  ;;  %4124 = vmatpush3.msra.mxu1 %v5299_v53 }
 0x25f   :  { %983 = vmatprep.subr.mxu0 %v5183_v24  ;;  %4125 = vmatprep.subr.mxu1 %v7127_v0 }
 0x260   :  { %984 = vmatpush1.msra.mxu0 %v5191_v26  ;;  %4126 = vmatpush3.msra.mxu1 %v5307_v54 }
 0x261   :  { %985 = vmatprep.subr.mxu0 %v5200_v28  ;;  %4127 = vmatprep.subr.mxu1 %v7127_v0 }
 0x262   :  { %986 = vmatpush1.msra.mxu0 %v5203_v29  ;;  %4128 = vmatpush3.msra.mxu1 %v5313_v55 }
 0x263   :  { %987 = vmatprep.subr.mxu0 %v5206_v30  ;;  %4129 = vmatprep.subr.mxu1 %v7127_v0 }
 0x264   :  { %988 = vmatpush1.msra.mxu0 %v5211_v31  ;;  %4130 = vmatpush3.msra.mxu1 %v5320_v56 }
 0x265   :  { %989 = vmatprep.subr.mxu0 %v5220_v33  ;;  %4131 = vmatprep.subr.mxu1 %v7127_v0 }
 0x266   :  { %990 = vmatpush1.msra.mxu0 %v5223_v34  ;;  %4132 = vmatpush3.msra.mxu1 %v5326_v57 }
 0x267   :  { %991 = vmatprep.subr.mxu0 %v5227_v35  ;;  %4133 = vmatprep.subr.mxu1 %v7127_v0 }
 0x268   :  { %992 = vmatpush1.msra.mxu0 %v5235_v37  ;;  %4134 = vmatpush3.msra.mxu1 %v5333_v58 }
 0x269   :  { %993 = vmatprep.subr.mxu0 %v5242_v39  ;;  %4135 = vmatprep.subr.mxu1 %v7127_v0 }
 0x26a   :  { %994 = vmatpush1.msra.mxu0 %v5245_v40  ;;  %4136 = vmatpush3.msra.mxu1 %v5339_v59 }
 0x26b   :  { %995 = vmatprep.subr.mxu0 %v5249_v41  ;;  %4137 = vmatprep.subr.mxu1 %v7127_v0 }
 0x26c   :  { %996 = vmatpush1.msra.mxu0 %v5256_v43  ;;  %4138 = vmatpush3.msra.mxu1 %v5345_v60 }
 0x26d   :  { %997 = vmatprep.subr.mxu0 %v7128_v20  ;;  %4139 = vmatprep.subr.mxu1 %v7127_v0 }
 0x26e   :  { %998 = vmatpush1.msra.mxu0 %v7140_v1  ;;  %4140 = vmatpush3.msra.mxu1 %v7141_v47 }
 0x26f   :  { %999 = vmatprep.subr.mxu0 %v7142_v46  ;;  %4141 = vmatprep.subr.mxu1 %v7127_v0 }
 0x270   :  { %1000 = vmatpush1.msra.mxu0 %v7143_v49  ;;  %1033 = vmatprep.mubr.f32.mxu0 %v7127_v0 }
 0x271   :  { %4142 = vmatpush3.msra.mxu1 %v7144_v61  ;;  %4143 = vmatprep.mubr.msk.f32.mxu1 %vm5029_vm1, %v7127_v0 }
 0x272   :  { %1138 = vmatprep.subr.mxu0 %v7145_v44  ;;  %4146 = vmatprep.subr.mxu1 %v7127_v0 }
 0x311   :  { %v866_v2 = vpop.f32.mrf.mxu0  ;;  %v937_v10 = vpop.f32.mrf.mxu1 }
 0x312   :  { %v867_v25 = vadd.f32 %v866_v2, %v7146_v21  ;;  %v938_v47 = vadd.f32 %v937_v10, %v5485_v38  ;;  %v5741_v10 = vld [vmem:[#allocation4 + $0x160] sm:$0xff] }
 0x313   :  { %v4110_v4 = vpop.f32.mrf.mxu1  ;;  %v868_v63 = vpop.f32.mrf.mxu0 }
 0x314   :  { %v941_v6 = vadd.f32 %v867_v25, %v7147_v15  ;;  %v869_v32 = vadd.f32 %v868_v63, %v5471_v27  ;;  %v7149_v4 = vld [vmem:[#allocation44_spill] sm:$0xff] }
 0x316   :  { %v3638_v45 = vmul.f32 -1.442695, %v941_v6  ;;  %v942_v3 = vadd.f32 %v869_v32, %v7148_v62  ;;  %v5748_v32 = vld [vmem:[#allocation4 + $0x138] sm:$0xff]  ;;  %v5751_v62 = vld [vmem:[#allocation4 + $0x148] sm:$0xff] }
 0x318   :  { %4676 = vpow2.f32 %v3638_v45  ;;  %v3639_v61 = vmul.f32 -1.442695, %v942_v3 }
 0x31a   :  { %4678 = vpow2.f32 %v3639_v61  ;;  %v5738_v61 = vld [vmem:[#allocation4 + $0x150] sm:$0xff] }
 0x325   :  { %v4677_v49 = vpop.eup %4676 }
 0x326   :  { %v949_v46 = vadd.f32 1.0, %v4677_v49  ;;  %v5734_v49 = vld [vmem:[#allocation4 + $0x158] sm:$0xff] }
 0x327   :  { %v4679_v44 = vpop.eup %4678 }
 0x328   :  { %4680 = vrcp.f32 %v949_v46  ;;  %v950_v25 = vadd.f32 1.0, %v4679_v44  ;;  %v5731_v46 = vld [vmem:[#allocation4 + $0x178] sm:$0xff]  ;;  %v5754_v44 = vld [vmem:[#allocation4 + $0x128] sm:$0xff] }
 0x335   :  { %v4681_v1 = vpop.eup %4680 }
 0x336   :  { %v955_v2 = vmul.f32 %v4681_v1, %v938_v47  ;;  %v5728_v47 = vld [vmem:[#allocation4 + $0x168] sm:$0xff] }
 0x338   :  { %v956_v21 = vadd.f32 %v955_v2, %v7149_v4  ;;  %v5758_v2 = vld [vmem:[#allocation4 + $0x120] sm:$0xff]  ;;  %v5761_v4 = vld [vmem:[#allocation4 + $0x130] sm:$0xff] }
 0x33a   :  { %4682 = vtanh.f32 %v956_v21  ;;  %v5744_v21 = vld [vmem:[#allocation4 + $0x140] sm:$0xff] }
 0x33b   :  { %4684 = vrcp.f32 %v950_v25  ;;  %v5764_v25 = vld [vmem:[#allocation4 + $0x110] sm:$0xff] }
 0x347   :  { %v4683_v15 = vpop.eup %4682 }
 0x348   :  { %v958_v6 = vsub.f32 %v5566_v5, %v4683_v15  ;;  %v4685_v45 = vpop.eup %4684 }
 0x34a   :  { %v959_v63 = vmul.f32 %v4685_v45, %v958_v6  ;;  %v5772_v6 = vld [vmem:[#allocation4 + $0xf8] sm:$0xff]  ;;  %v5776_v45 = vld [vmem:[#allocation4 + $0xf0] sm:$0xff] }
 0x34c   :  { %v5644_v3 = vadd.f32 %v4683_v15, %v959_v63  ;;  %v5768_v15 = vld [vmem:[#allocation4 + $0x108] sm:$0xff]  ;;  %v5780_v63 = vld [vmem:[#allocation4 + $0xe0] sm:$0xff] }
 0x34e   :  { %7150 = vst [vmem:[#allocation26_spill] sm:$0xff] %v5644_v3  ;;  %1034 = vmatmul.mubr.f32.vlgmr.msra.gmra.mxu0 %v5644_v3  ;;  %4144 = vmatmul.mubr.f32.vlgmr.msra.gmra.mxu1 %v5644_v3 }
 0x34f   :  { %1139 = vmatpush1.msra.mxu0 %v5122_v7  ;;  %4147 = vmatpush3.msra.mxu1 %v5230_v36  ;;  %v7151_v7 = vld [vmem:[#allocation19_spill] sm:$0xff] }
 0x350   :  { %1140 = vmatprep.subr.mxu0 %v5124_v8  ;;  %4148 = vmatprep.subr.mxu1 %v7127_v0  ;;  %v7152_v8 = vld [vmem:[#allocation22_spill] sm:$0xff] }
 0x351   :  { %1141 = vmatpush1.msra.mxu0 %v5128_v9  ;;  %4149 = vmatpush3.msra.mxu1 %v5252_v42  ;;  %v7153_v9 = vld [vmem:[#allocation20_spill] sm:$0xff] }
 0x352   :  { %1142 = vmatprep.subr.mxu0 %v5135_v11  ;;  %4150 = vmatprep.subr.mxu1 %v7127_v0  ;;  %v7154_v11 = vld [vmem:[#allocation21_spill] sm:$0xff] }
 0x353   :  { %1143 = vmatpush1.msra.mxu0 %v5138_v12  ;;  %4151 = vmatpush3.msra.mxu1 %v5273_v48  ;;  %v7155_v12 = vld [vmem:[#allocation23_spill] sm:$0xff] }
 0x354   :  { %1144 = vmatprep.subr.mxu0 %v5141_v13  ;;  %4152 = vmatprep.subr.mxu1 %v7127_v0  ;;  %v5713_v13 = vld [vmem:[#allocation4 + $0x170] sm:$0xff] }
 0x355   :  { %1145 = vmatpush1.msra.mxu0 %v5145_v14  ;;  %4153 = vmatpush3.msra.mxu1 %v5281_v50 }
 0x356   :  { %1146 = vmatprep.subr.mxu0 %v5154_v16  ;;  %4154 = vmatprep.subr.mxu1 %v7127_v0 }
 0x357   :  { %1147 = vmatpush1.msra.mxu0 %v5157_v17  ;;  %4155 = vmatpush3.msra.mxu1 %v5287_v51  ;;  %v7156_v17 = vld [vmem:[#allocation41_spill] sm:$0xff] }
 0x358   :  { %1148 = vmatprep.subr.mxu0 %v5160_v18  ;;  %4156 = vmatprep.subr.mxu1 %v7127_v0 }
 0x359   :  { %1149 = vmatpush1.msra.mxu0 %v5165_v19  ;;  %4157 = vmatpush3.msra.mxu1 %v5292_v52 }
 0x35a   :  { %1150 = vmatprep.subr.mxu0 %v5177_v22  ;;  %4158 = vmatprep.subr.mxu1 %v7127_v0  ;;  %v7157_v22 = vld [vmem:[#allocation31_spill] sm:$0xff] }
 0x35b   :  { %1151 = vmatpush1.msra.mxu0 %v5180_v23  ;;  %4159 = vmatpush3.msra.mxu1 %v5299_v53 }
 0x35c   :  { %1152 = vmatprep.subr.mxu0 %v5183_v24  ;;  %4160 = vmatprep.subr.mxu1 %v7127_v0 }
 0x35d   :  { %1153 = vmatpush1.msra.mxu0 %v5191_v26  ;;  %4161 = vmatpush3.msra.mxu1 %v5307_v54 }
 0x35e   :  { %1154 = vmatprep.subr.mxu0 %v5200_v28  ;;  %4162 = vmatprep.subr.mxu1 %v7127_v0 }
 0x35f   :  { %1155 = vmatpush1.msra.mxu0 %v5203_v29  ;;  %4163 = vmatpush3.msra.mxu1 %v5313_v55  ;;  %v7158_v29 = vld [vmem:[#allocation32_spill] sm:$0xff] }
 0x360   :  { %1156 = vmatprep.subr.mxu0 %v5206_v30  ;;  %4164 = vmatprep.subr.mxu1 %v7127_v0 }
 0x361   :  { %1157 = vmatpush1.msra.mxu0 %v5211_v31  ;;  %4165 = vmatpush3.msra.mxu1 %v5320_v56 }
 0x362   :  { %1158 = vmatprep.subr.mxu0 %v5220_v33  ;;  %4166 = vmatprep.subr.mxu1 %v7127_v0 }
 0x363   :  { %1159 = vmatpush1.msra.mxu0 %v5223_v34  ;;  %4167 = vmatpush3.msra.mxu1 %v5326_v57 }
 0x364   :  { %1160 = vmatprep.subr.mxu0 %v5227_v35  ;;  %4168 = vmatprep.subr.mxu1 %v7127_v0 }
 0x365   :  { %1161 = vmatpush1.msra.mxu0 %v5235_v37  ;;  %4169 = vmatpush3.msra.mxu1 %v5333_v58 }
 0x366   :  { %1162 = vmatprep.subr.mxu0 %v5242_v39  ;;  %4170 = vmatprep.subr.mxu1 %v7127_v0 }
 0x367   :  { %1163 = vmatpush1.msra.mxu0 %v5245_v40  ;;  %4171 = vmatpush3.msra.mxu1 %v5339_v59  ;;  %v7159_v40 = vld [vmem:[#allocation43_spill] sm:$0xff] }
 0x368   :  { %1164 = vmatprep.subr.mxu0 %v5249_v41  ;;  %4172 = vmatprep.subr.mxu1 %v7127_v0 }
 0x369   :  { %1165 = vmatpush1.msra.mxu0 %v5256_v43  ;;  %4173 = vmatpush3.msra.mxu1 %v5345_v60 }
 0x36a   :  { %1166 = vmatprep.subr.mxu0 %v7128_v20  ;;  %4174 = vmatprep.subr.mxu1 %v7127_v0 }
 0x36b   :  { %1167 = vmatpush1.msra.mxu0 %v7151_v7  ;;  %4175 = vmatpush3.msra.mxu1 %v7152_v8  ;;  %v5784_v7 = vld [vmem:[#allocation4 + $0xd8] sm:$0xff] }
 0x36c   :  { %1168 = vmatprep.subr.mxu0 %v7153_v9  ;;  %4176 = vmatprep.subr.mxu1 %v7127_v0  ;;  %v5792_v9 = vld [vmem:[#allocation4 + $0xc0] sm:$0xff] }
 0x36d   :  { %1169 = vmatpush1.msra.mxu0 %v7154_v11  ;;  %1202 = vmatprep.mubr.f32.mxu0 %v7127_v0  ;;  %v5800_v11 = vld [vmem:[#allocation4 + $0xa8] sm:$0xff] }
 0x36e   :  { %4177 = vmatpush3.msra.mxu1 %v7155_v12  ;;  %4178 = vmatprep.mubr.msk.f32.mxu1 %vm5029_vm1, %v7127_v0 }
 0x36f   :  { %1307 = vmatprep.subr.mxu0 %v5713_v13  ;;  %4181 = vmatprep.subr.mxu1 %v7127_v0 }
 0x40e   :  { %v1035_v14 = vpop.f32.mrf.mxu0  ;;  %v1106_v16 = vpop.f32.mrf.mxu1 }
 0x40f   :  { %v1036_v18 = vadd.f32 %v1035_v14, %v7156_v17  ;;  %v1107_v36 = vadd.f32 %v1106_v16, %v5485_v38  ;;  %v5808_v14 = vld [vmem:[#allocation4 + $0x90] sm:$0xff]  ;;  %v5816_v16 = vld [vmem:[#allocation4 + $0x78] sm:$0xff] }
 0x410   :  { %v4145_v19 = vpop.f32.mrf.mxu1  ;;  %v1037_v26 = vpop.f32.mrf.mxu0 }
 0x411   :  { %v1110_v23 = vadd.f32 %v1036_v18, %v7157_v22  ;;  %v1038_v28 = vadd.f32 %v1037_v26, %v5471_v27  ;;  %v5824_v18 = vld [vmem:[#allocation4 + $0x60] sm:$0xff]  ;;  %v5832_v19 = vld [vmem:[#allocation4 + $0x48] sm:$0xff]  ;;  %v5840_v22 = vld [vmem:[#allocation4 + $0x30] sm:$0xff] }
 0x413   :  { %v3640_v24 = vmul.f32 -1.442695, %v1110_v23  ;;  %v1111_v30 = vadd.f32 %v1038_v28, %v7158_v29  ;;  %v5848_v23 = vld [vmem:[#allocation4 + $0x18] sm:$0xff]  ;;  %v7164_v29 = vld [vmem:[#allocation33_spill] sm:$0xff] }
 0x414   :  { %7161 = vst [vmem:[#allocation35_spill] sm:$0xff] %v5848_v23 }
 0x415   :  { %4686 = vpow2.f32 %v3640_v24  ;;  %v3641_v31 = vmul.f32 -1.442695, %v1111_v30  ;;  %v5856_v24 = vld [vmem:[#allocation4] sm:$0xff] }
 0x416   :  { %7163 = vst [vmem:[#allocation28_spill] sm:$0xff] %v5856_v24 }
 0x417   :  { %4688 = vpow2.f32 %v3641_v31 }
 0x422   :  { %v4687_v33 = vpop.eup %4686 }
 0x423   :  { %v1118_v34 = vadd.f32 1.0, %v4687_v33 }
 0x424   :  { %v4689_v35 = vpop.eup %4688 }
 0x425   :  { %4690 = vrcp.f32 %v1118_v34  ;;  %v1119_v42 = vadd.f32 1.0, %v4689_v35 }
 0x432   :  { %v4691_v37 = vpop.eup %4690 }
 0x433   :  { %v1124_v39 = vmul.f32 %v4691_v37, %v1107_v36 }
 0x435   :  { %v1125_v41 = vadd.f32 %v1124_v39, %v7159_v40 }
 0x437   :  { %4692 = vtanh.f32 %v1125_v41 }
 0x438   :  { %4694 = vrcp.f32 %v1119_v42 }
 0x444   :  { %v4693_v43 = vpop.eup %4692 }
 0x445   :  { %v1127_v48 = vsub.f32 %v5644_v3, %v4693_v43  ;;  %v4695_v50 = vpop.eup %4694  ;;  %v7170_v3 = vld [vmem:[#allocation37_spill] sm:$0xff] }
 0x447   :  { %v1128_v20 = vmul.f32 %v4695_v50, %v1127_v48  ;;  %v7166_v48 = vld [vmem:[#allocation46_spill] sm:$0xff] }
 0x449   :  { %v5724_v1 = vadd.f32 %v4693_v43, %v1128_v20 }
 0x44b   :  { %7160 = vst [vmem:[#allocation27_spill] sm:$0xff] %v5724_v1  ;;  %1203 = vmatmul.mubr.f32.vlgmr.msra.gmra.mxu0 %v5724_v1  ;;  %4179 = vmatmul.mubr.f32.vlgmr.msra.gmra.mxu1 %v5724_v1 }
 0x44c   :  { %1308 = vmatpush1.msra.mxu0 %v5728_v47  ;;  %4182 = vmatpush3.msra.mxu1 %v5731_v46 }
 0x44d   :  { %1309 = vmatprep.subr.mxu0 %v5734_v49  ;;  %4183 = vmatprep.subr.mxu1 %v7127_v0 }
 0x44e   :  { %1310 = vmatpush1.msra.mxu0 %v5738_v61  ;;  %4184 = vmatpush3.msra.mxu1 %v5741_v10 }
 0x44f   :  { %1311 = vmatprep.subr.mxu0 %v5744_v21  ;;  %4185 = vmatprep.subr.mxu1 %v7127_v0 }
 0x450   :  { %1312 = vmatpush1.msra.mxu0 %v5748_v32  ;;  %4186 = vmatpush3.msra.mxu1 %v5751_v62 }
 0x451   :  { %1313 = vmatprep.subr.mxu0 %v5754_v44  ;;  %4187 = vmatprep.subr.mxu1 %v7127_v0 }
 0x452   :  { %1314 = vmatpush1.msra.mxu0 %v5758_v2  ;;  %4188 = vmatpush3.msra.mxu1 %v5761_v4 }
 0x453   :  { %1315 = vmatprep.subr.mxu0 %v5764_v25  ;;  %4189 = vmatprep.subr.mxu1 %v7127_v0 }
 0x454   :  { %1316 = vmatpush1.msra.mxu0 %v5768_v15  ;;  %4190 = vmatpush3.msra.mxu1 %v5287_v51  ;;  %v5788_v51 = vld [vmem:[#allocation4 + $0xc8] sm:$0xff] }
 0x455   :  { %1317 = vmatprep.subr.mxu0 %v5772_v6  ;;  %4191 = vmatprep.subr.mxu1 %v7127_v0 }
 0x456   :  { %1318 = vmatpush1.msra.mxu0 %v5776_v45  ;;  %4192 = vmatpush3.msra.mxu1 %v5292_v52  ;;  %v5796_v52 = vld [vmem:[#allocation4 + $0xb0] sm:$0xff] }
 0x457   :  { %1319 = vmatprep.subr.mxu0 %v5780_v63  ;;  %4193 = vmatprep.subr.mxu1 %v7127_v0 }
 0x458   :  { %1320 = vmatpush1.msra.mxu0 %v5784_v7  ;;  %4194 = vmatpush3.msra.mxu1 %v5299_v53  ;;  %v5804_v53 = vld [vmem:[#allocation4 + $0x98] sm:$0xff] }
 0x459   :  { %1321 = vmatprep.subr.mxu0 %v5788_v51  ;;  %4195 = vmatprep.subr.mxu1 %v7127_v0 }
 0x45a   :  { %1322 = vmatpush1.msra.mxu0 %v5792_v9  ;;  %4196 = vmatpush3.msra.mxu1 %v5307_v54  ;;  %v5812_v54 = vld [vmem:[#allocation4 + $0x80] sm:$0xff] }
 0x45b   :  { %1323 = vmatprep.subr.mxu0 %v5796_v52  ;;  %4197 = vmatprep.subr.mxu1 %v7127_v0 }
 0x45c   :  { %1324 = vmatpush1.msra.mxu0 %v5800_v11  ;;  %4198 = vmatpush3.msra.mxu1 %v5313_v55  ;;  %v5820_v55 = vld [vmem:[#allocation4 + $0x68] sm:$0xff] }
 0x45d   :  { %1325 = vmatprep.subr.mxu0 %v5804_v53  ;;  %4199 = vmatprep.subr.mxu1 %v7127_v0 }
 0x45e   :  { %1326 = vmatpush1.msra.mxu0 %v5808_v14  ;;  %4200 = vmatpush3.msra.mxu1 %v5320_v56  ;;  %v5828_v56 = vld [vmem:[#allocation4 + $0x50] sm:$0xff] }
 0x45f   :  { %1327 = vmatprep.subr.mxu0 %v5812_v54  ;;  %4201 = vmatprep.subr.mxu1 %v7127_v0 }
 0x460   :  { %1328 = vmatpush1.msra.mxu0 %v5816_v16  ;;  %4202 = vmatpush3.msra.mxu1 %v5326_v57  ;;  %v5836_v57 = vld [vmem:[#allocation4 + $0x38] sm:$0xff] }
 0x461   :  { %1329 = vmatprep.subr.mxu0 %v5820_v55  ;;  %4203 = vmatprep.subr.mxu1 %v7127_v0 }
 0x462   :  { %1330 = vmatpush1.msra.mxu0 %v5824_v18  ;;  %4204 = vmatpush3.msra.mxu1 %v5333_v58  ;;  %v5844_v58 = vld [vmem:[#allocation4 + $0x20] sm:$0xff] }
 0x463   :  { %1331 = vmatprep.subr.mxu0 %v5828_v56  ;;  %4205 = vmatprep.subr.mxu1 %v7127_v0 }
 0x464   :  { %1332 = vmatpush1.msra.mxu0 %v5832_v19  ;;  %4206 = vmatpush3.msra.mxu1 %v5339_v59  ;;  %v5852_v59 = vld [vmem:[#allocation4 + $0x8] sm:$0xff] }
 0x465   :  { %1333 = vmatprep.subr.mxu0 %v5836_v57  ;;  %4207 = vmatprep.subr.mxu1 %v7127_v0  ;;  %7162 = vst [vmem:[#allocation17_spill] sm:$0xff] %v5852_v59 }
 0x466   :  { %1334 = vmatpush1.msra.mxu0 %v5840_v22  ;;  %4208 = vmatpush3.msra.mxu1 %v5345_v60 }
 0x467   :  { %1335 = vmatprep.subr.mxu0 %v5844_v58  ;;  %4209 = vmatprep.subr.mxu1 %v7127_v0 }
 0x468   :  { %1336 = vmatpush1.msra.mxu0 %v5848_v23  ;;  %4210 = vmatpush3.msra.mxu1 %v7152_v8 }
 0x469   :  { %1337 = vmatprep.subr.mxu0 %v5852_v59  ;;  %4211 = vmatprep.subr.mxu1 %v7127_v0 }
 0x46a   :  { %1338 = vmatpush1.msra.mxu0 %v5856_v24  ;;  %1371 = vmatprep.mubr.f32.mxu0 %v7127_v0 }
 0x46b   :  { %4212 = vmatpush3.msra.mxu1 %v7155_v12  ;;  %4213 = vmatprep.mubr.msk.f32.mxu1 %vm5029_vm1, %v7127_v0  ;;  %v7165_v12 = vld [vmem:[#allocation34_spill] sm:$0xff] }
 0x46c   :  { %1476 = vmatprep.subr.mxu0 %v5713_v13  ;;  %4216 = vmatprep.subr.mxu1 %v7127_v0 }
 0x50b   :  { %v1204_v60 = vpop.f32.mrf.mxu0  ;;  %v1275_v8 = vpop.f32.mrf.mxu1 }
 0x50c   :  { %v1205_v26 = vadd.f32 %v1204_v60, %v7156_v17  ;;  %v1276_v41 = vadd.f32 %v1275_v8, %v5485_v38  ;;  %v5893_v8 = vld [vmem:[#allocation4 + $0x118] sm:$0xff] }
 0x50d   :  { %v4180_v28 = vpop.f32.mrf.mxu1  ;;  %v1206_v33 = vpop.f32.mrf.mxu0 }
 0x50e   :  { %v1279_v30 = vadd.f32 %v1205_v26, %v7164_v29  ;;  %v1207_v34 = vadd.f32 %v1206_v33, %v5471_v27  ;;  %v5905_v33 = vld [vmem:[#allocation4 + $0xe8] sm:$0xff] }
 0x510   :  { %v3642_v31 = vmul.f32 -1.442695, %v1279_v30  ;;  %v1280_v35 = vadd.f32 %v1207_v34, %v7165_v12  ;;  %v5911_v34 = vld [vmem:[#allocation4 + $0xd0] sm:$0xff]  ;;  %v5917_v12 = vld [vmem:[#allocation4 + $0xb8] sm:$0xff] }
 0x512   :  { %4696 = vpow2.f32 %v3642_v31  ;;  %v3643_v36 = vmul.f32 -1.442695, %v1280_v35  ;;  %v5899_v31 = vld [vmem:[#allocation4 + $0x100] sm:$0xff] }
 0x513   :  { %v5923_v35 = vld [vmem:[#allocation4 + $0xa0] sm:$0xff] }
 0x514   :  { %4698 = vpow2.f32 %v3643_v36  ;;  %v5929_v36 = vld [vmem:[#allocation4 + $0x88] sm:$0xff] }
 0x51f   :  { %v4697_v37 = vpop.eup %4696 }
 0x520   :  { %v1287_v39 = vadd.f32 1.0, %v4697_v37  ;;  %v5935_v37 = vld [vmem:[#allocation4 + $0x70] sm:$0xff] }
 0x521   :  { %v4699_v40 = vpop.eup %4698 }
 0x522   :  { %4700 = vrcp.f32 %v1287_v39  ;;  %v1288_v20 = vadd.f32 1.0, %v4699_v40  ;;  %v5941_v39 = vld [vmem:[#allocation4 + $0x58] sm:$0xff]  ;;  %v5947_v40 = vld [vmem:[#allocation4 + $0x40] sm:$0xff] }
 0x52f   :  { %v4701_v42 = vpop.eup %4700 }
 0x530   :  { %v1293_v43 = vmul.f32 %v4701_v42, %v1276_v41  ;;  %v5953_v41 = vld [vmem:[#allocation4 + $0x28] sm:$0xff]  ;;  %v5960_v42 = vld [vmem:[#allocation4 + $0x10] sm:$0xff] }
 0x531   :  { %7167 = vst [vmem:[#allocation29_spill] sm:$0xff] %v5953_v41  ;;  %7168 = vst [vmem:[#allocation44_spill] sm:$0xff] %v5960_v42 }
 0x532   :  { %v1294_v50 = vadd.f32 %v1293_v43, %v7166_v48 }
 0x534   :  { %4702 = vtanh.f32 %v1294_v50 }
 0x535   :  { %4704 = vrcp.f32 %v1288_v20 }
 0x541   :  { %v4703_v60 = vpop.eup %4702 }
 0x542   :  { %v1296_v26 = vsub.f32 %v5724_v1, %v4703_v60  ;;  %v4705_v28 = vpop.eup %4704 }
 0x544   :  { %v1297_v29 = vmul.f32 %v4705_v28, %v1296_v26 }
 0x546   :  { %v5872_v30 = vadd.f32 %v4703_v60, %v1297_v29  ;;  %v7169_v60 = vld [vmem:[#allocation36_spill] sm:$0xff] }
 0x548   :  { %1372 = vmatmul.mubr.f32.vlgmr.msra.gmra.mxu0 %v5872_v30  ;;  %4214 = vmatmul.mubr.f32.vlgmr.msra.gmra.mxu1 %v5872_v30 }
 0x549   :  { %1477 = vmatpush1.msra.mxu0 %v5728_v47  ;;  %4217 = vmatpush3.msra.mxu1 %v5731_v46 }
 0x54a   :  { %1478 = vmatprep.subr.mxu0 %v5734_v49  ;;  %4218 = vmatprep.subr.mxu1 %v7127_v0 }
 0x54b   :  { %1479 = vmatpush1.msra.mxu0 %v5738_v61  ;;  %4219 = vmatpush3.msra.mxu1 %v5741_v10 }
 0x54c   :  { %1480 = vmatprep.subr.mxu0 %v5744_v21  ;;  %4220 = vmatprep.subr.mxu1 %v7127_v0 }
 0x54d   :  { %1481 = vmatpush1.msra.mxu0 %v5748_v32  ;;  %4221 = vmatpush3.msra.mxu1 %v5751_v62 }
 0x54e   :  { %1482 = vmatprep.subr.mxu0 %v5754_v44  ;;  %4222 = vmatprep.subr.mxu1 %v7127_v0 }
 0x54f   :  { %1483 = vmatpush1.msra.mxu0 %v5758_v2  ;;  %4223 = vmatpush3.msra.mxu1 %v5761_v4 }
 0x550   :  { %1484 = vmatprep.subr.mxu0 %v5764_v25  ;;  %4224 = vmatprep.subr.mxu1 %v7127_v0 }
 0x551   :  { %1485 = vmatpush1.msra.mxu0 %v5768_v15  ;;  %4225 = vmatpush3.msra.mxu1 %v5893_v8 }
 0x552   :  { %1486 = vmatprep.subr.mxu0 %v5772_v6  ;;  %4226 = vmatprep.subr.mxu1 %v7127_v0 }
 0x553   :  { %1487 = vmatpush1.msra.mxu0 %v5776_v45  ;;  %4227 = vmatpush3.msra.mxu1 %v5899_v31 }
 0x554   :  { %1488 = vmatprep.subr.mxu0 %v5780_v63  ;;  %4228 = vmatprep.subr.mxu1 %v7127_v0 }
 0x555   :  { %1489 = vmatpush1.msra.mxu0 %v5784_v7  ;;  %4229 = vmatpush3.msra.mxu1 %v5905_v33 }
 0x556   :  { %1490 = vmatprep.subr.mxu0 %v5788_v51  ;;  %4230 = vmatprep.subr.mxu1 %v7127_v0 }
 0x557   :  { %1491 = vmatpush1.msra.mxu0 %v5792_v9  ;;  %4231 = vmatpush3.msra.mxu1 %v5911_v34 }
 0x558   :  { %1492 = vmatprep.subr.mxu0 %v5796_v52  ;;  %4232 = vmatprep.subr.mxu1 %v7127_v0 }
 0x559   :  { %1493 = vmatpush1.msra.mxu0 %v5800_v11  ;;  %4233 = vmatpush3.msra.mxu1 %v5917_v12 }
 0x55a   :  { %1494 = vmatprep.subr.mxu0 %v5804_v53  ;;  %4234 = vmatprep.subr.mxu1 %v7127_v0 }
 0x55b   :  { %1495 = vmatpush1.msra.mxu0 %v5808_v14  ;;  %4235 = vmatpush3.msra.mxu1 %v5923_v35 }
 0x55c   :  { %1496 = vmatprep.subr.mxu0 %v5812_v54  ;;  %4236 = vmatprep.subr.mxu1 %v7127_v0 }
 0x55d   :  { %1497 = vmatpush1.msra.mxu0 %v5816_v16  ;;  %4237 = vmatpush3.msra.mxu1 %v5929_v36 }
 0x55e   :  { %1498 = vmatprep.subr.mxu0 %v5820_v55  ;;  %4238 = vmatprep.subr.mxu1 %v7127_v0 }
 0x55f   :  { %1499 = vmatpush1.msra.mxu0 %v5824_v18  ;;  %4239 = vmatpush3.msra.mxu1 %v5935_v37 }
 0x560   :  { %1500 = vmatprep.subr.mxu0 %v5828_v56  ;;  %4240 = vmatprep.subr.mxu1 %v7127_v0 }
 0x561   :  { %1501 = vmatpush1.msra.mxu0 %v5832_v19  ;;  %4241 = vmatpush3.msra.mxu1 %v5941_v39 }
 0x562   :  { %1502 = vmatprep.subr.mxu0 %v5836_v57  ;;  %4242 = vmatprep.subr.mxu1 %v7127_v0 }
 0x563   :  { %1503 = vmatpush1.msra.mxu0 %v5840_v22  ;;  %4243 = vmatpush3.msra.mxu1 %v5947_v40 }
 0x564   :  { %1504 = vmatprep.subr.mxu0 %v5844_v58  ;;  %4244 = vmatprep.subr.mxu1 %v7127_v0 }
 0x565   :  { %1505 = vmatpush1.msra.mxu0 %v5848_v23  ;;  %4245 = vmatpush3.msra.mxu1 %v5953_v41 }
 0x566   :  { %1506 = vmatprep.subr.mxu0 %v5852_v59  ;;  %4246 = vmatprep.subr.mxu1 %v7127_v0 }
 0x567   :  { %1507 = vmatpush1.msra.mxu0 %v5856_v24  ;;  %1540 = vmatprep.mubr.f32.mxu0 %v7127_v0 }
 0x568   :  { %4247 = vmatpush3.msra.mxu1 %v5960_v42  ;;  %4248 = vmatprep.mubr.msk.f32.mxu1 %vm5029_vm1, %v7127_v0 }
 0x569   :  { %1645 = vmatprep.subr.mxu0 %v5713_v13  ;;  %4251 = vmatprep.subr.mxu1 %v7127_v0 }
 0x608   :  { %v1373_v43 = vpop.f32.mrf.mxu0  ;;  %v1444_v48 = vpop.f32.mrf.mxu1 }
 0x609   :  { %v1374_v50 = vadd.f32 %v1373_v43, %v7156_v17  ;;  %v1445_v41 = vadd.f32 %v1444_v48, %v5485_v38  ;;  %v1840_v48 = vld [vmem:[#allocation7 + $0x100] sm:$0xff] }
 0x60a   :  { %v4215_v20 = vpop.f32.mrf.mxu1  ;;  %v1375_v29 = vpop.f32.mrf.mxu0 }
 0x60b   :  { %v1448_v26 = vadd.f32 %v1374_v50, %v7169_v60  ;;  %v1376_v1 = vadd.f32 %v1375_v29, %v5471_v27  ;;  %v7171_v20 = vld [vmem:[#allocation45_spill] sm:$0xff]  ;;  %v1838_v29 = vld [vmem:[#allocation7 + $0xf0] sm:$0xff] }
 0x60d   :  { %v3644_v28 = vmul.f32 -1.442695, %v1448_v26  ;;  %v1449_v5 = vadd.f32 %v1376_v1, %v7170_v3  ;;  %v7173_v1 = vld [vmem:[#allocation29_spill] sm:$0xff] }
 0x60f   :  { %4706 = vpow2.f32 %v3644_v28  ;;  %v3645_v42 = vmul.f32 -1.442695, %v1449_v5 }
 0x611   :  { %4708 = vpow2.f32 %v3645_v42  ;;  %v1839_v42 = vld [vmem:[#allocation7 + $0xf8] sm:$0xff] }
 0x61c   :  { %v4707_v24 = vpop.eup %4706 }
 0x61d   :  { %v1456_v59 = vadd.f32 1.0, %v4707_v24  ;;  %v1852_v24 = vld [vmem:[#allocation7 + $0x160] sm:$0xff] }
 0x61e   :  { %v4709_v13 = vpop.eup %4708 }
 0x61f   :  { %4710 = vrcp.f32 %v1456_v59  ;;  %v1457_v50 = vadd.f32 1.0, %v4709_v13  ;;  %v1851_v59 = vld [vmem:[#allocation7 + $0x158] sm:$0xff]  ;;  %v1836_v13 = vld [vmem:[#allocation7 + $0xe0] sm:$0xff] }
 0x62c   :  { %v4711_v23 = vpop.eup %4710 }
 0x62d   :  { %v1462_v43 = vmul.f32 %v4711_v23, %v1445_v41  ;;  %v1853_v23 = vld [vmem:[#allocation7 + $0x168] sm:$0xff] }
 0x62e   :  { %v1841_v41 = vld [vmem:[#allocation7 + $0x108] sm:$0xff] }
 0x62f   :  { %v1463_v17 = vadd.f32 %v1462_v43, %v7171_v20  ;;  %v1837_v43 = vld [vmem:[#allocation7 + $0xe8] sm:$0xff]  ;;  %v1835_v20 = vld [vmem:[#allocation7 + $0xd8] sm:$0xff] }
 0x631   :  { %4712 = vtanh.f32 %v1463_v17  ;;  %v7172_v17 = vld [vmem:[#allocation35_spill] sm:$0xff] }
 0x632   :  { %4714 = vrcp.f32 %v1457_v50  ;;  %v1833_v50 = vld [vmem:[#allocation7 + $0xc8] sm:$0xff] }
 0x63e   :  { %v4713_v60 = vpop.eup %4712 }
 0x63f   :  { %v1465_v26 = vsub.f32 %v5872_v30, %v4713_v60  ;;  %v4715_v28 = vpop.eup %4714 }
 0x641   :  { %v1466_v3 = vmul.f32 %v4715_v28, %v1465_v26  ;;  %v1832_v26 = vld [vmem:[#allocation7 + $0xc0] sm:$0xff]  ;;  %v1830_v28 = vld [vmem:[#allocation7 + $0xb0] sm:$0xff] }
 0x643   :  { %v5974_v5 = vadd.f32 %v4713_v60, %v1466_v3  ;;  %v1834_v60 = vld [vmem:[#allocation7 + $0xd0] sm:$0xff]  ;;  %v1831_v3 = vld [vmem:[#allocation7 + $0xb8] sm:$0xff] }
 0x645   :  { %1541 = vmatmul.mubr.f32.vlgmr.msra.gmra.mxu0 %v5974_v5  ;;  %4249 = vmatmul.mubr.f32.vlgmr.msra.gmra.mxu1 %v5974_v5 }
 0x646   :  { %1646 = vmatpush1.msra.mxu0 %v5728_v47  ;;  %4252 = vmatpush3.msra.mxu1 %v5731_v46  ;;  %v7174_v47 = vld [vmem:[#allocation17_spill] sm:$0xff]  ;;  %v7175_v46 = vld [vmem:[#allocation28_spill] sm:$0xff] }
 0x647   :  { %1647 = vmatprep.subr.mxu0 %v5734_v49  ;;  %4253 = vmatprep.subr.mxu1 %v7127_v0  ;;  %v7176_v49 = vld [vmem:[#allocation44_spill] sm:$0xff] }
 0x648   :  { %1648 = vmatpush1.msra.mxu0 %v5738_v61  ;;  %4254 = vmatpush3.msra.mxu1 %v5741_v10  ;;  %v1854_v61 = vld [vmem:[#allocation7 + $0x170] sm:$0xff]  ;;  %v1855_v10 = vld [vmem:[#allocation7 + $0x178] sm:$0xff] }
 0x649   :  { %1649 = vmatprep.subr.mxu0 %v5744_v21  ;;  %4255 = vmatprep.subr.mxu1 %v7127_v0 }
 0x64a   :  { %1650 = vmatpush1.msra.mxu0 %v5748_v32  ;;  %4256 = vmatpush3.msra.mxu1 %v5751_v62  ;;  %v7177_v62 = vld [vmem:[#allocation41_spill] sm:$0xff] }
 0x64b   :  { %1651 = vmatprep.subr.mxu0 %v5754_v44  ;;  %4257 = vmatprep.subr.mxu1 %v7127_v0 }
 0x64c   :  { %1652 = vmatpush1.msra.mxu0 %v5758_v2  ;;  %4258 = vmatpush3.msra.mxu1 %v5761_v4  ;;  %v7178_v4 = vld [vmem:[#allocation38_spill] sm:$0xff] }
 0x64d   :  { %1653 = vmatprep.subr.mxu0 %v5764_v25  ;;  %4259 = vmatprep.subr.mxu1 %v7127_v0 }
 0x64e   :  { %1654 = vmatpush1.msra.mxu0 %v5768_v15  ;;  %4260 = vmatpush3.msra.mxu1 %v5893_v8  ;;  %v1850_v8 = vld [vmem:[#allocation7 + $0x150] sm:$0xff] }
 0x64f   :  { %1655 = vmatprep.subr.mxu0 %v5772_v6  ;;  %4261 = vmatprep.subr.mxu1 %v7127_v0 }
 0x650   :  { %1656 = vmatpush1.msra.mxu0 %v5776_v45  ;;  %4262 = vmatpush3.msra.mxu1 %v5899_v31  ;;  %v1848_v31 = vld [vmem:[#allocation7 + $0x140] sm:$0xff] }
 0x651   :  { %1657 = vmatprep.subr.mxu0 %v5780_v63  ;;  %4263 = vmatprep.subr.mxu1 %v7127_v0  ;;  %v7179_v63 = vld [vmem:[#allocation39_spill] sm:$0xff] }
 0x652   :  { %1658 = vmatpush1.msra.mxu0 %v5784_v7  ;;  %4264 = vmatpush3.msra.mxu1 %v5905_v33  ;;  %v1849_v33 = vld [vmem:[#allocation7 + $0x148] sm:$0xff] }
 0x653   :  { %1659 = vmatprep.subr.mxu0 %v5788_v51  ;;  %4265 = vmatprep.subr.mxu1 %v7127_v0 }
 0x654   :  { %1660 = vmatpush1.msra.mxu0 %v5792_v9  ;;  %4266 = vmatpush3.msra.mxu1 %v5911_v34  ;;  %v1847_v34 = vld [vmem:[#allocation7 + $0x138] sm:$0xff] }
 0x655   :  { %1661 = vmatprep.subr.mxu0 %v5796_v52  ;;  %4267 = vmatprep.subr.mxu1 %v7127_v0 }
 0x656   :  { %1662 = vmatpush1.msra.mxu0 %v5800_v11  ;;  %4268 = vmatpush3.msra.mxu1 %v5917_v12  ;;  %v7181_v12 = vld [vmem:[#allocation49_spill] sm:$0xff] }
 0x657   :  { %1663 = vmatprep.subr.mxu0 %v5804_v53  ;;  %4269 = vmatprep.subr.mxu1 %v7127_v0 }
 0x658   :  { %1664 = vmatpush1.msra.mxu0 %v5808_v14  ;;  %4270 = vmatpush3.msra.mxu1 %v5923_v35  ;;  %v1845_v35 = vld [vmem:[#allocation7 + $0x128] sm:$0xff] }
 0x659   :  { %1665 = vmatprep.subr.mxu0 %v5812_v54  ;;  %4271 = vmatprep.subr.mxu1 %v7127_v0 }
 0x65a   :  { %1666 = vmatpush1.msra.mxu0 %v5816_v16  ;;  %4272 = vmatpush3.msra.mxu1 %v5929_v36  ;;  %v7180_v16 = vld [vmem:[#allocation48_spill] sm:$0xff]  ;;  %v1846_v36 = vld [vmem:[#allocation7 + $0x130] sm:$0xff] }
 0x65b   :  { %1667 = vmatprep.subr.mxu0 %v5820_v55  ;;  %4273 = vmatprep.subr.mxu1 %v7127_v0 }
 0x65c   :  { %1668 = vmatpush1.msra.mxu0 %v5824_v18  ;;  %4274 = vmatpush3.msra.mxu1 %v5935_v37  ;;  %v1844_v37 = vld [vmem:[#allocation7 + $0x120] sm:$0xff] }
 0x65d   :  { %1669 = vmatprep.subr.mxu0 %v5828_v56  ;;  %4275 = vmatprep.subr.mxu1 %v7127_v0 }
 0x65e   :  { %1670 = vmatpush1.msra.mxu0 %v5832_v19  ;;  %4276 = vmatpush3.msra.mxu1 %v5941_v39  ;;  %v1842_v39 = vld [vmem:[#allocation7 + $0x110] sm:$0xff] }
 0x65f   :  { %1671 = vmatprep.subr.mxu0 %v5836_v57  ;;  %4277 = vmatprep.subr.mxu1 %v7127_v0 }
 0x660   :  { %1672 = vmatpush1.msra.mxu0 %v5840_v22  ;;  %4278 = vmatpush3.msra.mxu1 %v5947_v40  ;;  %v1843_v40 = vld [vmem:[#allocation7 + $0x118] sm:$0xff] }
 0x661   :  { %1673 = vmatprep.subr.mxu0 %v5844_v58  ;;  %4279 = vmatprep.subr.mxu1 %v7127_v0 }
 0x662   :  { %1674 = vmatpush1.msra.mxu0 %v7172_v17  ;;  %4280 = vmatpush3.msra.mxu1 %v7173_v1  ;;  %v1829_v17 = vld [vmem:[#allocation7 + $0xa8] sm:$0xff]  ;;  %v1827_v1 = vld [vmem:[#allocation7 + $0x98] sm:$0xff] }
 0x663   :  { %1675 = vmatprep.subr.mxu0 %v7174_v47  ;;  %4281 = vmatprep.subr.mxu1 %v7127_v0  ;;  %v1828_v47 = vld [vmem:[#allocation7 + $0xa0] sm:$0xff] }
 0x664   :  { %1676 = vmatpush1.msra.mxu0 %v7175_v46  ;;  %4282 = vmatpush3.msra.mxu1 %v7176_v49  ;;  %v1826_v46 = vld [vmem:[#allocation7 + $0x90] sm:$0xff]  ;;  %v1824_v49 = vld [vmem:[#allocation7 + $0x80] sm:$0xff] }
 0x665   :  { %1709 = vmatprep.mubr.f32.mxu0 %v7127_v0  ;;  %4283 = vmatprep.mubr.msk.f32.mxu1 %vm5029_vm1, %v7127_v0 }
 0x666   :  { %1946 = vmatprep.subr.mxu0 %v1854_v61  ;;  %4286 = vmatprep.subr.mxu1 %v1855_v10  ;;  %v1825_v61 = vld [vmem:[#allocation7 + $0x88] sm:$0xff] }
 0x705   :  { %v1542_v21 = vpop.f32.mrf.mxu0  ;;  %v1613_v32 = vpop.f32.mrf.mxu1 }
 0x706   :  { %v1543_v44 = vadd.f32 %v1542_v21, %v7177_v62  ;;  %v1614_v53 = vadd.f32 %v1613_v32, %v5485_v38  ;;  %v1821_v21 = vld [vmem:[#allocation7 + $0x68] sm:$0xff]  ;;  %v1822_v32 = vld [vmem:[#allocation7 + $0x70] sm:$0xff] }
 0x707   :  { %v4250_v2 = vpop.f32.mrf.mxu1  ;;  %v1544_v6 = vpop.f32.mrf.mxu0 }
 0x708   :  { %v1617_v25 = vadd.f32 %v1543_v44, %v7178_v4  ;;  %v1545_v45 = vadd.f32 %v1544_v6, %v5471_v27  ;;  %v1820_v44 = vld [vmem:[#allocation7 + $0x60] sm:$0xff]  ;;  %v1818_v2 = vld [vmem:[#allocation7 + $0x50] sm:$0xff]  ;;  %v1819_v4 = vld [vmem:[#allocation7 + $0x58] sm:$0xff] }
 0x709   :  { %v1816_v6 = vld [vmem:[#allocation7 + $0x40] sm:$0xff] }
 0x70a   :  { %v3646_v15 = vmul.f32 -1.442695, %v1617_v25  ;;  %v1618_v7 = vadd.f32 %v1545_v45, %v7179_v63  ;;  %v1817_v25 = vld [vmem:[#allocation7 + $0x48] sm:$0xff]  ;;  %v1814_v45 = vld [vmem:[#allocation7 + $0x30] sm:$0xff]  ;;  %v1812_v63 = vld [vmem:[#allocation7 + $0x20] sm:$0xff] }
 0x70c   :  { %4716 = vpow2.f32 %v3646_v15  ;;  %v3647_v51 = vmul.f32 -1.442695, %v1618_v7  ;;  %v1815_v15 = vld [vmem:[#allocation7 + $0x38] sm:$0xff]  ;;  %v1813_v7 = vld [vmem:[#allocation7 + $0x28] sm:$0xff] }
 0x70e   :  { %4718 = vpow2.f32 %v3647_v51  ;;  %v1811_v51 = vld [vmem:[#allocation7 + $0x18] sm:$0xff] }
 0x719   :  { %v4717_v9 = vpop.eup %4716 }
 0x71a   :  { %v1625_v52 = vadd.f32 1.0, %v4717_v9  ;;  %v1809_v9 = vld [vmem:[#allocation7 + $0x8] sm:$0xff] }
 0x71b   :  { %v4719_v11 = vpop.eup %4718 }
 0x71c   :  { %4720 = vrcp.f32 %v1625_v52  ;;  %v1626_v18 = vadd.f32 1.0, %v4719_v11  ;;  %v1810_v52 = vld [vmem:[#allocation7 + $0x10] sm:$0xff]  ;;  %v1808_v11 = vld [vmem:[#allocation7] sm:$0xff] }
 0x729   :  { %v4721_v14 = vpop.eup %4720 }
 0x72a   :  { %v1631_v54 = vmul.f32 %v4721_v14, %v1614_v53  ;;  %v7182_v53 = vld [vmem:[#allocation18_spill] sm:$0xff] }
 0x72b   :  { %v7183_v14 = vld [vmem:[#allocation26_spill] sm:$0xff] }
 0x72c   :  { %v1632_v55 = vadd.f32 %v1631_v54, %v7180_v16  ;;  %v7184_v54 = vld [vmem:[#allocation27_spill] sm:$0xff]  ;;  %v6077_v16 = vld [vmem:[#allocation9 + $0x170] sm:$0xff] }
 0x72d   :  { %7185 = vst [vmem:[#allocation19_spill] sm:$0xff] %v6077_v16 }
 0x72e   :  { %4722 = vtanh.f32 %v1632_v55  ;;  %v6080_v55 = vld [vmem:[#allocation9 + $0x168] sm:$0xff] }
 0x72f   :  { %4724 = vrcp.f32 %v1626_v18  ;;  %v6083_v18 = vld [vmem:[#allocation9 + $0x158] sm:$0xff] }
 0x73b   :  { %v4723_v56 = vpop.eup %4722 }
 0x73c   :  { %v1634_v19 = vsub.f32 %v5974_v5, %v4723_v56  ;;  %v4725_v57 = vpop.eup %4724 }
 0x73e   :  { %v1635_v22 = vmul.f32 %v4725_v57, %v1634_v19  ;;  %v6095_v19 = vld [vmem:[#allocation9 + $0x128] sm:$0xff]  ;;  %v6098_v57 = vld [vmem:[#allocation9 + $0x120] sm:$0xff] }
 0x740   :  { %v6050_v58 = vadd.f32 %v4723_v56, %v1635_v22  ;;  %v6092_v56 = vld [vmem:[#allocation9 + $0x138] sm:$0xff]  ;;  %v6101_v22 = vld [vmem:[#allocation9 + $0x110] sm:$0xff] }
 0x742   :  { %1710 = vmatmul.mubr.f32.vlgmr.msra.gmra.mxu0 %v6050_v58  ;;  %4284 = vmatmul.mubr.f32.vlgmr.msra.gmra.mxu1 %v6050_v58 }
 0x743   :  { %1947 = vmatpush1.msra.mxu0 %v1853_v23  ;;  %4287 = vmatpush3.msra.mxu1 %v1855_v10  ;;  %v1823_v10 = vld [vmem:[#allocation7 + $0x78] sm:$0xff]  ;;  %v6104_v23 = vld [vmem:[#allocation9 + $0x108] sm:$0xff] }
 0x744   :  { %1948 = vmatprep.subr.mxu0 %v1851_v59  ;;  %4288 = vmatprep.subr.mxu1 %v1852_v24  ;;  %v6107_v59 = vld [vmem:[#allocation9 + $0xf8] sm:$0xff] }
 0x745   :  { %4318 = vmatprep.mubr.f32.mxu1 %v7181_v12  ;;  %1949 = vmatpush1.msra.mxu0 %v1850_v8  ;;  %v6113_v8 = vld [vmem:[#allocation9 + $0xe0] sm:$0xff] }
 0x746   :  { %4289 = vmatpush3.msra.mxu1 %v1852_v24  ;;  %1950 = vmatprep.subr.mxu0 %v1848_v31  ;;  %v6110_v24 = vld [vmem:[#allocation9 + $0xf0] sm:$0xff]  ;;  %v6116_v31 = vld [vmem:[#allocation9 + $0xd8] sm:$0xff] }
 0x747   :  { %4290 = vmatprep.subr.mxu1 %v1849_v33  ;;  %1951 = vmatpush1.msra.mxu0 %v1847_v34  ;;  %v6122_v34 = vld [vmem:[#allocation9 + $0xc0] sm:$0xff] }
 0x748   :  { %4291 = vmatpush3.msra.mxu1 %v1849_v33  ;;  %1952 = vmatprep.subr.mxu0 %v1845_v35  ;;  %v6119_v33 = vld [vmem:[#allocation9 + $0xc8] sm:$0xff] }
 0x749   :  { %4292 = vmatprep.subr.mxu1 %v1846_v36  ;;  %1953 = vmatpush1.msra.mxu0 %v1844_v37  ;;  %v6128_v35 = vld [vmem:[#allocation9 + $0xa8] sm:$0xff]  ;;  %v6134_v37 = vld [vmem:[#allocation9 + $0x90] sm:$0xff] }
 0x74a   :  { %4293 = vmatpush3.msra.mxu1 %v1846_v36  ;;  %1954 = vmatprep.subr.mxu0 %v1842_v39  ;;  %v6131_v36 = vld [vmem:[#allocation9 + $0x98] sm:$0xff]  ;;  %v6137_v39 = vld [vmem:[#allocation9 + $0x80] sm:$0xff] }
 0x74b   :  { %4294 = vmatprep.subr.mxu1 %v1843_v40  ;;  %1955 = vmatpush1.msra.mxu0 %v1841_v41  ;;  %v6143_v41 = vld [vmem:[#allocation9 + $0x68] sm:$0xff] }
 0x74c   :  { %4295 = vmatpush3.msra.mxu1 %v1843_v40  ;;  %1956 = vmatprep.subr.mxu0 %v1839_v42  ;;  %v6140_v40 = vld [vmem:[#allocation9 + $0x78] sm:$0xff]  ;;  %v6146_v42 = vld [vmem:[#allocation9 + $0x60] sm:$0xff] }
 0x74d   :  { %4296 = vmatprep.subr.mxu1 %v1840_v48  ;;  %1957 = vmatpush1.msra.mxu0 %v1838_v29  ;;  %v6152_v29 = vld [vmem:[#allocation9 + $0x48] sm:$0xff] }
 0x74e   :  { %4297 = vmatpush3.msra.mxu1 %v1840_v48  ;;  %1958 = vmatprep.subr.mxu0 %v1836_v13  ;;  %v6149_v48 = vld [vmem:[#allocation9 + $0x50] sm:$0xff]  ;;  %v6155_v13 = vld [vmem:[#allocation9 + $0x38] sm:$0xff] }
 0x74f   :  { %4298 = vmatprep.subr.mxu1 %v1837_v43  ;;  %1959 = vmatpush1.msra.mxu0 %v1835_v20  ;;  %v6160_v20 = vld [vmem:[#allocation9 + $0x20] sm:$0xff] }
 0x750   :  { %4299 = vmatpush3.msra.mxu1 %v1837_v43  ;;  %1960 = vmatprep.subr.mxu0 %v1833_v50  ;;  %v6157_v43 = vld [vmem:[#allocation9 + $0x30] sm:$0xff]  ;;  %7187 = vst [vmem:[#allocation20_spill] sm:$0xff] %v6160_v20  ;;  %v6162_v50 = vld [vmem:[#allocation9 + $0x18] sm:$0xff] }
 0x751   :  { %4300 = vmatprep.subr.mxu1 %v1834_v60  ;;  %1961 = vmatpush1.msra.mxu0 %v1832_v26  ;;  %7186 = vst [vmem:[#allocation22_spill] sm:$0xff] %v6157_v43  ;;  %7188 = vst [vmem:[#allocation21_spill] sm:$0xff] %v6162_v50  ;;  %v6168_v26 = vld [vmem:[#allocation9] sm:$0xff] }
 0x752   :  { %4301 = vmatpush3.msra.mxu1 %v1834_v60  ;;  %1962 = vmatprep.subr.mxu0 %v1830_v28  ;;  %v6165_v60 = vld [vmem:[#allocation9 + $0x8] sm:$0xff]  ;;  %7190 = vst [vmem:[#allocation31_spill] sm:$0xff] %v6168_v26  ;;  %v6172_v28 = vld [vmem:[#allocation9 + $0x178] sm:$0xff] }
 0x753   :  { %4302 = vmatprep.subr.mxu1 %v1831_v3  ;;  %1963 = vmatpush1.msra.mxu0 %v1829_v17  ;;  %7189 = vst [vmem:[#allocation23_spill] sm:$0xff] %v6165_v60  ;;  %v6179_v17 = vld [vmem:[#allocation9 + $0x148] sm:$0xff] }
 0x754   :  { %4303 = vmatpush3.msra.mxu1 %v1831_v3  ;;  %1964 = vmatprep.subr.mxu0 %v1827_v1  ;;  %v6174_v3 = vld [vmem:[#allocation9 + $0x160] sm:$0xff]  ;;  %v6184_v1 = vld [vmem:[#allocation9 + $0x130] sm:$0xff] }
 0x755   :  { %4304 = vmatprep.subr.mxu1 %v1828_v47  ;;  %1965 = vmatpush1.msra.mxu0 %v1826_v46  ;;  %v6192_v46 = vld [vmem:[#allocation9 + $0x100] sm:$0xff] }
 0x756   :  { %4305 = vmatpush3.msra.mxu1 %v1828_v47  ;;  %1966 = vmatprep.subr.mxu0 %v1824_v49  ;;  %v6188_v47 = vld [vmem:[#allocation9 + $0x118] sm:$0xff]  ;;  %v6196_v49 = vld [vmem:[#allocation9 + $0xe8] sm:$0xff] }
 0x757   :  { %4306 = vmatprep.subr.mxu1 %v1825_v61  ;;  %1967 = vmatpush1.msra.mxu0 %v1823_v10  ;;  %v6204_v10 = vld [vmem:[#allocation9 + $0xb8] sm:$0xff] }
 0x758   :  { %4307 = vmatpush3.msra.mxu1 %v1825_v61  ;;  %1968 = vmatprep.subr.mxu0 %v1821_v21  ;;  %v6200_v61 = vld [vmem:[#allocation9 + $0xd0] sm:$0xff]  ;;  %v6208_v21 = vld [vmem:[#allocation9 + $0xa0] sm:$0xff] }
 0x759   :  { %4308 = vmatprep.subr.mxu1 %v1822_v32  ;;  %1969 = vmatpush1.msra.mxu0 %v1820_v44  ;;  %v6216_v44 = vld [vmem:[#allocation9 + $0x70] sm:$0xff] }
 0x75a   :  { %4309 = vmatpush3.msra.mxu1 %v1822_v32  ;;  %1970 = vmatprep.subr.mxu0 %v1818_v2  ;;  %v6212_v32 = vld [vmem:[#allocation9 + $0x88] sm:$0xff]  ;;  %v6220_v2 = vld [vmem:[#allocation9 + $0x58] sm:$0xff] }
 0x75b   :  { %4310 = vmatprep.subr.mxu1 %v1819_v4  ;;  %1971 = vmatpush1.msra.mxu0 %v1817_v25  ;;  %v6228_v25 = vld [vmem:[#allocation9 + $0x28] sm:$0xff] }
 0x75c   :  { %4311 = vmatpush3.msra.mxu1 %v1819_v4  ;;  %1972 = vmatprep.subr.mxu0 %v1815_v15  ;;  %v6224_v4 = vld [vmem:[#allocation9 + $0x40] sm:$0xff]  ;;  %7192 = vst [vmem:[#allocation43_spill] sm:$0xff] %v6228_v25  ;;  %v6232_v15 = vld [vmem:[#allocation9 + $0x10] sm:$0xff] }
 0x75d   :  { %4312 = vmatprep.subr.mxu1 %v1816_v6  ;;  %1973 = vmatpush1.msra.mxu0 %v1814_v45  ;;  %7191 = vst [vmem:[#allocation32_spill] sm:$0xff] %v6224_v4  ;;  %7193 = vst [vmem:[#allocation33_spill] sm:$0xff] %v6232_v15 }
 0x75e   :  { %4313 = vmatpush3.msra.mxu1 %v1816_v6  ;;  %1974 = vmatprep.subr.mxu0 %v1812_v63 }
 0x75f   :  { %4314 = vmatprep.subr.mxu1 %v1813_v7  ;;  %1975 = vmatpush1.msra.mxu0 %v1811_v51  ;;  %v7194_v51 = vld [vmem:[#allocation40_spill] sm:$0xff] }
 0x760   :  { %4315 = vmatpush3.msra.mxu1 %v1813_v7  ;;  %1976 = vmatprep.subr.mxu0 %v1809_v9 }
 0x761   :  { %4316 = vmatprep.subr.mxu1 %v1810_v52  ;;  %1977 = vmatpush1.msra.mxu0 %v1808_v11 }
 0x762   :  { %2010 = vmatprep.mubr.f32.mxu0 %v7127_v0  ;;  %4317 = vmatpush3.msra.mxu1 %v1810_v52 }
 0x763   :  { %2011 = vmatmul.mubr.f32.vlgmr.msra.gmra.mxu0 %v7181_v12  ;;  %4319 = vmatmul.mubr.f32.vlgmr.msra.gmra.mxu1 %v7182_v53  ;;  %v6125_v12 = vld [vmem:[#allocation9 + $0xb0] sm:$0xff] }
 0x764   :  { %4321 = vmatprep.mubr.f32.mxu1 %v7183_v14  ;;  %2016 = vmatprep.mubr.f32.mxu0 %v7127_v0 }
 0x765   :  { %4330 = vmatprep.subr.mxu1 %v7127_v0  ;;  %2191 = vmatprep.subr.mxu0 %v6077_v16 }
 0x766   :  { %2192 = vmatpush1.msra.mxu0 %v6080_v55  ;;  %4331 = vmatpush3.msra.mxu1 %v6172_v28 }
 0x767   :  { %2017 = vmatmul.mubr.f32.gmra.mxu0 %v7182_v53  ;;  %4322 = vmatmul.mubr.f32.gmra.mxu1 %v7184_v54 }
 0x768   :  { %4324 = vmatprep.mubr.f32.mxu1 %v5872_v30  ;;  %2022 = vmatprep.mubr.f32.mxu0 %v7127_v0 }
 0x769   :  { %2193 = vmatprep.subr.mxu0 %v6083_v18  ;;  %4332 = vmatprep.subr.mxu1 %v7127_v0 }
 0x76a   :  { %4333 = vmatpush3.msra.mxu1 %v6174_v3 }
 0x76b   :  { %2023 = vmatmul.mubr.f32.gmra.mxu0 %v7183_v14  ;;  %4325 = vmatmul.mubr.f32.gmra.mxu1 %v5974_v5  ;;  %v7195_v14 = vld [vmem:[#allocation42_spill] sm:$0xff] }
 0x76c   :  { %4327 = vmatprep.mubr.f32.mxu1 %v6050_v58  ;;  %2028 = vmatprep.mubr.f32.mxu0 %v7127_v0 }
 0x76d   :  { %4334 = vmatprep.subr.mxu1 %v7127_v0 }
 0x76e   :  { %4335 = vmatpush3.msra.mxu1 %v6179_v17 }
 0x76f   :  { %2029 = vmatmul.mubr.f32.gmra.mxu0 %v7184_v54  ;;  %4336 = vmatprep.subr.mxu1 %v7127_v0 }
 0x770   :  { %2034 = vmatprep.mubr.f32.mxu0 %v7127_v0  ;;  %4337 = vmatpush3.msra.mxu1 %v6184_v1 }
 0x771   :  { %4338 = vmatprep.subr.mxu1 %v7127_v0 }
 0x772   :  { %4339 = vmatpush3.msra.mxu1 %v6188_v47 }
 0x773   :  { %2035 = vmatmul.mubr.f32.gmra.mxu0 %v5872_v30  ;;  %v6086_v30 = vld [vmem:[#allocation9 + $0x150] sm:$0xff]  ;;  %4340 = vmatprep.subr.mxu1 %v7127_v0 }
 0x774   :  { %2040 = vmatprep.mubr.f32.mxu0 %v7127_v0  ;;  %2194 = vmatpush1.msra.mxu0 %v6086_v30 }
 0x775   :  { %4341 = vmatpush3.msra.mxu1 %v6192_v46 }
 0x776   :  { %4342 = vmatprep.subr.mxu1 %v7127_v0 }
 0x777   :  { %2041 = vmatmul.mubr.f32.gmra.mxu0 %v5974_v5  ;;  %v6089_v5 = vld [vmem:[#allocation9 + $0x140] sm:$0xff]  ;;  %4343 = vmatpush3.msra.mxu1 %v6196_v49 }
 0x778   :  { %2046 = vmatprep.mubr.f32.mxu0 %v7127_v0  ;;  %2195 = vmatprep.subr.mxu0 %v6089_v5 }
 0x779   :  { %2196 = vmatpush1.msra.mxu0 %v6092_v56  ;;  %4344 = vmatprep.subr.mxu1 %v7127_v0 }
 0x77a   :  { %2197 = vmatprep.subr.mxu0 %v6095_v19  ;;  %4345 = vmatpush3.msra.mxu1 %v6200_v61 }
 0x77b   :  { %2047 = vmatmul.mubr.f32.gmra.mxu0 %v6050_v58  ;;  %4346 = vmatprep.subr.mxu1 %v7127_v0 }
 0x77c   :  { %2052 = vmatprep.mubr.f32.mxu0 %v7127_v0  ;;  %2198 = vmatpush1.msra.mxu0 %v6098_v57 }
 0x77d   :  { %2199 = vmatprep.subr.mxu0 %v6101_v22  ;;  %4347 = vmatpush3.msra.mxu1 %v6204_v10 }
 0x77e   :  { %2200 = vmatpush1.msra.mxu0 %v6104_v23  ;;  %4348 = vmatprep.subr.mxu1 %v7127_v0 }
 0x77f   :  { %2201 = vmatprep.subr.mxu0 %v6107_v59  ;;  %4349 = vmatpush3.msra.mxu1 %v6208_v21 }
 0x780   :  { %2202 = vmatpush1.msra.mxu0 %v6110_v24  ;;  %4350 = vmatprep.subr.mxu1 %v7127_v0 }
 0x781   :  { %2203 = vmatprep.subr.mxu0 %v6113_v8  ;;  %4351 = vmatpush3.msra.mxu1 %v6212_v32 }
 0x782   :  { %2204 = vmatpush1.msra.mxu0 %v6116_v31  ;;  %4352 = vmatprep.subr.mxu1 %v7127_v0 }
 0x783   :  { %2205 = vmatprep.subr.mxu0 %v6119_v33  ;;  %4353 = vmatpush3.msra.mxu1 %v6216_v44 }
 0x784   :  { %2206 = vmatpush1.msra.mxu0 %v6122_v34  ;;  %4354 = vmatprep.subr.mxu1 %v7127_v0 }
 0x785   :  { %2207 = vmatprep.subr.mxu0 %v6125_v12  ;;  %4355 = vmatpush3.msra.mxu1 %v6220_v2 }
 0x786   :  { %2208 = vmatpush1.msra.mxu0 %v6128_v35  ;;  %4356 = vmatprep.subr.mxu1 %v7127_v0 }
 0x787   :  { %2209 = vmatprep.subr.mxu0 %v6131_v36  ;;  %4357 = vmatpush3.msra.mxu1 %v6224_v4 }
 0x788   :  { %2210 = vmatpush1.msra.mxu0 %v6134_v37  ;;  %4358 = vmatprep.subr.mxu1 %v7127_v0 }
 0x789   :  { %2211 = vmatprep.subr.mxu0 %v6137_v39  ;;  %4359 = vmatpush3.msra.mxu1 %v6228_v25 }
 0x78a   :  { %2212 = vmatpush1.msra.mxu0 %v6140_v40  ;;  %4360 = vmatprep.subr.mxu1 %v7127_v0 }
 0x78b   :  { %2213 = vmatprep.subr.mxu0 %v6143_v41  ;;  %4361 = vmatpush3.msra.mxu1 %v6232_v15 }
 0x78c   :  { %2214 = vmatpush1.msra.mxu0 %v6146_v42  ;;  %4365 = vmatprep.subr.mxu1 %v7127_v0 }
 0x78d   :  { %2215 = vmatprep.subr.mxu0 %v6149_v48 }
 0x78e   :  { %2216 = vmatpush1.msra.mxu0 %v6152_v29 }
 0x78f   :  { %2217 = vmatprep.subr.mxu0 %v6155_v13 }
 0x790   :  { %2218 = vmatpush1.msra.mxu0 %v6157_v43 }
 0x791   :  { %2219 = vmatprep.subr.mxu0 %v6160_v20 }
 0x792   :  { %2220 = vmatpush1.msra.mxu0 %v6162_v50 }
 0x793   :  { %2221 = vmatprep.subr.mxu0 %v6165_v60 }
 0x794   :  { %2222 = vmatpush1.msra.mxu0 %v6168_v26 }
 0x795   :  { %2355 = vmatprep.subr.mxu0 %v6077_v16 }
 0x802   :  { %v1711_v6 = vpop.f32.mrf.mxu0  ;;  %v1782_v45 = vpop.f32.mrf.mxu1 }
 0x803   :  { %v1712_v63 = vadd.f32 %v1711_v6, %v7177_v62  ;;  %v1783_v25 = vadd.f32 %v1782_v45, %v5485_v38  ;;  %v7196_v6 = vld [vmem:[#allocation47_spill] sm:$0xff]  ;;  %v7197_v38 = vld [vmem:[#allocation21_spill] sm:$0xff] }
 0x804   :  { %v4285_v7 = vpop.f32.mrf.mxu1  ;;  %v1713_v11 = vpop.f32.mrf.mxu0 }
 0x805   :  { %v1786_v9 = vadd.f32 %v1712_v63, %v7194_v51  ;;  %v1714_v53 = vadd.f32 %v1713_v11, %v5471_v27 }
 0x807   :  { %v3648_v52 = vmul.f32 -1.442695, %v1786_v9  ;;  %v1787_v54 = vadd.f32 %v1714_v53, %v7195_v14 }
 0x809   :  { %4726 = vpow2.f32 %v3648_v52  ;;  %v3649_v16 = vmul.f32 -1.442695, %v1787_v54 }
 0x80b   :  { %4728 = vpow2.f32 %v3649_v16  ;;  %v7199_v16 = vld [vmem:[#allocation23_spill] sm:$0xff] }
 0x816   :  { %v4727_v26 = vpop.eup %4726 }
 0x817   :  { %v1794_v60 = vadd.f32 1.0, %v4727_v26  ;;  %v7202_v26 = vld [vmem:[#allocation19_spill] sm:$0xff] }
 0x818   :  { %v4729_v15 = vpop.eup %4728 }
 0x819   :  { %4730 = vrcp.f32 %v1794_v60  ;;  %v1795_v63 = vadd.f32 1.0, %v4729_v15  ;;  %v7201_v60 = vld [vmem:[#allocation33_spill] sm:$0xff] }
 0x826   :  { %v4731_v50 = vpop.eup %4730 }
 0x827   :  { %v1800_v62 = vmul.f32 %v4731_v50, %v1783_v25  ;;  %v7200_v50 = vld [vmem:[#allocation31_spill] sm:$0xff]  ;;  %v2012_v25 = vpop.f32.mrf.mxu0 }
 0x829   :  { %v1801_v7 = vadd.f32 %v1800_v62, %v7196_v6  ;;  %v2014_v15 = vpop.f32.mrf.mxu0 }
 0x82b   :  { %4732 = vtanh.f32 %v1801_v7  ;;  %v6317_v45 = vpop.f32.mrf.mxu0  ;;  %v6329_v7 = vpop.f32.mrf.mxu1 }
 0x82c   :  { %4734 = vrcp.f32 %v1795_v63  ;;  %7203 = vst [vmem:[#allocation34_spill] sm:$0xff] %v6317_v45  ;;  %7209 = vst [vmem:[#allocation29_spill] sm:$0xff] %v6329_v7 }
 0x82d   :  { %v6319_v53 = vpop.f32.mrf.mxu0 }
 0x82e   :  { %7204 = vst [vmem:[#allocation46_spill] sm:$0xff] %v6319_v53 }
 0x82f   :  { %v6321_v14 = vpop.f32.mrf.mxu0 }
 0x830   :  { %7205 = vst [vmem:[#allocation36_spill] sm:$0xff] %v6321_v14 }
 0x831   :  { %v6323_v54 = vpop.f32.mrf.mxu0 }
 0x832   :  { %7206 = vst [vmem:[#allocation37_spill] sm:$0xff] %v6323_v54 }
 0x833   :  { %v6325_v62 = vpop.f32.mrf.mxu0 }
 0x834   :  { %7207 = vst [vmem:[#allocation45_spill] sm:$0xff] %v6325_v62 }
 0x835   :  { %v6327_v6 = vpop.f32.mrf.mxu0 }
 0x836   :  { %7208 = vst [vmem:[#allocation35_spill] sm:$0xff] %v6327_v6  ;;  %v1904_v6 = vld [vmem:[%s7014_s7] sm:$0x7] }
 0x837   :  { %v6331_v63 = vpop.f32.mrf.mxu0 }
 0x838   :  { %v4733_v51 = vpop.eup %4732  ;;  %7210 = vst [vmem:[#allocation17_spill] sm:$0xff] %v6331_v63 }
 0x839   :  { %v1803_v27 = vsub.f32 %v6050_v58, %v4733_v51  ;;  %v4735_v9 = vpop.eup %4734  ;;  %v7198_v58 = vld [vmem:[#allocation43_spill] sm:$0xff] }
 0x83b   :  { %v1804_v52 = vmul.f32 %v4735_v9, %v1803_v27  ;;  %v6333_v27 = vpop.f32.mrf.mxu0 }
 0x83c   :  { %7211 = vst [vmem:[#allocation28_spill] sm:$0xff] %v6333_v27 }
 0x83d   :  { %v1805_v11 = vadd.f32 %v4733_v51, %v1804_v52  ;;  %v2125_v51 = vpop.f32.mrf.mxu1  ;;  %v6337_v52 = vpop.f32.mrf.mxu0 }
 0x83e   :  { %7213 = vst [vmem:[#allocation41_spill] sm:$0xff] %v6337_v52  ;;  %v1905_v52 = vld [vmem:[%s7015_s8] sm:$0x7] }
 0x83f   :  { %2053 = vmatmul.mubr.f32.gmra.mxu0 %v1805_v11  ;;  %4328 = vmatmul.mubr.f32.gmra.mxu1 %v1805_v11  ;;  %v6335_v9 = vpop.f32.mrf.mxu1  ;;  %v6341_v14 = vpop.f32.mrf.mxu0 }
 0x840   :  { %2255 = vmatprep.mubr.f32.mxu0 %v7127_v0  ;;  %4362 = vmatprep.mubr.msk.f32.mxu1 %vm5029_vm1, %v7127_v0  ;;  %7212 = vst [vmem:[#allocation44_spill] sm:$0xff] %v6335_v9  ;;  %7215 = vst [vmem:[#allocation39_spill] sm:$0xff] %v6341_v14  ;;  %v7222_v14 = vld [vmem:[#allocation24_spill] sm:$0xff] }
 0x841   :  { %v6339_v11 = vpop.f32.mrf.mxu1  ;;  %v6345_v62 = vpop.f32.mrf.mxu0 }
 0x842   :  { %7214 = vst [vmem:[#allocation38_spill] sm:$0xff] %v6339_v11  ;;  %7217 = vst [vmem:[#allocation49_spill] sm:$0xff] %v6345_v62  ;;  %v6365_v62 = vrot.slane %v1905_v52, %v7222_v14 }
 0x843   :  { %2256 = vmatmul.mubr.f32.vlgmr.msra.gmra.mxu0 %v7127_v0  ;;  %4363 = vmatmul.mubr.f32.vlgmr.msra.gmra.mxu1 %v7127_v0  ;;  %v6343_v54 = vpop.f32.mrf.mxu1  ;;  %v6352_v7 = vpop.f32.mrf.mxu0 }
 0x844   :  { %2356 = vmatpush1.msra.mxu0 %v6080_v55  ;;  %4366 = vmatpush3.msra.mxu1 %v6172_v28  ;;  %7216 = vst [vmem:[#allocation48_spill] sm:$0xff] %v6343_v54  ;;  %7219 = vst [vmem:[#allocation26_spill] sm:$0xff] %v6352_v7  ;;  %v6362_v54 = vrot.slane %v1904_v6, %v7222_v14 }
 0x845   :  { %2357 = vmatprep.subr.mxu0 %v6083_v18  ;;  %4367 = vmatprep.subr.mxu1 %v7127_v0  ;;  %v6350_v63 = vpop.f32.mrf.mxu1 }
 0x846   :  { %2358 = vmatpush1.msra.mxu0 %v6086_v30  ;;  %4368 = vmatpush3.msra.mxu1 %v6174_v3  ;;  %7218 = vst [vmem:[#allocation18_spill] sm:$0xff] %v6350_v63  ;;  %7223 = vst [vmem:[#allocation42_spill] sm:$0xff] %v6362_v54  ;;  %v2013_v45 = vadd.f32 %v2012_v25, %v6362_v54 }
 0x847   :  { %2359 = vmatprep.subr.mxu0 %v6089_v5  ;;  %4369 = vmatprep.subr.mxu1 %v7127_v0 }
 0x848   :  { %2360 = vmatpush1.msra.mxu0 %v6092_v56  ;;  %4370 = vmatpush3.msra.mxu1 %v6179_v17 }
 0x849   :  { %2361 = vmatprep.subr.mxu0 %v6095_v19  ;;  %4371 = vmatprep.subr.mxu1 %v7127_v0 }
 0x84a   :  { %2362 = vmatpush1.msra.mxu0 %v6098_v57  ;;  %4372 = vmatpush3.msra.mxu1 %v6184_v1 }
 0x84b   :  { %2363 = vmatprep.subr.mxu0 %v6101_v22  ;;  %4373 = vmatprep.subr.mxu1 %v7127_v0 }
 0x84c   :  { %2364 = vmatpush1.msra.mxu0 %v6104_v23  ;;  %4374 = vmatpush3.msra.mxu1 %v6188_v47 }
 0x84d   :  { %2365 = vmatprep.subr.mxu0 %v6107_v59  ;;  %4375 = vmatprep.subr.mxu1 %v7127_v0 }
 0x84e   :  { %2366 = vmatpush1.msra.mxu0 %v6110_v24  ;;  %4376 = vmatpush3.msra.mxu1 %v6192_v46 }
 0x84f   :  { %2367 = vmatprep.subr.mxu0 %v6113_v8  ;;  %4377 = vmatprep.subr.mxu1 %v7127_v0 }
 0x850   :  { %2368 = vmatpush1.msra.mxu0 %v6116_v31  ;;  %4378 = vmatpush3.msra.mxu1 %v6196_v49 }
 0x851   :  { %2369 = vmatprep.subr.mxu0 %v6119_v33  ;;  %4379 = vmatprep.subr.mxu1 %v7127_v0 }
 0x852   :  { %2370 = vmatpush1.msra.mxu0 %v6122_v34  ;;  %4380 = vmatpush3.msra.mxu1 %v6200_v61 }
 0x853   :  { %2371 = vmatprep.subr.mxu0 %v6125_v12  ;;  %4381 = vmatprep.subr.mxu1 %v7127_v0 }
 0x854   :  { %2372 = vmatpush1.msra.mxu0 %v6128_v35  ;;  %4382 = vmatpush3.msra.mxu1 %v6204_v10 }
 0x855   :  { %2373 = vmatprep.subr.mxu0 %v6131_v36  ;;  %4383 = vmatprep.subr.mxu1 %v7127_v0 }
 0x856   :  { %2374 = vmatpush1.msra.mxu0 %v6134_v37  ;;  %4384 = vmatpush3.msra.mxu1 %v6208_v21 }
 0x857   :  { %2375 = vmatprep.subr.mxu0 %v6137_v39  ;;  %4385 = vmatprep.subr.mxu1 %v7127_v0 }
 0x858   :  { %2376 = vmatpush1.msra.mxu0 %v6140_v40  ;;  %4386 = vmatpush3.msra.mxu1 %v6212_v32 }
 0x859   :  { %2377 = vmatprep.subr.mxu0 %v6143_v41  ;;  %4387 = vmatprep.subr.mxu1 %v7127_v0 }
 0x85a   :  { %2378 = vmatpush1.msra.mxu0 %v6146_v42  ;;  %4388 = vmatpush3.msra.mxu1 %v6216_v44 }
 0x85b   :  { %2379 = vmatprep.subr.mxu0 %v6149_v48  ;;  %4389 = vmatprep.subr.mxu1 %v7127_v0 }
 0x85c   :  { %2380 = vmatpush1.msra.mxu0 %v6152_v29  ;;  %4390 = vmatpush3.msra.mxu1 %v6220_v2 }
 0x85d   :  { %2381 = vmatprep.subr.mxu0 %v6155_v13  ;;  %4391 = vmatprep.subr.mxu1 %v7127_v0 }
 0x85e   :  { %2382 = vmatpush1.msra.mxu0 %v6157_v43  ;;  %4392 = vmatpush3.msra.mxu1 %v6224_v4 }
 0x85f   :  { %2383 = vmatprep.subr.mxu0 %v6160_v20  ;;  %4393 = vmatprep.subr.mxu1 %v7127_v0 }
 0x860   :  { %2384 = vmatpush1.msra.mxu0 %v7197_v38  ;;  %4394 = vmatpush3.msra.mxu1 %v7198_v58 }
 0x861   :  { %2385 = vmatprep.subr.mxu0 %v7199_v16  ;;  %4395 = vmatprep.subr.mxu1 %v7127_v0 }
 0x862   :  { %2386 = vmatpush1.msra.mxu0 %v7200_v50  ;;  %2419 = vmatprep.mubr.f32.mxu0 %v7127_v0 }
 0x863   :  { %4396 = vmatpush3.msra.mxu1 %v7201_v60  ;;  %4397 = vmatprep.mubr.msk.f32.mxu1 %vm5029_vm1, %v7127_v0 }
 0x864   :  { %2519 = vmatprep.subr.mxu0 %v7202_v26  ;;  %4400 = vmatprep.subr.mxu1 %v7127_v0 }
 0x8ff   :  { %v6357_v27 = vpop.f32.mrf.mxu0  ;;  %v6359_v9 = vpop.f32.mrf.mxu1 }
 0x900   :  { %7220 = vst [vmem:[#allocation27_spill] sm:$0xff] %v6357_v27  ;;  %7221 = vst [vmem:[#allocation40_spill] sm:$0xff] %v6359_v9  ;;  %v7226_v9 = vld [vmem:[#allocation25_spill] sm:$0xff] }
 0x901   :  { %v6367_v11 = vpop.f32.mrf.mxu0  ;;  %v6369_v53 = vpop.f32.mrf.mxu1  ;;  %v6374_v16 = vrot.slane %v1905_v52, %v7226_v9  ;;  %v6377_v14 = vrot.slane %v1904_v6, %v7226_v9 }
 0x902   :  { %7224 = vst [vmem:[#allocation47_spill] sm:$0xff] %v6367_v11  ;;  %7225 = vst [vmem:[#allocation24_spill] sm:$0xff] %v6369_v53 }
 0x903   :  { %v2257_v63 = vpop.f32.mrf.mxu0  ;;  %v2328_v7 = vpop.f32.mrf.mxu1  ;;  %v2015_v53 = vadd.f32 %v2014_v15, %v6377_v14 }
 0x904   :  { %v2258_v26 = vadd.f32 %v2257_v63, %v6365_v62 }
 0x905   :  { %v4364_v60 = vpop.f32.mrf.mxu1  ;;  %v2259_v58 = vpop.f32.mrf.mxu0 }
 0x906   :  { %v2332_v27 = vadd.f32 %v2258_v26, %v2013_v45  ;;  %v2260_v11 = vadd.f32 %v2259_v58, %v6374_v16  ;;  %v7227_v60 = vld [vmem:[#allocation30_spill] sm:$0xff] }
 0x907   :  { %v6382_v26 = vrot.slane %v1905_v52, %v7227_v60  ;;  %v6386_v63 = vrot.slane %v1904_v6, %v7227_v60  ;;  %v7228_v6 = vld [vmem:[#allocation20_spill] sm:$0xff]  ;;  %v7232_v60 = vld [vmem:[#allocation31_spill] sm:$0xff] }
 0x908   :  { %v3650_v50 = vmul.f32 -1.442695, %v2332_v27  ;;  %v2333_v38 = vadd.f32 %v2260_v11, %v2015_v53 }
 0x909   :  { %v2329_v45 = vadd.f32 %v2328_v7, %v6382_v26  ;;  %v2126_v58 = vadd.f32 %v2125_v51, %v6386_v63  ;;  %v7229_v7 = vld [vmem:[#allocation21_spill] sm:$0xff]  ;;  %v7230_v51 = vld [vmem:[#allocation43_spill] sm:$0xff] }
 0x90a   :  { %4736 = vpow2.f32 %v3650_v50  ;;  %v3651_v20 = vmul.f32 -1.442695, %v2333_v38 }
 0x90c   :  { %4738 = vpow2.f32 %v3651_v20 }
 0x917   :  { %v4737_v25 = vpop.eup %4736 }
 0x918   :  { %v2340_v54 = vadd.f32 1.0, %v4737_v25  ;;  %v7231_v25 = vld [vmem:[#allocation23_spill] sm:$0xff] }
 0x919   :  { %v4739_v50 = vpop.eup %4738 }
 0x91a   :  { %4740 = vrcp.f32 %v2340_v54  ;;  %v2341_v15 = vadd.f32 1.0, %v4739_v50  ;;  %v7234_v50 = vld [vmem:[#allocation19_spill] sm:$0xff] }
 0x927   :  { %v4741_v27 = vpop.eup %4740 }
 0x928   :  { %v2346_v9 = vmul.f32 %v4741_v27, %v2329_v45  ;;  %v7233_v45 = vld [vmem:[#allocation33_spill] sm:$0xff] }
 0x92a   :  { %v2347_v53 = vadd.f32 %v2346_v9, %v2126_v58  ;;  %v7235_v9 = vld [vmem:[#allocation42_spill] sm:$0xff] }
 0x92c   :  { %4742 = vtanh.f32 %v2347_v53 }
 0x92d   :  { %4744 = vrcp.f32 %v2341_v15  ;;  %v7236_v15 = vld [vmem:[#allocation34_spill] sm:$0xff] }
 0x92e   :  { %v2019_v53 = vadd.f32 %v7236_v15, %v7235_v9 }
 0x939   :  { %v4743_v38 = vpop.eup %4742 }
 0x93a   :  { %v2349_v20 = vsub.f32 0.0, %v4743_v38  ;;  %v4745_v54 = vpop.eup %4744 }
 0x93c   :  { %v2350_v11 = vmul.f32 %v4745_v54, %v2349_v20 }
 0x93e   :  { %v6389_v52 = vadd.f32 %v4743_v38, %v2350_v11 }
 0x940   :  { %2420 = vmatmul.mubr.f32.vlgmr.msra.gmra.mxu0 %v6389_v52  ;;  %4398 = vmatmul.mubr.f32.vlgmr.msra.gmra.mxu1 %v6389_v52 }
 0x941   :  { %2520 = vmatpush1.msra.mxu0 %v6080_v55  ;;  %4401 = vmatpush3.msra.mxu1 %v6172_v28 }
 0x942   :  { %2521 = vmatprep.subr.mxu0 %v6083_v18  ;;  %4402 = vmatprep.subr.mxu1 %v7127_v0 }
 0x943   :  { %2522 = vmatpush1.msra.mxu0 %v6086_v30  ;;  %4403 = vmatpush3.msra.mxu1 %v6174_v3 }
 0x944   :  { %2523 = vmatprep.subr.mxu0 %v6089_v5  ;;  %4404 = vmatprep.subr.mxu1 %v7127_v0 }
 0x945   :  { %2524 = vmatpush1.msra.mxu0 %v6092_v56  ;;  %4405 = vmatpush3.msra.mxu1 %v6179_v17 }
 0x946   :  { %2525 = vmatprep.subr.mxu0 %v6095_v19  ;;  %4406 = vmatprep.subr.mxu1 %v7127_v0 }
 0x947   :  { %2526 = vmatpush1.msra.mxu0 %v6098_v57  ;;  %4407 = vmatpush3.msra.mxu1 %v6184_v1 }
 0x948   :  { %2527 = vmatprep.subr.mxu0 %v6101_v22  ;;  %4408 = vmatprep.subr.mxu1 %v7127_v0 }
 0x949   :  { %2528 = vmatpush1.msra.mxu0 %v6104_v23  ;;  %4409 = vmatpush3.msra.mxu1 %v6188_v47 }
 0x94a   :  { %2529 = vmatprep.subr.mxu0 %v6107_v59  ;;  %4410 = vmatprep.subr.mxu1 %v7127_v0 }
 0x94b   :  { %2530 = vmatpush1.msra.mxu0 %v6110_v24  ;;  %4411 = vmatpush3.msra.mxu1 %v6192_v46 }
 0x94c   :  { %2531 = vmatprep.subr.mxu0 %v6113_v8  ;;  %4412 = vmatprep.subr.mxu1 %v7127_v0 }
 0x94d   :  { %2532 = vmatpush1.msra.mxu0 %v6116_v31  ;;  %4413 = vmatpush3.msra.mxu1 %v6196_v49 }
 0x94e   :  { %2533 = vmatprep.subr.mxu0 %v6119_v33  ;;  %4414 = vmatprep.subr.mxu1 %v7127_v0 }
 0x94f   :  { %2534 = vmatpush1.msra.mxu0 %v6122_v34  ;;  %4415 = vmatpush3.msra.mxu1 %v6200_v61 }
 0x950   :  { %2535 = vmatprep.subr.mxu0 %v6125_v12  ;;  %4416 = vmatprep.subr.mxu1 %v7127_v0 }
 0x951   :  { %2536 = vmatpush1.msra.mxu0 %v6128_v35  ;;  %4417 = vmatpush3.msra.mxu1 %v6204_v10 }
 0x952   :  { %2537 = vmatprep.subr.mxu0 %v6131_v36  ;;  %4418 = vmatprep.subr.mxu1 %v7127_v0 }
 0x953   :  { %2538 = vmatpush1.msra.mxu0 %v6134_v37  ;;  %4419 = vmatpush3.msra.mxu1 %v6208_v21 }
 0x954   :  { %2539 = vmatprep.subr.mxu0 %v6137_v39  ;;  %4420 = vmatprep.subr.mxu1 %v7127_v0 }
 0x955   :  { %2540 = vmatpush1.msra.mxu0 %v6140_v40  ;;  %4421 = vmatpush3.msra.mxu1 %v6212_v32 }
 0x956   :  { %2541 = vmatprep.subr.mxu0 %v6143_v41  ;;  %4422 = vmatprep.subr.mxu1 %v7127_v0 }
 0x957   :  { %2542 = vmatpush1.msra.mxu0 %v6146_v42  ;;  %4423 = vmatpush3.msra.mxu1 %v6216_v44 }
 0x958   :  { %2543 = vmatprep.subr.mxu0 %v6149_v48  ;;  %4424 = vmatprep.subr.mxu1 %v7127_v0 }
 0x959   :  { %2544 = vmatpush1.msra.mxu0 %v6152_v29  ;;  %4425 = vmatpush3.msra.mxu1 %v6220_v2 }
 0x95a   :  { %2545 = vmatprep.subr.mxu0 %v6155_v13  ;;  %4426 = vmatprep.subr.mxu1 %v7127_v0 }
 0x95b   :  { %2546 = vmatpush1.msra.mxu0 %v6157_v43  ;;  %4427 = vmatpush3.msra.mxu1 %v6224_v4 }
 0x95c   :  { %2547 = vmatprep.subr.mxu0 %v7228_v6  ;;  %4428 = vmatprep.subr.mxu1 %v7127_v0 }
 0x95d   :  { %2548 = vmatpush1.msra.mxu0 %v7229_v7  ;;  %4429 = vmatpush3.msra.mxu1 %v7230_v51 }
 0x95e   :  { %2549 = vmatprep.subr.mxu0 %v7231_v25  ;;  %4430 = vmatprep.subr.mxu1 %v7127_v0  ;;  %v7237_v25 = vld [vmem:[#allocation46_spill] sm:$0xff] }
 0x95f   :  { %2550 = vmatpush1.msra.mxu0 %v7232_v60  ;;  %2583 = vmatprep.mubr.f32.mxu0 %v7127_v0  ;;  %v2021_v51 = vadd.f32 %v7237_v25, %v6377_v14 }
 0x960   :  { %4431 = vmatpush3.msra.mxu1 %v7233_v45  ;;  %4432 = vmatprep.mubr.msk.f32.mxu1 %vm5029_vm1, %v7127_v0 }
 0x961   :  { %2683 = vmatprep.subr.mxu0 %v7234_v50  ;;  %4435 = vmatprep.subr.mxu1 %v7127_v0 }
 0xa00   :  { %v2421_v27 = vpop.f32.mrf.mxu0  ;;  %v2492_v58 = vpop.f32.mrf.mxu1 }
 0xa01   :  { %v2422_v38 = vadd.f32 %v2421_v27, %v6365_v62  ;;  %v2493_v15 = vadd.f32 %v2492_v58, %v6382_v26  ;;  %v7244_v58 = vld [vmem:[#allocation23_spill] sm:$0xff] }
 0xa02   :  { %v4399_v20 = vpop.f32.mrf.mxu1  ;;  %v2423_v60 = vpop.f32.mrf.mxu0 }
 0xa03   :  { %v2496_v54 = vadd.f32 %v2422_v38, %v2019_v53  ;;  %v2424_v45 = vadd.f32 %v2423_v60, %v6374_v16  ;;  %v7238_v53 = vld [vmem:[#allocation29_spill] sm:$0xff] }
 0xa04   :  { %v2131_v38 = vadd.f32 %v7238_v53, %v6386_v63  ;;  %v7247_v53 = vld [vmem:[#allocation19_spill] sm:$0xff] }
 0xa05   :  { %v3652_v11 = vmul.f32 -1.442695, %v2496_v54  ;;  %v2497_v50 = vadd.f32 %v2424_v45, %v2021_v51 }
 0xa07   :  { %4746 = vpow2.f32 %v3652_v11  ;;  %v3653_v7 = vmul.f32 -1.442695, %v2497_v50  ;;  %v7243_v50 = vld [vmem:[#allocation43_spill] sm:$0xff] }
 0xa09   :  { %4748 = vpow2.f32 %v3653_v7  ;;  %v7242_v7 = vld [vmem:[#allocation21_spill] sm:$0xff] }
 0xa14   :  { %v4747_v6 = vpop.eup %4746 }
 0xa15   :  { %v2504_v4 = vadd.f32 1.0, %v4747_v6 }
 0xa16   :  { %v4749_v43 = vpop.eup %4748 }
 0xa17   :  { %4750 = vrcp.f32 %v2504_v4  ;;  %v2505_v11 = vadd.f32 1.0, %v4749_v43  ;;  %v7239_v43 = vld [vmem:[#allocation22_spill] sm:$0xff]  ;;  %v7240_v4 = vld [vmem:[#allocation32_spill] sm:$0xff] }
 0xa24   :  { %v4751_v27 = vpop.eup %4750 }
 0xa25   :  { %v2510_v20 = vmul.f32 %v4751_v27, %v2493_v15  ;;  %v7245_v15 = vld [vmem:[#allocation31_spill] sm:$0xff]  ;;  %v7246_v27 = vld [vmem:[#allocation33_spill] sm:$0xff] }
 0xa27   :  { %v2511_v54 = vadd.f32 %v2510_v20, %v2131_v38 }
 0xa29   :  { %4752 = vtanh.f32 %v2511_v54  ;;  %v7248_v54 = vld [vmem:[#allocation36_spill] sm:$0xff] }
 0xa2a   :  { %4754 = vrcp.f32 %v2505_v11  ;;  %v2025_v11 = vadd.f32 %v7248_v54, %v7235_v9 }
 0xa36   :  { %v4753_v60 = vpop.eup %4752 }
 0xa37   :  { %v2513_v51 = vsub.f32 %v6389_v52, %v4753_v60  ;;  %v4755_v25 = vpop.eup %4754  ;;  %v7241_v52 = vld [vmem:[#allocation20_spill] sm:$0xff] }
 0xa39   :  { %v2514_v45 = vmul.f32 %v4755_v25, %v2513_v51 }
 0xa3b   :  { %v6470_v6 = vadd.f32 %v4753_v60, %v2514_v45 }
 0xa3d   :  { %2584 = vmatmul.mubr.f32.vlgmr.msra.gmra.mxu0 %v6470_v6  ;;  %4433 = vmatmul.mubr.f32.vlgmr.msra.gmra.mxu1 %v6470_v6 }
 0xa3e   :  { %2684 = vmatpush1.msra.mxu0 %v6080_v55  ;;  %4436 = vmatpush3.msra.mxu1 %v6172_v28 }
 0xa3f   :  { %2685 = vmatprep.subr.mxu0 %v6083_v18  ;;  %4437 = vmatprep.subr.mxu1 %v7127_v0 }
 0xa40   :  { %2686 = vmatpush1.msra.mxu0 %v6086_v30  ;;  %4438 = vmatpush3.msra.mxu1 %v6174_v3 }
 0xa41   :  { %2687 = vmatprep.subr.mxu0 %v6089_v5  ;;  %4439 = vmatprep.subr.mxu1 %v7127_v0 }
 0xa42   :  { %2688 = vmatpush1.msra.mxu0 %v6092_v56  ;;  %4440 = vmatpush3.msra.mxu1 %v6179_v17 }
 0xa43   :  { %2689 = vmatprep.subr.mxu0 %v6095_v19  ;;  %4441 = vmatprep.subr.mxu1 %v7127_v0 }
 0xa44   :  { %2690 = vmatpush1.msra.mxu0 %v6098_v57  ;;  %4442 = vmatpush3.msra.mxu1 %v6184_v1 }
 0xa45   :  { %2691 = vmatprep.subr.mxu0 %v6101_v22  ;;  %4443 = vmatprep.subr.mxu1 %v7127_v0 }
 0xa46   :  { %2692 = vmatpush1.msra.mxu0 %v6104_v23  ;;  %4444 = vmatpush3.msra.mxu1 %v6188_v47 }
 0xa47   :  { %2693 = vmatprep.subr.mxu0 %v6107_v59  ;;  %4445 = vmatprep.subr.mxu1 %v7127_v0 }
 0xa48   :  { %2694 = vmatpush1.msra.mxu0 %v6110_v24  ;;  %4446 = vmatpush3.msra.mxu1 %v6192_v46 }
 0xa49   :  { %2695 = vmatprep.subr.mxu0 %v6113_v8  ;;  %4447 = vmatprep.subr.mxu1 %v7127_v0 }
 0xa4a   :  { %2696 = vmatpush1.msra.mxu0 %v6116_v31  ;;  %4448 = vmatpush3.msra.mxu1 %v6196_v49 }
 0xa4b   :  { %2697 = vmatprep.subr.mxu0 %v6119_v33  ;;  %4449 = vmatprep.subr.mxu1 %v7127_v0 }
 0xa4c   :  { %2698 = vmatpush1.msra.mxu0 %v6122_v34  ;;  %4450 = vmatpush3.msra.mxu1 %v6200_v61 }
 0xa4d   :  { %2699 = vmatprep.subr.mxu0 %v6125_v12  ;;  %4451 = vmatprep.subr.mxu1 %v7127_v0 }
 0xa4e   :  { %2700 = vmatpush1.msra.mxu0 %v6128_v35  ;;  %4452 = vmatpush3.msra.mxu1 %v6204_v10 }
 0xa4f   :  { %2701 = vmatprep.subr.mxu0 %v6131_v36  ;;  %4453 = vmatprep.subr.mxu1 %v7127_v0 }
 0xa50   :  { %2702 = vmatpush1.msra.mxu0 %v6134_v37  ;;  %4454 = vmatpush3.msra.mxu1 %v6208_v21 }
 0xa51   :  { %2703 = vmatprep.subr.mxu0 %v6137_v39  ;;  %4455 = vmatprep.subr.mxu1 %v7127_v0 }
 0xa52   :  { %2704 = vmatpush1.msra.mxu0 %v6140_v40  ;;  %4456 = vmatpush3.msra.mxu1 %v6212_v32 }
 0xa53   :  { %2705 = vmatprep.subr.mxu0 %v6143_v41  ;;  %4457 = vmatprep.subr.mxu1 %v7127_v0 }
 0xa54   :  { %2706 = vmatpush1.msra.mxu0 %v6146_v42  ;;  %4458 = vmatpush3.msra.mxu1 %v6216_v44 }
 0xa55   :  { %2707 = vmatprep.subr.mxu0 %v6149_v48  ;;  %4459 = vmatprep.subr.mxu1 %v7127_v0 }
 0xa56   :  { %2708 = vmatpush1.msra.mxu0 %v6152_v29  ;;  %4460 = vmatpush3.msra.mxu1 %v6220_v2 }
 0xa57   :  { %2709 = vmatprep.subr.mxu0 %v6155_v13  ;;  %4461 = vmatprep.subr.mxu1 %v7127_v0 }
 0xa58   :  { %2710 = vmatpush1.msra.mxu0 %v7239_v43  ;;  %4462 = vmatpush3.msra.mxu1 %v7240_v4 }
 0xa59   :  { %2711 = vmatprep.subr.mxu0 %v7241_v52  ;;  %4463 = vmatprep.subr.mxu1 %v7127_v0 }
 0xa5a   :  { %2712 = vmatpush1.msra.mxu0 %v7242_v7  ;;  %4464 = vmatpush3.msra.mxu1 %v7243_v50 }
 0xa5b   :  { %2713 = vmatprep.subr.mxu0 %v7244_v58  ;;  %4465 = vmatprep.subr.mxu1 %v7127_v0  ;;  %v7249_v58 = vld [vmem:[#allocation37_spill] sm:$0xff] }
 0xa5c   :  { %2714 = vmatpush1.msra.mxu0 %v7245_v15  ;;  %2747 = vmatprep.mubr.f32.mxu0 %v7127_v0  ;;  %v2027_v50 = vadd.f32 %v7249_v58, %v6377_v14 }
 0xa5d   :  { %4466 = vmatpush3.msra.mxu1 %v7246_v27  ;;  %4467 = vmatprep.mubr.msk.f32.mxu1 %vm5029_vm1, %v7127_v0 }
 0xa5e   :  { %2847 = vmatprep.subr.mxu0 %v7247_v53  ;;  %4470 = vmatprep.subr.mxu1 %v7127_v0 }
 0xafd   :  { %v2585_v38 = vpop.f32.mrf.mxu0  ;;  %v2656_v20 = vpop.f32.mrf.mxu1 }
 0xafe   :  { %v2586_v60 = vadd.f32 %v2585_v38, %v6365_v62  ;;  %v2657_v54 = vadd.f32 %v2656_v20, %v6382_v26  ;;  %v6654_v20 = vld [vmem:[#allocation9 + $0x140] sm:$0xff] }
 0xaff   :  { %v4434_v51 = vpop.f32.mrf.mxu1  ;;  %v2587_v15 = vpop.f32.mrf.mxu0 }
 0xb00   :  { %v2660_v25 = vadd.f32 %v2586_v60, %v2025_v11  ;;  %v2588_v27 = vadd.f32 %v2587_v15, %v6374_v16  ;;  %v7250_v11 = vld [vmem:[#allocation38_spill] sm:$0xff] }
 0xb01   :  { %v2136_v60 = vadd.f32 %v7250_v11, %v6386_v63  ;;  %v6668_v11 = vld [vmem:[#allocation9 + $0x120] sm:$0xff] }
 0xb02   :  { %v3654_v45 = vmul.f32 -1.442695, %v2660_v25  ;;  %v2661_v53 = vadd.f32 %v2588_v27, %v2027_v50 }
 0xb04   :  { %4756 = vpow2.f32 %v3654_v45  ;;  %v3655_v7 = vmul.f32 -1.442695, %v2661_v53  ;;  %v6658_v53 = vld [vmem:[#allocation9 + $0x138] sm:$0xff] }
 0xb06   :  { %4758 = vpow2.f32 %v3655_v7  ;;  %v6651_v7 = vld [vmem:[#allocation9 + $0x160] sm:$0xff] }
 0xb11   :  { %v4757_v52 = vpop.eup %4756 }
 0xb12   :  { %v2668_v4 = vadd.f32 1.0, %v4757_v52 }
 0xb13   :  { %v4759_v43 = vpop.eup %4758 }
 0xb14   :  { %4760 = vrcp.f32 %v2668_v4  ;;  %v2669_v45 = vadd.f32 1.0, %v4759_v43  ;;  %v6644_v43 = vld [vmem:[#allocation9 + $0x158] sm:$0xff]  ;;  %v6648_v4 = vld [vmem:[#allocation9 + $0x150] sm:$0xff] }
 0xb21   :  { %v4761_v38 = vpop.eup %4760 }
 0xb22   :  { %v2674_v51 = vmul.f32 %v4761_v38, %v2657_v54  ;;  %v6661_v54 = vld [vmem:[#allocation9 + $0x148] sm:$0xff] }
 0xb23   :  { %v6664_v38 = vld [vmem:[#allocation9 + $0x128] sm:$0xff] }
 0xb24   :  { %v2675_v25 = vadd.f32 %v2674_v51, %v2136_v60  ;;  %v6671_v60 = vld [vmem:[#allocation9 + $0x130] sm:$0xff] }
 0xb25   :  { %v6674_v51 = vld [vmem:[#allocation9 + $0x110] sm:$0xff] }
 0xb26   :  { %4762 = vtanh.f32 %v2675_v25  ;;  %v6678_v25 = vld [vmem:[#allocation9 + $0x108] sm:$0xff] }
 0xb27   :  { %4764 = vrcp.f32 %v2669_v45  ;;  %v6681_v45 = vld [vmem:[#allocation9 + $0x118] sm:$0xff] }
 0xb33   :  { %v4763_v15 = vpop.eup %4762 }
 0xb34   :  { %v2677_v50 = vsub.f32 %v6470_v6, %v4763_v15  ;;  %v4765_v58 = vpop.eup %4764  ;;  %v6641_v6 = vld [vmem:[#allocation9 + $0x178] sm:$0xff] }
 0xb36   :  { %v2678_v27 = vmul.f32 %v4765_v58, %v2677_v50  ;;  %v6688_v50 = vld [vmem:[#allocation9 + $0xf0] sm:$0xff]  ;;  %v6691_v58 = vld [vmem:[#allocation9 + $0x100] sm:$0xff] }
 0xb38   :  { %v6551_v52 = vadd.f32 %v4763_v15, %v2678_v27  ;;  %v6684_v15 = vld [vmem:[#allocation9 + $0xf8] sm:$0xff]  ;;  %v6694_v27 = vld [vmem:[#allocation9 + $0xe0] sm:$0xff] }
 0xb3a   :  { %2748 = vmatmul.mubr.f32.vlgmr.msra.gmra.mxu0 %v6551_v52  ;;  %4468 = vmatmul.mubr.f32.vlgmr.msra.gmra.mxu1 %v6551_v52 }
 0xb3b   :  { %2848 = vmatpush1.msra.mxu0 %v6080_v55  ;;  %4471 = vmatpush3.msra.mxu1 %v6172_v28  ;;  %v7251_v55 = vld [vmem:[#allocation22_spill] sm:$0xff] }
 0xb3c   :  { %2849 = vmatprep.subr.mxu0 %v6083_v18  ;;  %4472 = vmatprep.subr.mxu1 %v7127_v0  ;;  %v7252_v18 = vld [vmem:[#allocation32_spill] sm:$0xff] }
 0xb3d   :  { %2850 = vmatpush1.msra.mxu0 %v6086_v30  ;;  %4473 = vmatpush3.msra.mxu1 %v6174_v3  ;;  %v7253_v30 = vld [vmem:[#allocation20_spill] sm:$0xff] }
 0xb3e   :  { %2851 = vmatprep.subr.mxu0 %v6089_v5  ;;  %4474 = vmatprep.subr.mxu1 %v7127_v0  ;;  %v7254_v5 = vld [vmem:[#allocation21_spill] sm:$0xff] }
 0xb3f   :  { %2852 = vmatpush1.msra.mxu0 %v6092_v56  ;;  %4475 = vmatpush3.msra.mxu1 %v6179_v17  ;;  %v7255_v56 = vld [vmem:[#allocation43_spill] sm:$0xff]  ;;  %v7262_v17 = vld [vmem:[#allocation44_spill] sm:$0xff] }
 0xb40   :  { %2853 = vmatprep.subr.mxu0 %v6095_v19  ;;  %4476 = vmatprep.subr.mxu1 %v7127_v0  ;;  %v7256_v19 = vld [vmem:[#allocation23_spill] sm:$0xff] }
 0xb41   :  { %2854 = vmatpush1.msra.mxu0 %v6098_v57  ;;  %4477 = vmatpush3.msra.mxu1 %v6184_v1  ;;  %v7257_v57 = vld [vmem:[#allocation31_spill] sm:$0xff]  ;;  %v2141_v1 = vadd.f32 %v7262_v17, %v6386_v63  ;;  %v6792_v17 = vld [vmem:[#allocation9 + $0x10] sm:$0xff] }
 0xb42   :  { %2855 = vmatprep.subr.mxu0 %v6101_v22  ;;  %4478 = vmatprep.subr.mxu1 %v7127_v0  ;;  %v7258_v22 = vld [vmem:[#allocation33_spill] sm:$0xff]  ;;  %7270 = vst [vmem:[#allocation37_spill] sm:$0xff] %v6792_v17 }
 0xb43   :  { %2856 = vmatpush1.msra.mxu0 %v6104_v23  ;;  %4479 = vmatpush3.msra.mxu1 %v6188_v47  ;;  %v6620_v23 = vld [vmem:[#allocation9 + $0x170] sm:$0xff] }
 0xb44   :  { %2857 = vmatprep.subr.mxu0 %v6107_v59  ;;  %4480 = vmatprep.subr.mxu1 %v7127_v0  ;;  %7259 = vst [vmem:[#allocation25_spill] sm:$0xff] %v6620_v23 }
 0xb45   :  { %2858 = vmatpush1.msra.mxu0 %v6110_v24  ;;  %4481 = vmatpush3.msra.mxu1 %v6192_v46 }
 0xb46   :  { %2859 = vmatprep.subr.mxu0 %v6113_v8  ;;  %4482 = vmatprep.subr.mxu1 %v7127_v0  ;;  %v7260_v8 = vld [vmem:[#allocation45_spill] sm:$0xff] }
 0xb47   :  { %2860 = vmatpush1.msra.mxu0 %v6116_v31  ;;  %4483 = vmatpush3.msra.mxu1 %v6196_v49  ;;  %v2031_v31 = vadd.f32 %v7260_v8, %v7235_v9  ;;  %v6734_v8 = vld [vmem:[#allocation9 + $0x80] sm:$0xff] }
 0xb48   :  { %2861 = vmatprep.subr.mxu0 %v6119_v33  ;;  %4484 = vmatprep.subr.mxu1 %v7127_v0 }
 0xb49   :  { %2862 = vmatpush1.msra.mxu0 %v6122_v34  ;;  %4485 = vmatpush3.msra.mxu1 %v6200_v61 }
 0xb4a   :  { %2863 = vmatprep.subr.mxu0 %v6125_v12  ;;  %4486 = vmatprep.subr.mxu1 %v7127_v0 }
 0xb4b   :  { %2864 = vmatpush1.msra.mxu0 %v6128_v35  ;;  %4487 = vmatpush3.msra.mxu1 %v6204_v10 }
 0xb4c   :  { %2865 = vmatprep.subr.mxu0 %v6131_v36  ;;  %4488 = vmatprep.subr.mxu1 %v7127_v0 }
 0xb4d   :  { %2866 = vmatpush1.msra.mxu0 %v6134_v37  ;;  %4489 = vmatpush3.msra.mxu1 %v6208_v21 }
 0xb4e   :  { %2867 = vmatprep.subr.mxu0 %v6137_v39  ;;  %4490 = vmatprep.subr.mxu1 %v7127_v0  ;;  %v7261_v39 = vld [vmem:[#allocation35_spill] sm:$0xff] }
 0xb4f   :  { %2868 = vmatpush1.msra.mxu0 %v6140_v40  ;;  %4491 = vmatpush3.msra.mxu1 %v6212_v32  ;;  %v2033_v40 = vadd.f32 %v7261_v39, %v6377_v14  ;;  %v6761_v39 = vld [vmem:[#allocation9 + $0x58] sm:$0xff] }
 0xb50   :  { %2869 = vmatprep.subr.mxu0 %v6143_v41  ;;  %4492 = vmatprep.subr.mxu1 %v7127_v0 }
 0xb51   :  { %2870 = vmatpush1.msra.mxu0 %v6146_v42  ;;  %4493 = vmatpush3.msra.mxu1 %v6216_v44 }
 0xb52   :  { %2871 = vmatprep.subr.mxu0 %v6149_v48  ;;  %4494 = vmatprep.subr.mxu1 %v7127_v0 }
 0xb53   :  { %2872 = vmatpush1.msra.mxu0 %v6152_v29  ;;  %4495 = vmatpush3.msra.mxu1 %v6220_v2  ;;  %v6638_v2 = vld [vmem:[#allocation9 + $0x168] sm:$0xff] }
 0xb54   :  { %2873 = vmatprep.subr.mxu0 %v6155_v13  ;;  %4496 = vmatprep.subr.mxu1 %v7127_v0 }
 0xb55   :  { %2874 = vmatpush1.msra.mxu0 %v7251_v55  ;;  %4497 = vmatpush3.msra.mxu1 %v7252_v18  ;;  %v6701_v55 = vld [vmem:[#allocation9 + $0xe8] sm:$0xff] }
 0xb56   :  { %2875 = vmatprep.subr.mxu0 %v7253_v30  ;;  %4498 = vmatprep.subr.mxu1 %v7127_v0  ;;  %v6704_v18 = vld [vmem:[#allocation9 + $0xc8] sm:$0xff]  ;;  %v6708_v30 = vld [vmem:[#allocation9 + $0xc0] sm:$0xff] }
 0xb57   :  { %2876 = vmatpush1.msra.mxu0 %v7254_v5  ;;  %4499 = vmatpush3.msra.mxu1 %v7255_v56  ;;  %v6711_v5 = vld [vmem:[#allocation9 + $0xd0] sm:$0xff] }
 0xb58   :  { %2877 = vmatprep.subr.mxu0 %v7256_v19  ;;  %4500 = vmatprep.subr.mxu1 %v7127_v0  ;;  %v6714_v56 = vld [vmem:[#allocation9 + $0xb0] sm:$0xff]  ;;  %v6718_v19 = vld [vmem:[#allocation9 + $0xa8] sm:$0xff] }
 0xb59   :  { %2878 = vmatpush1.msra.mxu0 %v7257_v57  ;;  %2911 = vmatprep.mubr.f32.mxu0 %v7127_v0  ;;  %v6721_v57 = vld [vmem:[#allocation9 + $0xb8] sm:$0xff] }
 0xb5a   :  { %4501 = vmatpush3.msra.mxu1 %v7258_v22  ;;  %4502 = vmatprep.mubr.msk.f32.mxu1 %vm5029_vm1, %v7127_v0  ;;  %v6724_v22 = vld [vmem:[#allocation9 + $0x98] sm:$0xff] }
 0xb5b   :  { %3011 = vmatprep.subr.mxu0 %v6620_v23  ;;  %4505 = vmatprep.subr.mxu1 %v7127_v0 }
 0xbfa   :  { %v2749_v59 = vpop.f32.mrf.mxu0  ;;  %v2820_v24 = vpop.f32.mrf.mxu1 }
 0xbfb   :  { %v2750_v33 = vadd.f32 %v2749_v59, %v6365_v62  ;;  %v2821_v28 = vadd.f32 %v2820_v24, %v6382_v26  ;;  %v6728_v59 = vld [vmem:[#allocation9 + $0x90] sm:$0xff]  ;;  %v6731_v24 = vld [vmem:[#allocation9 + $0xa0] sm:$0xff] }
 0xbfc   :  { %v4469_v34 = vpop.f32.mrf.mxu1  ;;  %v2751_v36 = vpop.f32.mrf.mxu0 }
 0xbfd   :  { %v2824_v12 = vadd.f32 %v2750_v33, %v2031_v31  ;;  %v2752_v37 = vadd.f32 %v2751_v36, %v6374_v16  ;;  %v6738_v31 = vld [vmem:[#allocation9 + $0x78] sm:$0xff]  ;;  %v6741_v33 = vld [vmem:[#allocation9 + $0x88] sm:$0xff]  ;;  %v6754_v36 = vld [vmem:[#allocation9 + $0x50] sm:$0xff] }
 0xbfe   :  { %v6744_v34 = vld [vmem:[#allocation9 + $0x68] sm:$0xff] }
 0xbff   :  { %v3656_v35 = vmul.f32 -1.442695, %v2824_v12  ;;  %v2825_v41 = vadd.f32 %v2752_v37, %v2033_v40  ;;  %v6748_v12 = vld [vmem:[#allocation9 + $0x60] sm:$0xff]  ;;  %v6758_v37 = vld [vmem:[#allocation9 + $0x48] sm:$0xff]  ;;  %v6764_v40 = vld [vmem:[#allocation9 + $0x38] sm:$0xff] }
 0xc01   :  { %4766 = vpow2.f32 %v3656_v35  ;;  %v3657_v42 = vmul.f32 -1.442695, %v2825_v41  ;;  %v6751_v35 = vld [vmem:[#allocation9 + $0x70] sm:$0xff] }
 0xc02   :  { %v6768_v41 = vld [vmem:[#allocation9 + $0x30] sm:$0xff] }
 0xc03   :  { %4768 = vpow2.f32 %v3657_v42  ;;  %7263 = vst [vmem:[#allocation30_spill] sm:$0xff] %v6768_v41  ;;  %v6771_v42 = vld [vmem:[#allocation9 + $0x40] sm:$0xff] }
 0xc04   :  { %7264 = vst [vmem:[#allocation42_spill] sm:$0xff] %v6771_v42 }
 0xc0e   :  { %v4767_v48 = vpop.eup %4766 }
 0xc0f   :  { %v2832_v29 = vadd.f32 1.0, %v4767_v48  ;;  %v6774_v48 = vld [vmem:[#allocation9 + $0x20] sm:$0xff] }
 0xc10   :  { %v4769_v13 = vpop.eup %4768  ;;  %7265 = vst [vmem:[#allocation34_spill] sm:$0xff] %v6774_v48 }
 0xc11   :  { %4770 = vrcp.f32 %v2832_v29  ;;  %v2833_v49 = vadd.f32 1.0, %v4769_v13  ;;  %v6778_v29 = vld [vmem:[#allocation9 + $0x18] sm:$0xff]  ;;  %v6781_v13 = vld [vmem:[#allocation9 + $0x28] sm:$0xff] }
 0xc12   :  { %7266 = vst [vmem:[#allocation46_spill] sm:$0xff] %v6778_v29  ;;  %7267 = vst [vmem:[#allocation29_spill] sm:$0xff] %v6781_v13 }
 0xc1e   :  { %v4771_v3 = vpop.eup %4770 }
 0xc1f   :  { %v2838_v47 = vmul.f32 %v4771_v3, %v2821_v28  ;;  %v6784_v28 = vld [vmem:[#allocation9 + $0x8] sm:$0xff]  ;;  %v6788_v3 = vld [vmem:[#allocation9] sm:$0xff] }
 0xc20   :  { %7268 = vst [vmem:[#allocation19_spill] sm:$0xff] %v6784_v28  ;;  %7269 = vst [vmem:[#allocation36_spill] sm:$0xff] %v6788_v3 }
 0xc21   :  { %v2839_v46 = vadd.f32 %v2838_v47, %v2141_v1 }
 0xc23   :  { %4772 = vtanh.f32 %v2839_v46  ;;  %v7271_v46 = vld [vmem:[#allocation17_spill] sm:$0xff] }
 0xc24   :  { %4774 = vrcp.f32 %v2833_v49  ;;  %v2037_v49 = vadd.f32 %v7271_v46, %v7235_v9 }
 0xc30   :  { %v4773_v61 = vpop.eup %4772 }
 0xc31   :  { %v2841_v10 = vsub.f32 %v6551_v52, %v4773_v61  ;;  %v4775_v21 = vpop.eup %4774  ;;  %v6698_v52 = vld [vmem:[#allocation9 + $0xd8] sm:$0xff] }
 0xc33   :  { %v2842_v32 = vmul.f32 %v4775_v21, %v2841_v10 }
 0xc35   :  { %v6634_v44 = vadd.f32 %v4773_v61, %v2842_v32 }
 0xc37   :  { %2912 = vmatmul.mubr.f32.vlgmr.msra.gmra.mxu0 %v6634_v44  ;;  %4503 = vmatmul.mubr.f32.vlgmr.msra.gmra.mxu1 %v6634_v44 }
 0xc38   :  { %3012 = vmatpush1.msra.mxu0 %v6638_v2  ;;  %4506 = vmatpush3.msra.mxu1 %v6641_v6 }
 0xc39   :  { %3013 = vmatprep.subr.mxu0 %v6644_v43  ;;  %4507 = vmatprep.subr.mxu1 %v7127_v0 }
 0xc3a   :  { %3014 = vmatpush1.msra.mxu0 %v6648_v4  ;;  %4508 = vmatpush3.msra.mxu1 %v6651_v7 }
 0xc3b   :  { %3015 = vmatprep.subr.mxu0 %v6654_v20  ;;  %4509 = vmatprep.subr.mxu1 %v7127_v0 }
 0xc3c   :  { %3016 = vmatpush1.msra.mxu0 %v6658_v53  ;;  %4510 = vmatpush3.msra.mxu1 %v6661_v54 }
 0xc3d   :  { %3017 = vmatprep.subr.mxu0 %v6664_v38  ;;  %4511 = vmatprep.subr.mxu1 %v7127_v0 }
 0xc3e   :  { %3018 = vmatpush1.msra.mxu0 %v6668_v11  ;;  %4512 = vmatpush3.msra.mxu1 %v6671_v60 }
 0xc3f   :  { %3019 = vmatprep.subr.mxu0 %v6674_v51  ;;  %4513 = vmatprep.subr.mxu1 %v7127_v0 }
 0xc40   :  { %3020 = vmatpush1.msra.mxu0 %v6678_v25  ;;  %4514 = vmatpush3.msra.mxu1 %v6681_v45 }
 0xc41   :  { %3021 = vmatprep.subr.mxu0 %v6684_v15  ;;  %4515 = vmatprep.subr.mxu1 %v7127_v0 }
 0xc42   :  { %3022 = vmatpush1.msra.mxu0 %v6688_v50  ;;  %4516 = vmatpush3.msra.mxu1 %v6691_v58 }
 0xc43   :  { %3023 = vmatprep.subr.mxu0 %v6694_v27  ;;  %4517 = vmatprep.subr.mxu1 %v7127_v0 }
 0xc44   :  { %3024 = vmatpush1.msra.mxu0 %v6698_v52  ;;  %4518 = vmatpush3.msra.mxu1 %v6701_v55 }
 0xc45   :  { %3025 = vmatprep.subr.mxu0 %v6704_v18  ;;  %4519 = vmatprep.subr.mxu1 %v7127_v0 }
 0xc46   :  { %3026 = vmatpush1.msra.mxu0 %v6708_v30  ;;  %4520 = vmatpush3.msra.mxu1 %v6711_v5 }
 0xc47   :  { %3027 = vmatprep.subr.mxu0 %v6714_v56  ;;  %4521 = vmatprep.subr.mxu1 %v7127_v0 }
 0xc48   :  { %3028 = vmatpush1.msra.mxu0 %v6718_v19  ;;  %4522 = vmatpush3.msra.mxu1 %v6721_v57 }
 0xc49   :  { %3029 = vmatprep.subr.mxu0 %v6724_v22  ;;  %4523 = vmatprep.subr.mxu1 %v7127_v0 }
 0xc4a   :  { %3030 = vmatpush1.msra.mxu0 %v6728_v59  ;;  %4524 = vmatpush3.msra.mxu1 %v6731_v24 }
 0xc4b   :  { %3031 = vmatprep.subr.mxu0 %v6734_v8  ;;  %4525 = vmatprep.subr.mxu1 %v7127_v0 }
 0xc4c   :  { %3032 = vmatpush1.msra.mxu0 %v6738_v31  ;;  %4526 = vmatpush3.msra.mxu1 %v6741_v33 }
 0xc4d   :  { %3033 = vmatprep.subr.mxu0 %v6744_v34  ;;  %4527 = vmatprep.subr.mxu1 %v7127_v0 }
 0xc4e   :  { %3034 = vmatpush1.msra.mxu0 %v6748_v12  ;;  %4528 = vmatpush3.msra.mxu1 %v6751_v35 }
 0xc4f   :  { %3035 = vmatprep.subr.mxu0 %v6754_v36  ;;  %4529 = vmatprep.subr.mxu1 %v7127_v0 }
 0xc50   :  { %3036 = vmatpush1.msra.mxu0 %v6758_v37  ;;  %4530 = vmatpush3.msra.mxu1 %v6761_v39 }
 0xc51   :  { %3037 = vmatprep.subr.mxu0 %v6764_v40  ;;  %4531 = vmatprep.subr.mxu1 %v7127_v0 }
 0xc52   :  { %3038 = vmatpush1.msra.mxu0 %v6768_v41  ;;  %4532 = vmatpush3.msra.mxu1 %v6771_v42 }
 0xc53   :  { %3039 = vmatprep.subr.mxu0 %v6774_v48  ;;  %4533 = vmatprep.subr.mxu1 %v7127_v0 }
 0xc54   :  { %3040 = vmatpush1.msra.mxu0 %v6778_v29  ;;  %4534 = vmatpush3.msra.mxu1 %v6781_v13 }
 0xc55   :  { %3041 = vmatprep.subr.mxu0 %v6784_v28  ;;  %4535 = vmatprep.subr.mxu1 %v7127_v0  ;;  %v7272_v28 = vld [vmem:[#allocation28_spill] sm:$0xff] }
 0xc56   :  { %3042 = vmatpush1.msra.mxu0 %v6788_v3  ;;  %3075 = vmatprep.mubr.f32.mxu0 %v7127_v0  ;;  %v2039_v13 = vadd.f32 %v7272_v28, %v6377_v14 }
 0xc57   :  { %4536 = vmatpush3.msra.mxu1 %v6792_v17  ;;  %4537 = vmatprep.mubr.msk.f32.mxu1 %vm5029_vm1, %v7127_v0 }
 0xc58   :  { %3175 = vmatprep.subr.mxu0 %v6620_v23  ;;  %4540 = vmatprep.subr.mxu1 %v7127_v0 }
 0xcf7   :  { %v2913_v1 = vpop.f32.mrf.mxu0  ;;  %v2984_v47 = vpop.f32.mrf.mxu1 }
 0xcf8   :  { %v2914_v61 = vadd.f32 %v2913_v1, %v6365_v62  ;;  %v2985_v46 = vadd.f32 %v2984_v47, %v6382_v26  ;;  %v7279_v47 = vld [vmem:[#allocation19_spill] sm:$0xff] }
 0xcf9   :  { %v4504_v10 = vpop.f32.mrf.mxu1  ;;  %v2915_v3 = vpop.f32.mrf.mxu0 }
 0xcfa   :  { %v2988_v21 = vadd.f32 %v2914_v61, %v2037_v49  ;;  %v2916_v17 = vadd.f32 %v2915_v3, %v6374_v16  ;;  %v7273_v49 = vld [vmem:[#allocation18_spill] sm:$0xff] }
 0xcfb   :  { %v2146_v61 = vadd.f32 %v7273_v49, %v6386_v63  ;;  %v7282_v49 = vld [vmem:[#allocation25_spill] sm:$0xff] }
 0xcfc   :  { %v3658_v32 = vmul.f32 -1.442695, %v2988_v21  ;;  %v2989_v23 = vadd.f32 %v2916_v17, %v2039_v13  ;;  %v7278_v17 = vld [vmem:[#allocation29_spill] sm:$0xff] }
 0xcfe   :  { %4776 = vpow2.f32 %v3658_v32  ;;  %v3659_v29 = vmul.f32 -1.442695, %v2989_v23 }
 0xd00   :  { %4778 = vpow2.f32 %v3659_v29  ;;  %v7277_v29 = vld [vmem:[#allocation46_spill] sm:$0xff] }
 0xd0b   :  { %v4777_v48 = vpop.eup %4776 }
 0xd0c   :  { %v2996_v42 = vadd.f32 1.0, %v4777_v48 }
 0xd0d   :  { %v4779_v41 = vpop.eup %4778 }
 0xd0e   :  { %4780 = vrcp.f32 %v2996_v42  ;;  %v2997_v32 = vadd.f32 1.0, %v4779_v41  ;;  %v7275_v41 = vld [vmem:[#allocation42_spill] sm:$0xff] }
 0xd0f   :  { %v7276_v42 = vld [vmem:[#allocation34_spill] sm:$0xff] }
 0xd1b   :  { %v4781_v1 = vpop.eup %4780 }
 0xd1c   :  { %v3002_v10 = vmul.f32 %v4781_v1, %v2985_v46  ;;  %v7280_v46 = vld [vmem:[#allocation36_spill] sm:$0xff]  ;;  %v7281_v1 = vld [vmem:[#allocation37_spill] sm:$0xff] }
 0xd1e   :  { %v3003_v21 = vadd.f32 %v3002_v10, %v2146_v61 }
 0xd20   :  { %4782 = vtanh.f32 %v3003_v21  ;;  %v7283_v21 = vld [vmem:[#allocation41_spill] sm:$0xff] }
 0xd21   :  { %4784 = vrcp.f32 %v2997_v32  ;;  %v2043_v32 = vadd.f32 %v7283_v21, %v7235_v9 }
 0xd2d   :  { %v4783_v3 = vpop.eup %4782 }
 0xd2e   :  { %v3005_v13 = vsub.f32 %v6634_v44, %v4783_v3  ;;  %v4785_v23 = vpop.eup %4784  ;;  %v7274_v44 = vld [vmem:[#allocation30_spill] sm:$0xff] }
 0xd30   :  { %v3006_v28 = vmul.f32 %v4785_v23, %v3005_v13 }
 0xd32   :  { %v6809_v48 = vadd.f32 %v4783_v3, %v3006_v28 }
 0xd34   :  { %3076 = vmatmul.mubr.f32.vlgmr.msra.gmra.mxu0 %v6809_v48  ;;  %4538 = vmatmul.mubr.f32.vlgmr.msra.gmra.mxu1 %v6809_v48 }
 0xd35   :  { %3176 = vmatpush1.msra.mxu0 %v6638_v2  ;;  %4541 = vmatpush3.msra.mxu1 %v6641_v6 }
 0xd36   :  { %3177 = vmatprep.subr.mxu0 %v6644_v43  ;;  %4542 = vmatprep.subr.mxu1 %v7127_v0 }
 0xd37   :  { %3178 = vmatpush1.msra.mxu0 %v6648_v4  ;;  %4543 = vmatpush3.msra.mxu1 %v6651_v7 }
 0xd38   :  { %3179 = vmatprep.subr.mxu0 %v6654_v20  ;;  %4544 = vmatprep.subr.mxu1 %v7127_v0 }
 0xd39   :  { %3180 = vmatpush1.msra.mxu0 %v6658_v53  ;;  %4545 = vmatpush3.msra.mxu1 %v6661_v54 }
 0xd3a   :  { %3181 = vmatprep.subr.mxu0 %v6664_v38  ;;  %4546 = vmatprep.subr.mxu1 %v7127_v0 }
 0xd3b   :  { %3182 = vmatpush1.msra.mxu0 %v6668_v11  ;;  %4547 = vmatpush3.msra.mxu1 %v6671_v60 }
 0xd3c   :  { %3183 = vmatprep.subr.mxu0 %v6674_v51  ;;  %4548 = vmatprep.subr.mxu1 %v7127_v0 }
 0xd3d   :  { %3184 = vmatpush1.msra.mxu0 %v6678_v25  ;;  %4549 = vmatpush3.msra.mxu1 %v6681_v45 }
 0xd3e   :  { %3185 = vmatprep.subr.mxu0 %v6684_v15  ;;  %4550 = vmatprep.subr.mxu1 %v7127_v0 }
 0xd3f   :  { %3186 = vmatpush1.msra.mxu0 %v6688_v50  ;;  %4551 = vmatpush3.msra.mxu1 %v6691_v58 }
 0xd40   :  { %3187 = vmatprep.subr.mxu0 %v6694_v27  ;;  %4552 = vmatprep.subr.mxu1 %v7127_v0 }
 0xd41   :  { %3188 = vmatpush1.msra.mxu0 %v6698_v52  ;;  %4553 = vmatpush3.msra.mxu1 %v6701_v55 }
 0xd42   :  { %3189 = vmatprep.subr.mxu0 %v6704_v18  ;;  %4554 = vmatprep.subr.mxu1 %v7127_v0 }
 0xd43   :  { %3190 = vmatpush1.msra.mxu0 %v6708_v30  ;;  %4555 = vmatpush3.msra.mxu1 %v6711_v5 }
 0xd44   :  { %3191 = vmatprep.subr.mxu0 %v6714_v56  ;;  %4556 = vmatprep.subr.mxu1 %v7127_v0 }
 0xd45   :  { %3192 = vmatpush1.msra.mxu0 %v6718_v19  ;;  %4557 = vmatpush3.msra.mxu1 %v6721_v57 }
 0xd46   :  { %3193 = vmatprep.subr.mxu0 %v6724_v22  ;;  %4558 = vmatprep.subr.mxu1 %v7127_v0 }
 0xd47   :  { %3194 = vmatpush1.msra.mxu0 %v6728_v59  ;;  %4559 = vmatpush3.msra.mxu1 %v6731_v24 }
 0xd48   :  { %3195 = vmatprep.subr.mxu0 %v6734_v8  ;;  %4560 = vmatprep.subr.mxu1 %v7127_v0 }
 0xd49   :  { %3196 = vmatpush1.msra.mxu0 %v6738_v31  ;;  %4561 = vmatpush3.msra.mxu1 %v6741_v33 }
 0xd4a   :  { %3197 = vmatprep.subr.mxu0 %v6744_v34  ;;  %4562 = vmatprep.subr.mxu1 %v7127_v0 }
 0xd4b   :  { %3198 = vmatpush1.msra.mxu0 %v6748_v12  ;;  %4563 = vmatpush3.msra.mxu1 %v6751_v35 }
 0xd4c   :  { %3199 = vmatprep.subr.mxu0 %v6754_v36  ;;  %4564 = vmatprep.subr.mxu1 %v7127_v0 }
 0xd4d   :  { %3200 = vmatpush1.msra.mxu0 %v6758_v37  ;;  %4565 = vmatpush3.msra.mxu1 %v6761_v39 }
 0xd4e   :  { %3201 = vmatprep.subr.mxu0 %v6764_v40  ;;  %4566 = vmatprep.subr.mxu1 %v7127_v0 }
 0xd4f   :  { %3202 = vmatpush1.msra.mxu0 %v7274_v44  ;;  %4567 = vmatpush3.msra.mxu1 %v7275_v41 }
 0xd50   :  { %3203 = vmatprep.subr.mxu0 %v7276_v42  ;;  %4568 = vmatprep.subr.mxu1 %v7127_v0 }
 0xd51   :  { %3204 = vmatpush1.msra.mxu0 %v7277_v29  ;;  %4569 = vmatpush3.msra.mxu1 %v7278_v17 }
 0xd52   :  { %3205 = vmatprep.subr.mxu0 %v7279_v47  ;;  %4570 = vmatprep.subr.mxu1 %v7127_v0  ;;  %v7284_v47 = vld [vmem:[#allocation39_spill] sm:$0xff] }
 0xd53   :  { %3206 = vmatpush1.msra.mxu0 %v7280_v46  ;;  %3239 = vmatprep.mubr.f32.mxu0 %v7127_v0  ;;  %v2045_v17 = vadd.f32 %v7284_v47, %v6377_v14 }
 0xd54   :  { %4571 = vmatpush3.msra.mxu1 %v7281_v1  ;;  %4572 = vmatprep.mubr.msk.f32.mxu1 %vm5029_vm1, %v7127_v0 }
 0xd55   :  { %3339 = vmatprep.subr.mxu0 %v7282_v49  ;;  %4575 = vmatprep.subr.mxu1 %v7127_v0 }
 0xdf4   :  { %v3077_v61 = vpop.f32.mrf.mxu0  ;;  %v3148_v10 = vpop.f32.mrf.mxu1 }
 0xdf5   :  { %v3078_v3 = vadd.f32 %v3077_v61, %v6365_v62  ;;  %v3149_v21 = vadd.f32 %v3148_v10, %v6382_v26  ;;  %v3509_v10 = vld [vmem:[#allocation10 + $0x48] sm:$0xff] }
 0xdf6   :  { %v4539_v13 = vpop.f32.mrf.mxu1  ;;  %v3079_v46 = vpop.f32.mrf.mxu0 }
 0xdf7   :  { %v3152_v23 = vadd.f32 %v3078_v3, %v2043_v32  ;;  %v3080_v1 = vadd.f32 %v3079_v46, %v6374_v16  ;;  %v7285_v32 = vld [vmem:[#allocation48_spill] sm:$0xff] }
 0xdf8   :  { %v2151_v3 = vadd.f32 %v7285_v32, %v6386_v63  ;;  %v3505_v32 = vld [vmem:[#allocation10 + $0x28] sm:$0xff] }
 0xdf9   :  { %v3660_v28 = vmul.f32 -1.442695, %v3152_v23  ;;  %v3153_v49 = vadd.f32 %v3080_v1, %v2045_v17 }
 0xdfb   :  { %4786 = vpow2.f32 %v3660_v28  ;;  %v3661_v29 = vmul.f32 -1.442695, %v3153_v49  ;;  %v3508_v49 = vld [vmem:[#allocation10 + $0x40] sm:$0xff] }
 0xdfd   :  { %4788 = vpow2.f32 %v3661_v29  ;;  %v3510_v29 = vld [vmem:[#allocation10 + $0x50] sm:$0xff] }
 0xe08   :  { %v4787_v42 = vpop.eup %4786 }
 0xe09   :  { %v3160_v41 = vadd.f32 1.0, %v4787_v42 }
 0xe0a   :  { %v4789_v44 = vpop.eup %4788 }
 0xe0b   :  { %4790 = vrcp.f32 %v3160_v41  ;;  %v3161_v28 = vadd.f32 1.0, %v4789_v44  ;;  %v3512_v44 = vld [vmem:[#allocation10 + $0x60] sm:$0xff]  ;;  %v3511_v41 = vld [vmem:[#allocation10 + $0x58] sm:$0xff] }
 0xe18   :  { %v4791_v61 = vpop.eup %4790 }
 0xe19   :  { %v3166_v13 = vmul.f32 %v4791_v61, %v3149_v21  ;;  %v3507_v21 = vld [vmem:[#allocation10 + $0x38] sm:$0xff]  ;;  %v3506_v61 = vld [vmem:[#allocation10 + $0x30] sm:$0xff] }
 0xe1b   :  { %v3167_v23 = vadd.f32 %v3166_v13, %v2151_v3  ;;  %v3504_v3 = vld [vmem:[#allocation10 + $0x20] sm:$0xff]  ;;  %v3503_v13 = vld [vmem:[#allocation10 + $0x18] sm:$0xff] }
 0xe1d   :  { %4792 = vtanh.f32 %v3167_v23  ;;  %v3502_v23 = vld [vmem:[#allocation10 + $0x10] sm:$0xff] }
 0xe1e   :  { %4794 = vrcp.f32 %v3161_v28  ;;  %v3501_v28 = vld [vmem:[#allocation10 + $0x8] sm:$0xff] }
 0xe2a   :  { %v4793_v46 = vpop.eup %4792 }
 0xe2b   :  { %v3169_v17 = vsub.f32 %v6809_v48, %v4793_v46  ;;  %v4795_v47 = vpop.eup %4794  ;;  %v3513_v48 = vld [vmem:[#allocation10 + $0x68] sm:$0xff] }
 0xe2d   :  { %v3170_v1 = vmul.f32 %v4795_v47, %v3169_v17 }
 0xe2f   :  { %v6890_v42 = vadd.f32 %v4793_v46, %v3170_v1  ;;  %v3500_v46 = vld [vmem:[#allocation10] sm:$0xff]  ;;  %v7297_v1 = vld [vmem:[#allocation27_spill] sm:$0xff] }
 0xe31   :  { %3240 = vmatmul.mubr.f32.vlgmr.msra.gmra.mxu0 %v6890_v42  ;;  %4573 = vmatmul.mubr.f32.vlgmr.msra.gmra.mxu1 %v6890_v42 }
 0xe32   :  { %3340 = vmatpush1.msra.mxu0 %v6638_v2  ;;  %4576 = vmatpush3.msra.mxu1 %v6641_v6  ;;  %v7286_v2 = vld [vmem:[#allocation30_spill] sm:$0xff] }
 0xe33   :  { %3341 = vmatprep.subr.mxu0 %v6644_v43  ;;  %4577 = vmatprep.subr.mxu1 %v7127_v0  ;;  %v7287_v6 = vld [vmem:[#allocation42_spill] sm:$0xff] }
 0xe34   :  { %3342 = vmatpush1.msra.mxu0 %v6648_v4  ;;  %4578 = vmatpush3.msra.mxu1 %v6651_v7  ;;  %v7288_v43 = vld [vmem:[#allocation34_spill] sm:$0xff]  ;;  %v7290_v7 = vld [vmem:[#allocation29_spill] sm:$0xff] }
 0xe35   :  { %3343 = vmatprep.subr.mxu0 %v6654_v20  ;;  %4579 = vmatprep.subr.mxu1 %v7127_v0  ;;  %v7289_v4 = vld [vmem:[#allocation46_spill] sm:$0xff]  ;;  %v7291_v20 = vld [vmem:[#allocation19_spill] sm:$0xff] }
 0xe36   :  { %3344 = vmatpush1.msra.mxu0 %v6658_v53  ;;  %4580 = vmatpush3.msra.mxu1 %v6661_v54  ;;  %v7292_v53 = vld [vmem:[#allocation36_spill] sm:$0xff]  ;;  %v7293_v54 = vld [vmem:[#allocation37_spill] sm:$0xff] }
 0xe37   :  { %3345 = vmatprep.subr.mxu0 %v6664_v38  ;;  %4581 = vmatprep.subr.mxu1 %v7127_v0 }
 0xe38   :  { %3346 = vmatpush1.msra.mxu0 %v6668_v11  ;;  %4582 = vmatpush3.msra.mxu1 %v6671_v60  ;;  %v7294_v60 = vld [vmem:[#allocation49_spill] sm:$0xff] }
 0xe39   :  { %3347 = vmatprep.subr.mxu0 %v6674_v51  ;;  %4583 = vmatprep.subr.mxu1 %v7127_v0  ;;  %v2049_v51 = vadd.f32 %v7294_v60, %v7235_v9 }
 0xe3a   :  { %3348 = vmatpush1.msra.mxu0 %v6678_v25  ;;  %4584 = vmatpush3.msra.mxu1 %v6681_v45 }
 0xe3b   :  { %3349 = vmatprep.subr.mxu0 %v6684_v15  ;;  %4585 = vmatprep.subr.mxu1 %v7127_v0 }
 0xe3c   :  { %3350 = vmatpush1.msra.mxu0 %v6688_v50  ;;  %4586 = vmatpush3.msra.mxu1 %v6691_v58 }
 0xe3d   :  { %3351 = vmatprep.subr.mxu0 %v6694_v27  ;;  %4587 = vmatprep.subr.mxu1 %v7127_v0 }
 0xe3e   :  { %3352 = vmatpush1.msra.mxu0 %v6698_v52  ;;  %4588 = vmatpush3.msra.mxu1 %v6701_v55  ;;  %v7295_v52 = vld [vmem:[#allocation26_spill] sm:$0xff] }
 0xe3f   :  { %3353 = vmatprep.subr.mxu0 %v6704_v18  ;;  %4589 = vmatprep.subr.mxu1 %v7127_v0  ;;  %v2051_v55 = vadd.f32 %v7295_v52, %v6377_v14 }
 0xe40   :  { %3354 = vmatpush1.msra.mxu0 %v6708_v30  ;;  %4590 = vmatpush3.msra.mxu1 %v6711_v5 }
 0xe41   :  { %3355 = vmatprep.subr.mxu0 %v6714_v56  ;;  %4591 = vmatprep.subr.mxu1 %v7127_v0 }
 0xe42   :  { %3356 = vmatpush1.msra.mxu0 %v6718_v19  ;;  %4592 = vmatpush3.msra.mxu1 %v6721_v57 }
 0xe43   :  { %3357 = vmatprep.subr.mxu0 %v6724_v22  ;;  %4593 = vmatprep.subr.mxu1 %v7127_v0 }
 0xe44   :  { %3358 = vmatpush1.msra.mxu0 %v6728_v59  ;;  %4594 = vmatpush3.msra.mxu1 %v6731_v24  ;;  %v7296_v59 = vld [vmem:[#allocation24_spill] sm:$0xff] }
 0xe45   :  { %3359 = vmatprep.subr.mxu0 %v6734_v8  ;;  %4595 = vmatprep.subr.mxu1 %v7127_v0  ;;  %v2156_v24 = vadd.f32 %v7296_v59, %v6386_v63 }
 0xe46   :  { %3360 = vmatpush1.msra.mxu0 %v6738_v31  ;;  %4596 = vmatpush3.msra.mxu1 %v6741_v33 }
 0xe47   :  { %3361 = vmatprep.subr.mxu0 %v6744_v34  ;;  %4597 = vmatprep.subr.mxu1 %v7127_v0 }
 0xe48   :  { %3362 = vmatpush1.msra.mxu0 %v6748_v12  ;;  %4598 = vmatpush3.msra.mxu1 %v6751_v35 }
 0xe49   :  { %3363 = vmatprep.subr.mxu0 %v6754_v36  ;;  %4599 = vmatprep.subr.mxu1 %v7127_v0 }
 0xe4a   :  { %3364 = vmatpush1.msra.mxu0 %v6758_v37  ;;  %4600 = vmatpush3.msra.mxu1 %v6761_v39  ;;  %v3515_v39 = vld [vmem:[#allocation10 + $0x78] sm:$0xff] }
 0xe4b   :  { %3365 = vmatprep.subr.mxu0 %v6764_v40  ;;  %4601 = vmatprep.subr.mxu1 %v7127_v0  ;;  %v3514_v40 = vld [vmem:[#allocation10 + $0x70] sm:$0xff] }
 0xe4c   :  { %3366 = vmatpush1.msra.mxu0 %v7286_v2  ;;  %4602 = vmatpush3.msra.mxu1 %v7287_v6 }
 0xe4d   :  { %3367 = vmatprep.subr.mxu0 %v7288_v43  ;;  %4603 = vmatprep.subr.mxu1 %v7127_v0 }
 0xe4e   :  { %3368 = vmatpush1.msra.mxu0 %v7289_v4  ;;  %4604 = vmatpush3.msra.mxu1 %v7290_v7 }
 0xe4f   :  { %3369 = vmatprep.subr.mxu0 %v7291_v20  ;;  %4605 = vmatprep.subr.mxu1 %v7127_v0 }
 0xe50   :  { %3370 = vmatpush1.msra.mxu0 %v7292_v53  ;;  %3403 = vmatprep.mubr.f32.mxu0 %v7127_v0  ;;  %v7298_v53 = vld [vmem:[#allocation47_spill] sm:$0xff] }
 0xe51   :  { %4606 = vmatpush3.msra.mxu1 %v7293_v54  ;;  %4607 = vmatprep.mubr.msk.f32.mxu1 %vm5029_vm1, %v7127_v0  ;;  %v2057_v54 = vadd.f32 %v7298_v53, %v6377_v14 }
 0xe52   :  { %4610 = vmatprep.subr.mxu0 %v7127_v0 }
 0xef1   :  { %v3241_v38 = vpop.f32.mrf.mxu0  ;;  %v3312_v11 = vpop.f32.mrf.mxu1 }
 0xef2   :  { %v3242_v25 = vadd.f32 %v3241_v38, %v6365_v62  ;;  %v3313_v57 = vadd.f32 %v3312_v11, %v6382_v26 }
 0xef3   :  { %v4574_v45 = vpop.f32.mrf.mxu1  ;;  %v3243_v58 = vpop.f32.mrf.mxu0 }
 0xef4   :  { %v3316_v15 = vadd.f32 %v3242_v25, %v2049_v51  ;;  %v3244_v27 = vadd.f32 %v3243_v58, %v6374_v16  ;;  %v7299_v25 = vld [vmem:[#allocation40_spill] sm:$0xff] }
 0xef5   :  { %v2161_v45 = vadd.f32 %v7299_v25, %v6386_v63 }
 0xef6   :  { %v3662_v50 = vmul.f32 -1.442695, %v3316_v15  ;;  %v3317_v18 = vadd.f32 %v3244_v27, %v2051_v55 }
 0xef8   :  { %4796 = vpow2.f32 %v3662_v50  ;;  %v3663_v30 = vmul.f32 -1.442695, %v3317_v18 }
 0xefa   :  { %4798 = vpow2.f32 %v3663_v30 }
 0xf05   :  { %v4797_v5 = vpop.eup %4796 }
 0xf06   :  { %v3324_v56 = vadd.f32 1.0, %v4797_v5 }
 0xf07   :  { %v4799_v19 = vpop.eup %4798 }
 0xf08   :  { %4800 = vrcp.f32 %v3324_v56  ;;  %v3325_v33 = vadd.f32 1.0, %v4799_v19 }
 0xf15   :  { %v4801_v22 = vpop.eup %4800 }
 0xf16   :  { %v3330_v8 = vmul.f32 %v4801_v22, %v3313_v57 }
 0xf18   :  { %v3331_v31 = vadd.f32 %v3330_v8, %v2156_v24 }
 0xf1a   :  { %4802 = vtanh.f32 %v3331_v31 }
 0xf1b   :  { %4804 = vrcp.f32 %v3325_v33 }
 0xf27   :  { %v4803_v34 = vpop.eup %4802 }
 0xf28   :  { %v3333_v12 = vsub.f32 %v6890_v42, %v4803_v34  ;;  %v4805_v35 = vpop.eup %4804  ;;  %v2055_v42 = vadd.f32 %v7297_v1, %v7235_v9 }
 0xf2a   :  { %v3334_v36 = vmul.f32 %v4805_v35, %v3333_v12 }
 0xf2c   :  { %v6970_v37 = vadd.f32 %v4803_v34, %v3334_v36 }
 0xf2e   :  { %3404 = vmatmul.mubr.f32.vlgmr.msra.gmra.mxu0 %v6970_v37  ;;  %4608 = vmatmul.mubr.f32.vlgmr.msra.gmra.mxu1 %v6970_v37 }
 0xf2f   :  { %4642 = vmatprep.mubr.msk.f32.mxu0 %vm5029_vm1, %v7127_v0  ;;  %4611 = vmatpush3.msra.mxu0 %v3515_v39 }
 0xf30   :  { %4612 = vmatprep.subr.mxu0 %v7127_v0 }
 0xf31   :  { %4613 = vmatpush3.msra.mxu0 %v3514_v40 }
 0xf32   :  { %4614 = vmatprep.subr.mxu0 %v7127_v0 }
 0xf33   :  { %4615 = vmatpush3.msra.mxu0 %v3513_v48 }
 0xf34   :  { %4616 = vmatprep.subr.mxu0 %v7127_v0 }
 0xf35   :  { %4617 = vmatpush3.msra.mxu0 %v3512_v44 }
 0xf36   :  { %4618 = vmatprep.subr.mxu0 %v7127_v0 }
 0xf37   :  { %4619 = vmatpush3.msra.mxu0 %v3511_v41 }
 0xf38   :  { %4620 = vmatprep.subr.mxu0 %v7127_v0 }
 0xf39   :  { %4621 = vmatpush3.msra.mxu0 %v3510_v29 }
 0xf3a   :  { %4622 = vmatprep.subr.mxu0 %v7127_v0 }
 0xf3b   :  { %4623 = vmatpush3.msra.mxu0 %v3509_v10 }
 0xf3c   :  { %4624 = vmatprep.subr.mxu0 %v7127_v0 }
 0xf3d   :  { %4625 = vmatpush3.msra.mxu0 %v3508_v49 }
 0xf3e   :  { %4626 = vmatprep.subr.mxu0 %v7127_v0 }
 0xf3f   :  { %4627 = vmatpush3.msra.mxu0 %v3507_v21 }
 0xf40   :  { %4628 = vmatprep.subr.mxu0 %v7127_v0 }
 0xf41   :  { %4629 = vmatpush3.msra.mxu0 %v3506_v61 }
 0xf42   :  { %4630 = vmatprep.subr.mxu0 %v7127_v0 }
 0xf43   :  { %4631 = vmatpush3.msra.mxu0 %v3505_v32 }
 0xf44   :  { %4632 = vmatprep.subr.mxu0 %v7127_v0 }
 0xf45   :  { %4633 = vmatpush3.msra.mxu0 %v3504_v3 }
 0xf46   :  { %4634 = vmatprep.subr.mxu0 %v7127_v0 }
 0xf47   :  { %4635 = vmatpush3.msra.mxu0 %v3503_v13 }
 0xf48   :  { %4636 = vmatprep.subr.mxu0 %v7127_v0 }
 0xf49   :  { %4637 = vmatpush3.msra.mxu0 %v3502_v23 }
 0xf4a   :  { %4638 = vmatprep.subr.mxu0 %v7127_v0 }
 0xf4b   :  { %4639 = vmatpush3.msra.mxu0 %v3501_v28 }
 0xf4c   :  { %4640 = vmatprep.subr.mxu0 %v7127_v0 }
 0xf4d   :  { %4641 = vmatpush3.msra.mxu0 %v3500_v46 }
 0xfee   :  { %v3405_v17 = vpop.f32.mrf.mxu0  ;;  %v3476_v47 = vpop.f32.mrf.mxu1 }
 0xfef   :  { %v3406_v2 = vadd.f32 %v3405_v17, %v6365_v62  ;;  %v3477_v9 = vadd.f32 %v3476_v47, %v6382_v26  ;;  %v3666_v26 = vld [vmem:[%s7017_s10] ss:$0 sm:$0xff] }
 0xff0   :  { %v4609_v6 = vpop.f32.mrf.mxu1  ;;  %v3407_v7 = vpop.f32.mrf.mxu0 }
 0xff1   :  { %v3480_v43 = vadd.f32 %v3406_v2, %v2055_v42  ;;  %v3408_v20 = vadd.f32 %v3407_v7, %v6374_v16 }
 0xff3   :  { %v3664_v4 = vmul.f32 -1.442695, %v3480_v43  ;;  %v3481_v38 = vadd.f32 %v3408_v20, %v2057_v54 }
 0xff5   :  { %4806 = vpow2.f32 %v3664_v4  ;;  %v3665_v0 = vmul.f32 -1.442695, %v3481_v38 }
 0xff7   :  { %4808 = vpow2.f32 %v3665_v0 }
0x1002   :  { %v4807_v11 = vpop.eup %4806 }
0x1003   :  { %v3488_v60 = vadd.f32 1.0, %v4807_v11 }
0x1004   :  { %v4809_v51 = vpop.eup %4808 }
0x1005   :  { %4810 = vrcp.f32 %v3488_v60  ;;  %v3489_v58 = vadd.f32 1.0, %v4809_v51 }
0x1012   :  { %v4811_v62 = vpop.eup %4810 }
0x1013   :  { %v3494_v15 = vmul.f32 %v4811_v62, %v3477_v9 }
0x1015   :  { %v3495_v50 = vadd.f32 %v3494_v15, %v2161_v45 }
0x1017   :  { %4812 = vtanh.f32 %v3495_v50 }
0x1018   :  { %4814 = vrcp.f32 %v3489_v58 }
0x1024   :  { %v4813_v16 = vpop.eup %4812 }
0x1025   :  { %v3497_v14 = vsub.f32 %v6970_v37, %v4813_v16  ;;  %v4815_v27 = vpop.eup %4814 }
0x1027   :  { %v3498_v52 = vmul.f32 %v4815_v27, %v3497_v14 }
0x1029   :  { %v3499_v55 = vadd.f32 %v4813_v16, %v3498_v52 }
0x102b   :  { %4643 = vmatmul.mubr.f32.vlgmr.msra.gmra.mxu0 %v3499_v55 }
0x10eb   :  { %v3589_v18 = vpop.f32.mrf.mxu0 }
0x10ec   :  { %v3590_v63 = vadd.f32 %v3666_v26, %v3589_v18 }
0x10ed   :  { %v4644_v30 = vpop.f32.mrf.mxu0 }
0x10ee   :  { %3593 = vst [vmem:[#allocation12] sm:$0xff] %v3590_v63 }
0x10ef   :  { %5003 = shalt.err (!%p5000_p10)
}
0x10f0   :  { %3603 = dma.vmem_to_hbm [thread:$0]  %s3601_s28, 128, %s7018_s11, [#allocation6]  }
0x10f1   :  { %5018 = dma.done.wait [#allocation6], 128  }
0x10f2   :  { %5019 = vsyncadd [#allocation6], 4294967168 }
0x10f3   :  { %3607 = vsyncpa [#allocation5], 1 }
0x10f4   :  { %3608 = vsyncpa [#allocation8], 1 }
0x10f5   :  { %3609 = vsyncpa [#allocation11], 1 }
0x10f6   :  { %3610 = vsyncpa [#allocation6], 1 }

</bundles_post_ra>
